<compile_context>
chip_gen: v5e
topology: v5e:2x2
jax: 0.10.0
libtpu: 0.0.40
codegen_flags: <defaults>
</compile_context>

<pallas_src>
import jax
import jax.numpy as jnp
from jax.experimental import pallas as pl
from jax.experimental.pallas import tpu as pltpu

# Layer sizes from the PyTorch module.
DIMS = [4, 256, 128, 64, 32, 4]


def _round_up(n, m):
    return ((n + m - 1) // m) * m


def _device_kind():
    try:
        return jax.devices()[0].device_kind.lower()
    except Exception:
        return ""


def _tensorcores_per_chip():
    # v7x has 2 TensorCores per chip; v5e/v6e (and older) expose 1 per device.
    return 2 if "v7" in _device_kind() else 1


def _default_layer1_on_mxu():
    # v6e/v7x: 256-wide MXU has slack (layers 2-5 underfill it), so the K=4
    # layer rides the otherwise-idle vmatmul slot.  v5e (and older): keep the
    # K=4 layer on the VPU so the 128-wide MXU isn't padded >97%.
    kind = _device_kind()
    return ("v6" in kind) or ("v7" in kind)


def make_mlp_kernel(layer1_on_mxu):
    def mlp_kernel(x_ref,
                   w1_ref, b1_ref,
                   w2_ref, b2_ref,
                   w3_ref, b3_ref,
                   w4_ref, b4_ref,
                   w5_ref, b5_ref,
                   o_ref):
        """Fused 5-layer MLP.

        Matmuls take bf16 operands and accumulate in f32 on the MXU; bias adds
        and ReLUs run in f32 on the VPU; intermediates are stored as bf16.
        """
        # ---- Layer 1: 4 -> 256 ----
        if layer1_on_mxu:
            h = jnp.dot(x_ref[...].astype(jnp.bfloat16), w1_ref[...],
                        preferred_element_type=jnp.float32) + b1_ref[...]
        else:
            # VPU path: 4 broadcast-FMA steps in f32 (avoids a >97%-padded
            # MXU pass on 128-wide-MXU chips).
            x = x_ref[...].astype(jnp.float32)              # (tile, 4)
            w1 = w1_ref[...].astype(jnp.float32)            # (4, 256)
            h = b1_ref[...] + x[:, 0:1] * w1[0:1, :]
            h = h + x[:, 1:2] * w1[1:2, :]
            h = h + x[:, 2:3] * w1[2:3, :]
            h = h + x[:, 3:4] * w1[3:4, :]
        h = jnp.maximum(h, 0.0).astype(jnp.bfloat16)

        # ---- Layers 2-5 on the MXU: bf16 operands, f32 accumulate ----
        def dense(h_bf16, w_ref, b_ref):
            return jnp.dot(h_bf16, w_ref[...],
                           preferred_element_type=jnp.float32) + b_ref[...]

        h = jnp.maximum(dense(h, w2_ref, b2_ref), 0.0).astype(jnp.bfloat16)
        h = jnp.maximum(dense(h, w3_ref, b3_ref), 0.0).astype(jnp.bfloat16)
        h = jnp.maximum(dense(h, w4_ref, b4_ref), 0.0).astype(jnp.bfloat16)
        h = dense(h, w5_ref, b5_ref)                        # final layer: no ReLU, f32

        o_ref[...] = h.astype(o_ref.dtype)

    return mlp_kernel


def prepare_params(params):
    """Cast weights to bf16 ONCE (MXU operands); biases stay f32."""
    return [(w.astype(jnp.bfloat16), b.astype(jnp.float32)) for (w, b) in params]


def mlp_forward(x, bf16_params, *, batch_tile=2048, layer1_on_mxu=None,
                min_grid_steps=None):
    """x: [B, 4] float32. bf16_params: list of (W[in,out] bf16, b[1,out] f32)."""
    B, Din = x.shape
    assert Din == DIMS[0]
    Dout = DIMS[-1]

    if layer1_on_mxu is None:
        layer1_on_mxu = _default_layer1_on_mxu()
    if min_grid_steps is None:
        # v7x: >=4 steps so both TensorCores get work and the pipeline has
        # prologue/epilogue overlap.  v5e/v6e (single TC): 1 step is optimal
        # whenever the batch fits the tile -- extra steps are pure overhead.
        min_grid_steps = 4 if _tensorcores_per_chip() >= 2 else 1

    # Tile: as large as batch_tile allows (amortize the ~0.35us per-step fixed
    # cost and the MXU weight push/drain), multiple of 8 (sublane granularity),
    # but enough grid steps for the chip's TensorCore count.
    tile = min(batch_tile, _round_up(pl.cdiv(B, min_grid_steps), 8))
    tile = max(8, _round_up(tile, 8))

    # Pad ragged batches to a tile multiple; padded rows are sliced off below.
    Bp = _round_up(B, tile)
    if Bp != B:
        x = jnp.pad(x, ((0, Bp - B), (0, 0)))

    grid = (Bp // tile,)

    # All weights stay resident in VMEM (~90 KB in bf16); tile only over batch.
    in_specs = [pl.BlockSpec((tile, Din), lambda i: (i, 0))]
    flat_params = []
    for (w, b) in bf16_params:
        in_specs.append(pl.BlockSpec(w.shape, lambda i: (0, 0)))
        in_specs.append(pl.BlockSpec(b.shape, lambda i: (0, 0)))
        flat_params.append(w)
        flat_params.append(b)

    out_spec = pl.BlockSpec((tile, Dout), lambda i: (i, 0))

    # Advisory cost estimate for XLA's scheduler.
    total_mac = sum(DIMS[i] * DIMS[i + 1] for i in range(len(DIMS) - 1))
    weight_bytes = sum(DIMS[i] * DIMS[i + 1] * 2 + DIMS[i + 1] * 4
                       for i in range(len(DIMS) - 1))
    cost = pl.CostEstimate(
        flops=int(2 * Bp * total_mac),
        transcendentals=0,
        bytes_accessed=int(Bp * (Din + Dout) * 4 + weight_bytes),
    )

    out = pl.pallas_call(
        make_mlp_kernel(layer1_on_mxu),
        out_shape=jax.ShapeDtypeStruct((Bp, Dout), x.dtype),
        grid_spec=pltpu.PrefetchScalarGridSpec(
            num_scalar_prefetch=0,
            grid=grid,
            in_specs=in_specs,
            out_specs=out_spec,
        ),
        compiler_params=pltpu.CompilerParams(
            dimension_semantics=("parallel",),
            # Budgeted against v7x's 64 MiB physical VMEM; actual per-step use
            # at tile=2048 is only a few MiB (x/out blocks ~1 MiB each padded
            # to 128 lanes, bf16 intermediates ~1 MiB, weights ~90 KB).
            vmem_limit_bytes=48 * 1024 * 1024,
        ),
        cost_estimate=cost,
    )(x, *flat_params)

    return out[:B] if Bp != B else out


def init_params(key):
    """Deterministic init matching the PyTorch layer shapes.

    PyTorch nn.Linear(in, out) stores weight [out, in]; we keep the transposed
    [in, out] layout so the kernel computes x @ W + b directly.
    """
    params = []
    for i in range(len(DIMS) - 1):
        din, dout = DIMS[i], DIMS[i + 1]
        key, kw, kb = jax.random.split(key, 3)
        bound = 1.0 / jnp.sqrt(float(din))  # same scale as PyTorch default init
        w = jax.random.uniform(kw, (din, dout), jnp.float32, -bound, bound)
        b = jax.random.uniform(kb, (1, dout), jnp.float32, -bound, bound)
        params.append((w, b))
    return params


def mlp_reference(x, bf16_params, *, layer1_on_mxu):
    """Pure-JAX reference emulating the kernel's mixed precision exactly:
    bf16 weights, bf16 activations into each MXU matmul, f32 accumulation /
    bias / ReLU.  Layer 1 stays f32 on the VPU path."""
    h = x.astype(jnp.float32)
    n = len(bf16_params)
    for i, (w, b) in enumerate(bf16_params):
        w32 = w.astype(jnp.float32)
        if i == 0 and not layer1_on_mxu:
            h = h @ w32 + b                                       # f32 FMA path
        else:
            h = h.astype(jnp.bfloat16).astype(jnp.float32) @ w32 + b
        if i < n - 1:
            h = jnp.maximum(h, 0.0)
    return h


if __name__ == "__main__":
    key = jax.random.PRNGKey(0)
    key, kx1, kx2, kx3 = jax.random.split(key, 4)
    params = init_params(key)
    bf16_params = prepare_params(params)        # cast weights to bf16 once
    l1_mxu = _default_layer1_on_mxu()

    # Case 1: batch fits the tile -> single grid step on single-TC chips.
    B1 = 512
    x1 = jax.random.normal(kx1, (B1, DIMS[0]), jnp.float32)
    out1 = jax.block_until_ready(mlp_forward(x1, bf16_params))
    ref1 = mlp_reference(x1, bf16_params, layer1_on_mxu=l1_mxu)
    assert out1.shape == (B1, DIMS[-1])
    assert jnp.allclose(out1, ref1, atol=2e-3, rtol=2e-3), "mismatch vs reference (B=512)"

    # Case 2: ragged batch -> padded internally, output sliced back.
    B2 = 203
    x2 = jax.random.normal(kx2, (B2, DIMS[0]), jnp.float32)
    out2 = jax.block_until_ready(mlp_forward(x2, bf16_params))
    ref2 = mlp_reference(x2, bf16_params, layer1_on_mxu=l1_mxu)
    assert out2.shape == (B2, DIMS[-1])
    assert jnp.allclose(out2, ref2, atol=2e-3, rtol=2e-3), "mismatch vs reference (B=203)"

    # Case 3: force a multi-step grid (exercises the pipelined path).
    B3 = 512
    x3 = jax.random.normal(kx3, (B3, DIMS[0]), jnp.float32)
    out3 = jax.block_until_ready(mlp_forward(x3, bf16_params, batch_tile=128))
    ref3 = mlp_reference(x3, bf16_params, layer1_on_mxu=l1_mxu)
    assert out3.shape == (B3, DIMS[-1])
    assert jnp.allclose(out3, ref3, atol=2e-3, rtol=2e-3), "mismatch vs reference (grid=4)"

    print("KERNEL_OK")
</pallas_src>

<mosaic_0001>
module attributes {stable_mosaic.version = 11 : i64} {
  func.func @mlp_kernel(%arg0: i32, %arg1: memref<512x4xf32, #tpu.memory_space<vmem>>, %arg2: memref<4x256xbf16, #tpu.memory_space<vmem>>, %arg3: memref<1x256xf32, #tpu.memory_space<vmem>>, %arg4: memref<256x128xbf16, #tpu.memory_space<vmem>>, %arg5: memref<1x128xf32, #tpu.memory_space<vmem>>, %arg6: memref<128x64xbf16, #tpu.memory_space<vmem>>, %arg7: memref<1x64xf32, #tpu.memory_space<vmem>>, %arg8: memref<64x32xbf16, #tpu.memory_space<vmem>>, %arg9: memref<1x32xf32, #tpu.memory_space<vmem>>, %arg10: memref<32x4xbf16, #tpu.memory_space<vmem>>, %arg11: memref<1x4xf32, #tpu.memory_space<vmem>>, %arg12: memref<512x4xf32, #tpu.memory_space<vmem>>) attributes {dimension_semantics = [#tpu.dimension_semantics<parallel>], iteration_bounds = array<i64: 1>, scalar_prefetch = 0 : i64, scratch_operands = 0 : i64, tpu.core_type = #tpu.core_type<tc>, window_params = [{transform_indices = @transform_0, window_bounds = array<i64: 512, 4>}, {pipeline_mode = #tpu.pipeline_mode<synchronous>, transform_indices = @transform_1, window_bounds = array<i64: 4, 256>}, {pipeline_mode = #tpu.pipeline_mode<synchronous>, transform_indices = @transform_2, window_bounds = array<i64: 1, 256>}, {pipeline_mode = #tpu.pipeline_mode<synchronous>, transform_indices = @transform_3, window_bounds = array<i64: 256, 128>}, {pipeline_mode = #tpu.pipeline_mode<synchronous>, transform_indices = @transform_4, window_bounds = array<i64: 1, 128>}, {pipeline_mode = #tpu.pipeline_mode<synchronous>, transform_indices = @transform_5, window_bounds = array<i64: 128, 64>}, {pipeline_mode = #tpu.pipeline_mode<synchronous>, transform_indices = @transform_6, window_bounds = array<i64: 1, 64>}, {pipeline_mode = #tpu.pipeline_mode<synchronous>, transform_indices = @transform_7, window_bounds = array<i64: 64, 32>}, {pipeline_mode = #tpu.pipeline_mode<synchronous>, transform_indices = @transform_8, window_bounds = array<i64: 1, 32>}, {pipeline_mode = #tpu.pipeline_mode<synchronous>, transform_indices = @transform_9, window_bounds = array<i64: 32, 4>}, {pipeline_mode = #tpu.pipeline_mode<synchronous>, transform_indices = @transform_10, window_bounds = array<i64: 1, 4>}, {transform_indices = @transform_11, window_bounds = array<i64: 512, 4>}]} {
    %c0 = arith.constant 0 : index
    %c0_0 = arith.constant 0 : index
    %0 = vector.load %arg1[%c0, %c0_0] : memref<512x4xf32, #tpu.memory_space<vmem>>, vector<512x4xf32>
    %c0_1 = arith.constant 0 : index
    %c0_2 = arith.constant 0 : index
    %1 = vector.load %arg2[%c0_1, %c0_2] : memref<4x256xbf16, #tpu.memory_space<vmem>>, vector<4x256xbf16>
    %2 = arith.extf %1 : vector<4x256xbf16> to vector<4x256xf32>
    %c0_3 = arith.constant 0 : index
    %c0_4 = arith.constant 0 : index
    %3 = vector.load %arg3[%c0_3, %c0_4] : memref<1x256xf32, #tpu.memory_space<vmem>>, vector<1x256xf32>
    %4 = vector.extract_strided_slice %0 {offsets = [0, 0], sizes = [512, 1], strides = [1, 1]} : vector<512x4xf32> to vector<512x1xf32>
    %5 = vector.extract_strided_slice %2 {offsets = [0, 0], sizes = [1, 256], strides = [1, 1]} : vector<4x256xf32> to vector<1x256xf32>
    %6 = vector.broadcast %4 : vector<512x1xf32> to vector<512x256xf32>
    %7 = vector.broadcast %5 : vector<1x256xf32> to vector<512x256xf32>
    %8 = arith.mulf %6, %7 : vector<512x256xf32>
    %9 = vector.broadcast %3 : vector<1x256xf32> to vector<512x256xf32>
    %10 = arith.addf %9, %8 : vector<512x256xf32>
    %11 = vector.extract_strided_slice %0 {offsets = [0, 1], sizes = [512, 1], strides = [1, 1]} : vector<512x4xf32> to vector<512x1xf32>
    %12 = vector.extract_strided_slice %2 {offsets = [1, 0], sizes = [1, 256], strides = [1, 1]} : vector<4x256xf32> to vector<1x256xf32>
    %13 = vector.broadcast %11 : vector<512x1xf32> to vector<512x256xf32>
    %14 = vector.broadcast %12 : vector<1x256xf32> to vector<512x256xf32>
    %15 = arith.mulf %13, %14 : vector<512x256xf32>
    %16 = arith.addf %10, %15 : vector<512x256xf32>
    %17 = vector.extract_strided_slice %0 {offsets = [0, 2], sizes = [512, 1], strides = [1, 1]} : vector<512x4xf32> to vector<512x1xf32>
    %18 = vector.extract_strided_slice %2 {offsets = [2, 0], sizes = [1, 256], strides = [1, 1]} : vector<4x256xf32> to vector<1x256xf32>
    %19 = vector.broadcast %17 : vector<512x1xf32> to vector<512x256xf32>
    %20 = vector.broadcast %18 : vector<1x256xf32> to vector<512x256xf32>
    %21 = arith.mulf %19, %20 : vector<512x256xf32>
    %22 = arith.addf %16, %21 : vector<512x256xf32>
    %23 = vector.extract_strided_slice %0 {offsets = [0, 3], sizes = [512, 1], strides = [1, 1]} : vector<512x4xf32> to vector<512x1xf32>
    %24 = vector.extract_strided_slice %2 {offsets = [3, 0], sizes = [1, 256], strides = [1, 1]} : vector<4x256xf32> to vector<1x256xf32>
    %25 = vector.broadcast %23 : vector<512x1xf32> to vector<512x256xf32>
    %26 = vector.broadcast %24 : vector<1x256xf32> to vector<512x256xf32>
    %27 = arith.mulf %25, %26 : vector<512x256xf32>
    %28 = arith.addf %22, %27 : vector<512x256xf32>
    %cst = arith.constant 0.000000e+00 : f32
    %29 = vector.broadcast %cst : f32 to vector<512x256xf32>
    %30 = arith.maximumf %28, %29 : vector<512x256xf32>
    %31 = arith.truncf %30 : vector<512x256xf32> to vector<512x256xbf16>
    %c0_5 = arith.constant 0 : index
    %c0_6 = arith.constant 0 : index
    %32 = vector.load %arg4[%c0_5, %c0_6] : memref<256x128xbf16, #tpu.memory_space<vmem>>, vector<256x128xbf16>
    %cst_7 = arith.constant dense<0.000000e+00> : vector<512x128xf32>
    %33 = tpu.matmul %31, %32, %cst_7 {dimension_numbers = #tpu.dot_dimension_numbers<[1], [0], [0], [1], [0, 0, 1, 1], [], []>} : vector<512x256xbf16>, vector<256x128xbf16>, vector<512x128xf32> -> vector<512x128xf32>
    %c0_8 = arith.constant 0 : index
    %c0_9 = arith.constant 0 : index
    %34 = vector.load %arg5[%c0_8, %c0_9] : memref<1x128xf32, #tpu.memory_space<vmem>>, vector<1x128xf32>
    %35 = vector.broadcast %34 : vector<1x128xf32> to vector<512x128xf32>
    %36 = arith.addf %33, %35 : vector<512x128xf32>
    %cst_10 = arith.constant 0.000000e+00 : f32
    %37 = vector.broadcast %cst_10 : f32 to vector<512x128xf32>
    %38 = arith.maximumf %36, %37 : vector<512x128xf32>
    %39 = arith.truncf %38 : vector<512x128xf32> to vector<512x128xbf16>
    %c0_11 = arith.constant 0 : index
    %c0_12 = arith.constant 0 : index
    %40 = vector.load %arg6[%c0_11, %c0_12] : memref<128x64xbf16, #tpu.memory_space<vmem>>, vector<128x64xbf16>
    %cst_13 = arith.constant dense<0.000000e+00> : vector<512x64xf32>
    %41 = tpu.matmul %39, %40, %cst_13 {dimension_numbers = #tpu.dot_dimension_numbers<[1], [0], [0], [1], [0, 0, 1, 1], [], []>} : vector<512x128xbf16>, vector<128x64xbf16>, vector<512x64xf32> -> vector<512x64xf32>
    %c0_14 = arith.constant 0 : index
    %c0_15 = arith.constant 0 : index
    %42 = vector.load %arg7[%c0_14, %c0_15] : memref<1x64xf32, #tpu.memory_space<vmem>>, vector<1x64xf32>
    %43 = vector.broadcast %42 : vector<1x64xf32> to vector<512x64xf32>
    %44 = arith.addf %41, %43 : vector<512x64xf32>
    %cst_16 = arith.constant 0.000000e+00 : f32
    %45 = vector.broadcast %cst_16 : f32 to vector<512x64xf32>
    %46 = arith.maximumf %44, %45 : vector<512x64xf32>
    %47 = arith.truncf %46 : vector<512x64xf32> to vector<512x64xbf16>
    %c0_17 = arith.constant 0 : index
    %c0_18 = arith.constant 0 : index
    %48 = vector.load %arg8[%c0_17, %c0_18] : memref<64x32xbf16, #tpu.memory_space<vmem>>, vector<64x32xbf16>
    %cst_19 = arith.constant dense<0.000000e+00> : vector<512x32xf32>
    %49 = tpu.matmul %47, %48, %cst_19 {dimension_numbers = #tpu.dot_dimension_numbers<[1], [0], [0], [1], [0, 0, 1, 1], [], []>} : vector<512x64xbf16>, vector<64x32xbf16>, vector<512x32xf32> -> vector<512x32xf32>
    %c0_20 = arith.constant 0 : index
    %c0_21 = arith.constant 0 : index
    %50 = vector.load %arg9[%c0_20, %c0_21] : memref<1x32xf32, #tpu.memory_space<vmem>>, vector<1x32xf32>
    %51 = vector.broadcast %50 : vector<1x32xf32> to vector<512x32xf32>
    %52 = arith.addf %49, %51 : vector<512x32xf32>
    %cst_22 = arith.constant 0.000000e+00 : f32
    %53 = vector.broadcast %cst_22 : f32 to vector<512x32xf32>
    %54 = arith.maximumf %52, %53 : vector<512x32xf32>
    %55 = arith.truncf %54 : vector<512x32xf32> to vector<512x32xbf16>
    %c0_23 = arith.constant 0 : index
    %c0_24 = arith.constant 0 : index
    %56 = vector.load %arg10[%c0_23, %c0_24] : memref<32x4xbf16, #tpu.memory_space<vmem>>, vector<32x4xbf16>
    %cst_25 = arith.constant dense<0.000000e+00> : vector<512x4xf32>
    %57 = tpu.matmul %55, %56, %cst_25 {dimension_numbers = #tpu.dot_dimension_numbers<[1], [0], [0], [1], [0, 0, 1, 1], [], []>} : vector<512x32xbf16>, vector<32x4xbf16>, vector<512x4xf32> -> vector<512x4xf32>
    %c0_26 = arith.constant 0 : index
    %c0_27 = arith.constant 0 : index
    %58 = vector.load %arg11[%c0_26, %c0_27] : memref<1x4xf32, #tpu.memory_space<vmem>>, vector<1x4xf32>
    %59 = vector.broadcast %58 : vector<1x4xf32> to vector<512x4xf32>
    %60 = arith.addf %57, %59 : vector<512x4xf32>
    %c0_28 = arith.constant 0 : index
    %c0_29 = arith.constant 0 : index
    %61 = vector.load %arg12[%c0_28, %c0_29] : memref<512x4xf32, #tpu.memory_space<vmem>>, vector<512x4xf32>
    tpu.vector_store %arg12[%c0_28, %c0_29], %60 {strides = array<i32>} : memref<512x4xf32, #tpu.memory_space<vmem>>, vector<512x4xf32>,
    return
  }
  func.func @transform_0(%arg0: i32) -> (i32, i32) {
    %c0_i32 = arith.constant 0 : i32
    %c0_i32_0 = arith.constant 0 : i32
    return %arg0, %c0_i32 : i32, i32
  }
  func.func @transform_1(%arg0: i32) -> (i32, i32) {
    %c0_i32 = arith.constant 0 : i32
    %c0_i32_0 = arith.constant 0 : i32
    %c0_i32_1 = arith.constant 0 : i32
    return %c0_i32, %c0_i32_0 : i32, i32
  }
  func.func @transform_2(%arg0: i32) -> (i32, i32) {
    %c0_i32 = arith.constant 0 : i32
    %c0_i32_0 = arith.constant 0 : i32
    %c0_i32_1 = arith.constant 0 : i32
    return %c0_i32, %c0_i32_0 : i32, i32
  }
  func.func @transform_3(%arg0: i32) -> (i32, i32) {
    %c0_i32 = arith.constant 0 : i32
    %c0_i32_0 = arith.constant 0 : i32
    %c0_i32_1 = arith.constant 0 : i32
    return %c0_i32, %c0_i32_0 : i32, i32
  }
  func.func @transform_4(%arg0: i32) -> (i32, i32) {
    %c0_i32 = arith.constant 0 : i32
    %c0_i32_0 = arith.constant 0 : i32
    %c0_i32_1 = arith.constant 0 : i32
    return %c0_i32, %c0_i32_0 : i32, i32
  }
  func.func @transform_5(%arg0: i32) -> (i32, i32) {
    %c0_i32 = arith.constant 0 : i32
    %c0_i32_0 = arith.constant 0 : i32
    %c0_i32_1 = arith.constant 0 : i32
    return %c0_i32, %c0_i32_0 : i32, i32
  }
  func.func @transform_6(%arg0: i32) -> (i32, i32) {
    %c0_i32 = arith.constant 0 : i32
    %c0_i32_0 = arith.constant 0 : i32
    %c0_i32_1 = arith.constant 0 : i32
    return %c0_i32, %c0_i32_0 : i32, i32
  }
  func.func @transform_7(%arg0: i32) -> (i32, i32) {
    %c0_i32 = arith.constant 0 : i32
    %c0_i32_0 = arith.constant 0 : i32
    %c0_i32_1 = arith.constant 0 : i32
    return %c0_i32, %c0_i32_0 : i32, i32
  }
  func.func @transform_8(%arg0: i32) -> (i32, i32) {
    %c0_i32 = arith.constant 0 : i32
    %c0_i32_0 = arith.constant 0 : i32
    %c0_i32_1 = arith.constant 0 : i32
    return %c0_i32, %c0_i32_0 : i32, i32
  }
  func.func @transform_9(%arg0: i32) -> (i32, i32) {
    %c0_i32 = arith.constant 0 : i32
    %c0_i32_0 = arith.constant 0 : i32
    %c0_i32_1 = arith.constant 0 : i32
    return %c0_i32, %c0_i32_0 : i32, i32
  }
  func.func @transform_10(%arg0: i32) -> (i32, i32) {
    %c0_i32 = arith.constant 0 : i32
    %c0_i32_0 = arith.constant 0 : i32
    %c0_i32_1 = arith.constant 0 : i32
    return %c0_i32, %c0_i32_0 : i32, i32
  }
  func.func @transform_11(%arg0: i32) -> (i32, i32) {
    %c0_i32 = arith.constant 0 : i32
    %c0_i32_0 = arith.constant 0 : i32
    return %arg0, %c0_i32 : i32, i32
  }
}

</mosaic_0001>

<bundles_post_ra>
// kernel: tpu_custom_call.1
= control target key start
LH: loop header
LB: loop body
LE: loop exit
PB: predicated region body
PF: predicated region fallthrough
CT: control target
= control target key end

     0   :  { %v7522_v0 = vmov 2   ;;  %v7520_v3 = vmov 1   ;;  %v7518_v7 = vmov 3   ;;  %v7516_v8 = vmov 0   ;;  %s7504_s0 = inlined_call_operand.vmem [shape: f32[512,4], index: 0, kind: input, shape index: {}]   ;;  %s7505_s3 = inlined_call_operand.vmem [shape: bf16[256,128], index: 3, kind: input, shape index: {}]   ;;  %s7506_s1 = inlined_call_operand.vmem [shape: bf16[4,256], index: 1, kind: input, shape index: {}]   ;;  %s7507_s2 = inlined_call_operand.vmem [shape: f32[1,256], index: 2, kind: input, shape index: {}]   ;;  %s7508_s4 = inlined_call_operand.vmem [shape: f32[1,128], index: 4, kind: input, shape index: {}]   ;;  %s7509_s5 = inlined_call_operand.vmem [shape: bf16[128,64], index: 5, kind: input, shape index: {}]   ;;  %s7510_s6 = inlined_call_operand.vmem [shape: f32[1,64], index: 6, kind: input, shape index: {}]   ;;  %s7511_s7 = inlined_call_operand.vmem [shape: bf16[64,32], index: 7, kind: input, shape index: {}]   ;;  %s7512_s8 = inlined_call_operand.vmem [shape: f32[1,32], index: 8, kind: input, shape index: {}]   ;;  %s7513_s9 = inlined_call_operand.vmem [shape: bf16[32,4], index: 9, kind: input, shape index: {}]   ;;  %s7514_s10 = inlined_call_operand.vmem [shape: f32[1,4], index: 10, kind: input, shape index: {}]   ;;  %s7515_s11 = inlined_call_operand.vmem [shape: f32[512,4], index: 11, kind: output, shape index: {}]  }
   0x1   :  { %4344 = vset.pattern.permute.xlu0 %v7522_v0  ;;  %4331 = vset.pattern.permute.xlu2 %v7522_v0  ;;  %v78_v1 = vld [vmem:[%s7504_s0 + $0x138] sm:$0xff]  ;;  %v73_v2 = vld [vmem:[%s7504_s0 + $0x110] sm:$0xff]  ;;  %v75_v6 = vld [vmem:[%s7504_s0 + $0x120] sm:$0xff]  ;;  %vm3375_vm0 = vcmask 523264   ;;  %vm3757_vm1 = vcmask 261120   ;;  %vm4023_vm2 = vcmask 31744  }
   0x2   :  { %4330 = vset.pattern.permute.xlu1 %v7520_v3  ;;  %1369 = vperm.xlu0 %4344, %v78_v1   ;;  %v4608_v4 = vld [vmem:[%s7504_s0 + $0x150] sm:$0xff]  ;;  %v74_v5 = vld [vmem:[%s7504_s0 + $0x118] sm:$0xff]  ;;  %v80_v9 = vld [vmem:[%s7504_s0 + $0x148] sm:$0xff] }
   0x3   :  { %1349 = vperm.xlu2 %4331, %v73_v2   ;;  %831 = vperm.xlu1 %4330, %v73_v2   ;;  %v4626_v10 = vld [vmem:[%s7504_s0 + $0x128] sm:$0xff]  ;;  %v4634_v11 = vld [vmem:[%s7504_s0 + $0x160] sm:$0xff]  ;;  %v77_v13 = vld [vmem:[%s7504_s0 + $0x130] sm:$0xff] }
   0x4   :  { %v4643_v12 = vld [vmem:[%s7504_s0 + $0x8] sm:$0xff]  ;;  %v79_v15 = vld [vmem:[%s7504_s0 + $0x140] sm:$0xff]  ;;  %v4679_v17 = vld [vmem:[%s7504_s0 + $0x198] sm:$0xff] }
   0x5   :  { %v4662_v14 = vld [vmem:[%s7504_s0 + $0x168] sm:$0xff]  ;;  %v4672_v16 = vld [vmem:[%s7504_s0 + $0x180] sm:$0xff]  ;;  %v50_v21 = vld [vmem:[%s7504_s0 + $0x58] sm:$0xff] }
   0x6   :  { %v91_v19 = vld [vmem:[%s7504_s0 + $0x1a0] sm:$0xff]  ;;  %v82_v22 = vld [vmem:[%s7504_s0 + $0x158] sm:$0xff]  ;;  %v4282_v32 = vld [vmem:[%s7505_s3 + $0x30] sm:$0xff] }
   0x7   :  { %v51_v24 = vld [vmem:[%s7504_s0 + $0x60] sm:$0xff]  ;;  %v4283_v29 = vld [vmem:[%s7505_s3 + $0x38] sm:$0xff]  ;;  %v4281_v33 = vld [vmem:[%s7505_s3 + $0x28] sm:$0xff] }
   0x8   :  { %4306 = vmatpush.bf16.msra.mxu1 %v4283_v29  ;;  %2572 = vmatpush.bf16.msra.mxu0 %v4283_v29  ;;  %v4280_v37 = vld [vmem:[%s7505_s3 + $0x20] sm:$0xff]  ;;  %v4751_v38 = vld [vmem:[%s7504_s0 + $0x178] sm:$0xff]  ;;  %v4278_v43 = vld [vmem:[%s7505_s3 + $0x10] sm:$0xff] }
   0x9   :  { %4307 = vmatpush.bf16.msra.mxu2 %v4283_v29  ;;  %v4279_v40 = vld [vmem:[%s7505_s3 + $0x18] sm:$0xff]  ;;  %v4773_v44 = vld [vmem:[%s7504_s0] sm:$0xff]  ;;  %v4277_v46 = vld [vmem:[%s7505_s3 + $0x8] sm:$0xff] }
   0xa   :  { %1381 = vperm.xlu0 %4344, %v4608_v4   ;;  %v4276_v48 = vld [vmem:[%s7505_s3] sm:$0xff]  ;;  %v4808_v57 = vld [vmem:[%s7504_s0 + $0x170] sm:$0xff]  ;;  %v4815_v59 = vld [vmem:[%s7504_s0 + $0x1a8] sm:$0xff] }
   0xb   :  { %1353 = vperm.xlu2 %4331, %v74_v5   ;;  %835 = vperm.xlu1 %4330, %v74_v5   ;;  %v4795_v50 = vld [vmem:[%s7504_s0 + $0x20] sm:$0xff] }
   0xc   :  { %4308 = vmatpush.bf16.msra.mxu1 %v4282_v32  ;;  %2573 = vmatpush.bf16.msra.mxu0 %v4282_v32  ;;  %v103_v51 = vld [vmem:[%s7506_s1] sm:$0xf] }
   0xd   :  { %4309 = vmatpush.bf16.msra.mxu2 %v4282_v32  ;;  %v104_v53 = vunpack.c.l.bf16 %v103_v51  ;;  %v105_v61 = vld [vmem:[%s7507_s2] sm:$0x3]  ;;  %v93_v32 = vld [vmem:[%s7504_s0 + $0x1b0] sm:$0xff] }
   0xf   :  { %v427_v54 = vperm.slane %v104_v53, 0  ;;  %v428_v55 = vperm.slane %v104_v53, 4  ;;  %v950_v58 = vperm.slane %v104_v53, 1  ;;  %v951_v60 = vperm.slane %v104_v53, 5 }
  0x10   :  { %4310 = vmatpush.bf16.msra.mxu1 %v4281_v33  ;;  %2574 = vmatpush.bf16.msra.mxu0 %v4281_v33  ;;  %v1986_v29 = vperm.slane %v104_v53, 3 }
  0x11   :  { %4311 = vmatpush.bf16.msra.mxu2 %v4281_v33  ;;  %v4824_v63 = vperm.slane %v427_v54, 0 }
  0x12   :  { %4357 = vset.pattern.permute.xlu0 %v7518_v7 }
  0x13   :  { %4333 = vset.pattern.permute.xlu2 %v7516_v8  ;;  %4332 = vset.pattern.permute.xlu1 %v7518_v7 }
  0x14   :  { %1867 = vperm.xlu0 %4357, %v73_v2   ;;  %288 = vperm.xlu2 %4333, %v75_v6  }
  0x15   :  { %1871 = vperm.xlu1 %4332, %v74_v5   ;;  %4312 = vmatpush.bf16.msra.mxu1 %v4280_v37 }
  0x16   :  { %2575 = vmatpush.bf16.msra.mxu0 %v4280_v37  ;;  %4313 = vmatpush.bf16.msra.mxu2 %v4280_v37 }
  0x19   :  { %4314 = vmatpush.bf16.msra.mxu1 %v4279_v40 }
  0x1a   :  { %2576 = vmatpush.bf16.msra.mxu0 %v4279_v40  ;;  %4315 = vmatpush.bf16.msra.mxu2 %v4279_v40  ;;  %v1987_v40 = vperm.slane %v104_v53, 7 }
  0x1c   :  { %1895 = vperm.xlu0 %4357, %v80_v9   ;;  %4335 = vset.pattern.permute.xlu2 %v7520_v3 }
  0x1d   :  { %4334 = vset.pattern.permute.xlu1 %v7516_v8  ;;  %839 = vperm.xlu2 %4335, %v75_v6  }
  0x1e   :  { %293 = vperm.xlu1 %4334, %v4626_v10   ;;  %4316 = vmatpush.bf16.msra.mxu1 %v4278_v43 }
  0x1f   :  { %2577 = vmatpush.bf16.msra.mxu0 %v4278_v43  ;;  %4317 = vmatpush.bf16.msra.mxu2 %v4278_v43 }
  0x22   :  { %4318 = vmatpush.bf16.msra.mxu1 %v4277_v46 }
  0x23   :  { %2578 = vmatpush.bf16.msra.mxu0 %v4277_v46  ;;  %4319 = vmatpush.bf16.msra.mxu2 %v4277_v46 }
  0x24   :  { %1907 = vperm.xlu0 %4357, %v4634_v11  }
  0x25   :  { %4337 = vset.pattern.permute.xlu2 %v7522_v0 }
  0x26   :  { %4336 = vset.pattern.permute.xlu1 %v7522_v0  ;;  %1361 = vperm.xlu2 %4337, %v4626_v10  }
  0x27   :  { %1357 = vperm.xlu1 %4336, %v75_v6   ;;  %4320 = vmatpush.bf16.msra.mxu1 %v4276_v48 }
  0x28   :  { %2579 = vmatpush.bf16.msra.mxu0 %v4276_v48  ;;  %4321 = vmatpush.bf16.msra.mxu2 %v4276_v48 }
  0x2c   :  { %1735 = vperm.xlu0 %4357, %v4643_v12  }
  0x2e   :  { %4339 = vset.pattern.permute.xlu2 %v7518_v7 }
  0x2f   :  { %4338 = vset.pattern.permute.xlu1 %v7518_v7  ;;  %1879 = vperm.xlu2 %4339, %v4626_v10  }
  0x30   :  { %1875 = vperm.xlu1 %4338, %v75_v6   ;;  %v4831_v6 = vperm.slane %v105_v61, 0 }
  0x34   :  { %4386 = vset.pattern.permute.xlu0 %v7516_v8 }
  0x35   :  { %278 = vperm.xlu0 %4386, %v73_v2   ;;  %v1468_v2 = vperm.slane %v104_v53, 2 }
  0x37   :  { %4341 = vset.pattern.permute.xlu2 %v7520_v3 }
  0x38   :  { %4340 = vset.pattern.permute.xlu1 %v7516_v8  ;;  %847 = vperm.xlu2 %4341, %v77_v13  }
  0x39   :  { %303 = vperm.xlu1 %4340, %v78_v1  }
  0x3d   :  { %283 = vperm.xlu0 %4386, %v74_v5   ;;  %v4829_v5 = vperm.slane %v950_v58, 1 }
  0x40   :  { %4343 = vset.pattern.permute.xlu2 %v7522_v0 }
  0x41   :  { %4342 = vset.pattern.permute.xlu1 %v7520_v3  ;;  %1365 = vperm.xlu2 %4343, %v77_v13  }
  0x42   :  { %851 = vperm.xlu1 %4342, %v78_v1  }
  0x45   :  { %298 = vperm.xlu0 %4386, %v77_v13  }
  0x49   :  { %4346 = vset.pattern.permute.xlu2 %v7518_v7 }
  0x4a   :  { %4345 = vset.pattern.permute.xlu1 %v7518_v7  ;;  %1887 = vperm.xlu2 %4346, %v78_v1   ;;  %v4826_v1 = vperm.slane %v428_v55, 0  ;;  %v4862_v55 = vperm.slane %v1986_v29, 3 }
  0x4b   :  { %1883 = vperm.xlu1 %4345, %v77_v13   ;;  %v4835_v13 = vperm.slane %v951_v60, 1 }
  0x4d   :  { %333 = vperm.xlu0 %4386, %v4662_v14  }
  0x52   :  { %4348 = vset.pattern.permute.xlu2 %v7516_v8 }
  0x53   :  { %4347 = vset.pattern.permute.xlu1 %v7516_v8  ;;  %313 = vperm.xlu2 %4348, %v80_v9  }
  0x54   :  { %308 = vperm.xlu1 %4347, %v79_v15  }
  0x55   :  { %348 = vperm.xlu0 %4386, %v4672_v16  }
  0x5b   :  { %4350 = vset.pattern.permute.xlu2 %v7522_v0 }
  0x5c   :  { %4349 = vset.pattern.permute.xlu1 %v7520_v3  ;;  %1373 = vperm.xlu2 %4350, %v79_v15  }
  0x5d   :  { %859 = vperm.xlu1 %4349, %v80_v9   ;;  %363 = vperm.xlu0 %4386, %v4679_v17   ;;  %v4684_v18 = vpop.permute.xlu2 %1349 }
  0x64   :  { %4352 = vset.pattern.permute.xlu2 %v7518_v7 }
  0x65   :  { %4351 = vset.pattern.permute.xlu1 %v7522_v0  ;;  %1891 = vperm.xlu2 %4352, %v79_v15   ;;  %v4691_v20 = vpop.permute.xlu2 %1353 }
  0x66   :  { %1377 = vperm.xlu1 %4351, %v80_v9   ;;  %368 = vperm.xlu0 %4386, %v91_v19  }
  0x6d   :  { %4354 = vset.pattern.permute.xlu2 %v7516_v8 }
  0x6e   :  { %4353 = vset.pattern.permute.xlu1 %v7516_v8  ;;  %163 = vperm.xlu0 %4386, %v50_v21   ;;  %v4701_v23 = vpop.permute.xlu2 %288 }
  0x6f   :  { %7566 = vst [vmem:[#allocation2_spill] sm:$0xff] %v4701_v23  ;;  %323 = vperm.xlu2 %4354, %v82_v22   ;;  %318 = vperm.xlu1 %4353, %v4608_v4  }
  0x74   :  { %v4707_v25 = vpop.permute.xlu0 %1369 }
  0x75   :  { %7567 = vst [vmem:[#allocation3_spill] sm:$0xff] %v4707_v25  ;;  %v4709_v26 = vpop.permute.xlu1 %831 }
  0x76   :  { %168 = vperm.xlu0 %4386, %v51_v24   ;;  %v1024_v24 = vmul.f32 %v4829_v5, %v4709_v26  ;;  %v1025_v37 = vmul.f32 %v4835_v13, %v4709_v26 }
  0x77   :  { %4356 = vset.pattern.permute.xlu2 %v7520_v3  ;;  %4355 = vset.pattern.permute.xlu1 %v7520_v3  ;;  %v4714_v27 = vpop.permute.xlu2 %839 }
  0x78   :  { %867 = vperm.xlu2 %4356, %v82_v22   ;;  %863 = vperm.xlu1 %4355, %v4608_v4   ;;  %7568 = vst [vmem:[#allocation4_spill] sm:$0xff] %v4714_v27 }
  0x7c   :  { %v4716_v28 = vpop.permute.xlu0 %1381 }
  0x7d   :  { %7569 = vst [vmem:[#allocation5_spill] sm:$0xff] %v4716_v28  ;;  %v4721_v30 = vpop.permute.xlu1 %835 }
  0x7e   :  { %4428 = vset.pattern.permute.xlu0 %v7520_v3  ;;  %v1026_v60 = vmul.f32 %v4829_v5, %v4721_v30 }
  0x7f   :  { %843 = vperm.xlu0 %4428, %v4626_v10  }
  0x80   :  { %4359 = vset.pattern.permute.xlu2 %v7518_v7  ;;  %4358 = vset.pattern.permute.xlu1 %v7522_v0  ;;  %v4727_v31 = vpop.permute.xlu2 %1361 }
  0x81   :  { %7570 = vst [vmem:[#allocation6_spill] sm:$0xff] %v4727_v31  ;;  %1899 = vperm.xlu2 %4359, %v4608_v4   ;;  %1385 = vperm.xlu1 %4358, %v82_v22  }
  0x86   :  { %v4736_v34 = vpop.permute.xlu0 %1867 }
  0x87   :  { %v4738_v35 = vpop.permute.xlu1 %1871  ;;  %855 = vperm.xlu0 %4428, %v79_v15  }
  0x89   :  { %4361 = vset.pattern.permute.xlu2 %v7516_v8  ;;  %4360 = vset.pattern.permute.xlu1 %v7518_v7  ;;  %v4742_v36 = vpop.permute.xlu2 %1879 }
  0x8a   :  { %7571 = vst [vmem:[#allocation7_spill] sm:$0xff] %v4742_v36  ;;  %328 = vperm.xlu2 %4361, %v4634_v11   ;;  %1903 = vperm.xlu1 %4360, %v82_v22   ;;  %v4843_v22 = vperm.slane %v1468_v2, 2  ;;  %v4872_v2 = vperm.slane %v1987_v40, 3  ;;  %v52_v40 = vld [vmem:[%s7504_s0 + $0x68] sm:$0xff] }
  0x8c   :  { %v1542_v54 = vmul.f32 %v4843_v22, %v4684_v18 }
  0x8e   :  { %v4753_v39 = vpop.permute.xlu0 %1895 }
  0x8f   :  { %883 = vperm.xlu0 %4428, %v4751_v38  }
  0x90   :  { %v4759_v41 = vpop.permute.xlu1 %293 }
  0x91   :  { %7572 = vst [vmem:[#allocation8_spill] sm:$0xff] %v4759_v41 }
  0x92   :  { %4363 = vset.pattern.permute.xlu2 %v7520_v3  ;;  %4362 = vset.pattern.permute.xlu1 %v7520_v3  ;;  %v4763_v42 = vpop.permute.xlu2 %847 }
  0x93   :  { %875 = vperm.xlu2 %4363, %v4662_v14   ;;  %871 = vperm.xlu1 %4362, %v4634_v11  }
  0x96   :  { %v4775_v45 = vpop.permute.xlu0 %1907 }
  0x97   :  { %695 = vperm.xlu0 %4428, %v4773_v44  }
  0x99   :  { %v4781_v47 = vpop.permute.xlu1 %1357 }
  0x9a   :  { %7573 = vst [vmem:[#allocation9_spill] sm:$0xff] %v4781_v47 }
  0x9b   :  { %4365 = vset.pattern.permute.xlu2 %v7522_v0  ;;  %4364 = vset.pattern.permute.xlu1 %v7522_v0  ;;  %v4788_v49 = vpop.permute.xlu2 %1365 }
  0x9c   :  { %7574 = vst [vmem:[#allocation10_spill] sm:$0xff] %v4788_v49  ;;  %1393 = vperm.xlu2 %4365, %v4662_v14   ;;  %1389 = vperm.xlu1 %4364, %v4634_v11   ;;  %v1469_v11 = vperm.slane %v104_v53, 6 }
  0x9e   :  { %v4800_v52 = vpop.permute.xlu0 %1735  ;;  %v4850_v33 = vperm.slane %v1469_v11, 2 }
  0x9f   :  { %711 = vperm.xlu0 %4428, %v4795_v50  }
  0xa0   :  { %v1543_v58 = vmul.f32 %v4850_v33, %v4684_v18 }
  0xa2   :  { %v4803_v56 = vpop.permute.xlu1 %1875 }
  0xa3   :  { %7575 = vst [vmem:[#allocation11_spill] sm:$0xff] %v4803_v56 }
  0xa4   :  { %4367 = vset.pattern.permute.xlu2 %v7516_v8  ;;  %4366 = vset.pattern.permute.xlu1 %v7518_v7  ;;  %v4822_v62 = vpop.permute.xlu2 %1887 }
  0xa5   :  { %338 = vperm.xlu2 %4367, %v4808_v57   ;;  %1911 = vperm.xlu1 %4366, %v4662_v14   ;;  %7576 = vst [vmem:[#allocation12_spill] sm:$0xff] %v4822_v62  ;;  %v4837_v14 = vperm.slane %v105_v61, 1  ;;  %v1027_v61 = vmul.f32 %v4835_v13, %v4721_v30  ;;  %v1545_v30 = vmul.f32 %v4850_v33, %v4691_v20 }
  0xa7   :  { %v279_v4 = vpop.permute.xlu0 %278  ;;  %907 = vperm.xlu0 %4428, %v4815_v59  }
  0xa8   :  { %v501_v9 = vmul.f32 %v4824_v63, %v279_v4  ;;  %v502_v10 = vmul.f32 %v4826_v1, %v279_v4  ;;  %v2060_v4 = vmul.f32 %v4862_v55, %v4736_v34 }
  0xaa   :  { %v634_v15 = vadd.f32 %v4831_v6, %v501_v9  ;;  %v635_v19 = vadd.f32 %v4837_v14, %v502_v10 }
  0xab   :  { %v4841_v21 = vpop.permute.xlu1 %303 }
  0xac   :  { %7577 = vst [vmem:[#allocation13_spill] sm:$0xff] %v4841_v21  ;;  %v1152_v46 = vadd.f32 %v1024_v24, %v634_v15  ;;  %v1153_v48 = vadd.f32 %v1025_v37, %v635_v19  ;;  %v2061_v15 = vmul.f32 %v4872_v2, %v4736_v34  ;;  %v1544_v19 = vmul.f32 %v4843_v22, %v4691_v20 }
  0xad   :  { %4369 = vset.pattern.permute.xlu2 %v7520_v3  ;;  %4368 = vset.pattern.permute.xlu1 %v7516_v8  ;;  %v4856_v43 = vpop.permute.xlu2 %313  ;;  %v2062_v37 = vmul.f32 %v4862_v55, %v4738_v35  ;;  %v2063_v20 = vmul.f32 %v4872_v2, %v4738_v35  ;;  %v53_v35 = vld [vmem:[%s7504_s0 + $0x70] sm:$0xff] }
  0xae   :  { %879 = vperm.xlu2 %4369, %v4808_v57   ;;  %343 = vperm.xlu1 %4368, %v4751_v38   ;;  %v1670_v11 = vadd.f32 %v1542_v54, %v1152_v46  ;;  %v1671_v18 = vadd.f32 %v1543_v58, %v1153_v48 }
  0xaf   :  { %v284_v51 = vpop.permute.xlu0 %283  ;;  %911 = vperm.xlu0 %4428, %v93_v32  }
  0xb0   :  { %v503_v26 = vmul.f32 %v4824_v63, %v284_v51  ;;  %v504_v53 = vmul.f32 %v4826_v1, %v284_v51  ;;  %v2188_v48 = vadd.f32 %v2060_v4, %v1670_v11 }
  0xb2   :  { %v636_v9 = vadd.f32 %v4831_v6, %v503_v26  ;;  %v637_v10 = vadd.f32 %v4837_v14, %v504_v53  ;;  %v2189_v26 = vadd.f32 %v2061_v15, %v1671_v18 }
  0xb4   :  { %v1154_v24 = vadd.f32 %v1026_v60, %v636_v9  ;;  %v1155_v29 = vadd.f32 %v1027_v61, %v637_v10  ;;  %v4884_v32 = vpop.permute.xlu1 %851  ;;  %v2316_v60 = vmax.f32 %v2188_v48, 0.0  ;;  %v2317_v9 = vmax.f32 %v2189_v26, 0.0 }
  0xb5   :  { %7578 = vst [vmem:[#allocation14_spill] sm:$0xff] %v4884_v32 }
  0xb6   :  { %v1673_v46 = vadd.f32 %v1545_v30, %v1155_v29  ;;  %4371 = vset.pattern.permute.xlu2 %v7522_v0  ;;  %4370 = vset.pattern.permute.xlu1 %v7522_v0  ;;  %v1672_v34 = vadd.f32 %v1544_v19, %v1154_v24  ;;  %v4893_v51 = vpop.permute.xlu2 %1373  ;;  %v88_v24 = vld [vmem:[%s7504_s0 + $0x188] sm:$0xff] }
  0xb7   :  { %1401 = vperm.xlu2 %4371, %v4751_v38   ;;  %1397 = vperm.xlu1 %4370, %v4808_v57   ;;  %v4899_v54 = vpop.permute.xlu0 %298 }
  0xb8   :  { %7579 = vst [vmem:[#allocation15_spill] sm:$0xff] %v4899_v54  ;;  %747 = vperm.xlu0 %4428, %v52_v40   ;;  %v2190_v53 = vadd.f32 %v2062_v37, %v1672_v34  ;;  %v2191_v58 = vadd.f32 %v2063_v20, %v1673_v46  ;;  %v102_v37 = vld [vmem:[%s7504_s0 + $0x1f8] sm:$0xff] }
  0xba   :  { %v2318_v61 = vmax.f32 %v2190_v53, 0.0  ;;  %v2319_v10 = vmax.f32 %v2191_v58, 0.0  ;;  %v4955_v53 = vld [vmem:[%s7504_s0 + $0x10] sm:$0xff] }
  0xbc   :  { %v2410_v4 = vpack.c.bf16 %v2318_v61, %v2316_v60  ;;  %v4903_v19 = vpack.c.bf16 %v2319_v10, %v2317_v9  ;;  %v505_v61 = vmul.f32 %v4824_v63, %v4701_v23 }
  0xbd   :  { %v4901_v11 = vpop.permute.xlu1 %1883 }
  0xbe   :  { %7580 = vst [vmem:[#allocation16_spill] sm:$0xff] %v4901_v11  ;;  %2665 = vmatmul.bf16.vlgmr.msra.gmra.mxu1 %v2410_v4  ;;  %v638_v10 = vadd.f32 %v4831_v6, %v505_v61  ;;  %v1028_v4 = vmul.f32 %v4829_v5, %v4714_v27  ;;  %v516_v27 = vmul.f32 %v4826_v1, %v4856_v43 }
  0xbf   :  { %7581 = vst [vmem:[#allocation17_spill] sm:$0xff] %v4903_v19  ;;  %4373 = vset.pattern.permute.xlu2 %v7518_v7  ;;  %4372 = vset.pattern.permute.xlu1 %v7518_v7  ;;  %v4910_v15 = vpop.permute.xlu0 %333  ;;  %v4912_v18 = vpop.permute.xlu2 %1891 }
  0xc0   :  { %1919 = vperm.xlu2 %4373, %v4751_v38   ;;  %1915 = vperm.xlu1 %4372, %v4808_v57   ;;  %v1156_v61 = vadd.f32 %v1028_v4, %v638_v10  ;;  %v509_v10 = vmul.f32 %v4824_v63, %v4899_v54 }
  0xc1   :  { %751 = vperm.xlu0 %4428, %v53_v35  }
  0xc6   :  { %v4916_v30 = vpop.permute.xlu1 %308 }
  0xc7   :  { %v4921_v29 = vpop.permute.xlu0 %348 }
  0xc8   :  { %4375 = vset.pattern.permute.xlu2 %v7520_v3  ;;  %4374 = vset.pattern.permute.xlu1 %v7516_v8 }
  0xc9   :  { %887 = vperm.xlu2 %4375, %v4672_v16   ;;  %353 = vperm.xlu1 %4374, %v88_v24   ;;  %v4929_v38 = vpop.permute.xlu2 %323 }
  0xca   :  { %7582 = vst [vmem:[#allocation18_spill] sm:$0xff] %v4929_v38  ;;  %947 = vperm.xlu0 %4428, %v102_v37   ;;  %v1546_v37 = vmul.f32 %v4843_v22, %v4781_v47  ;;  %v1548_v47 = vmul.f32 %v4843_v22, %v4727_v31  ;;  %v511_v31 = vmul.f32 %v4824_v63, %v4841_v21 }
  0xcc   :  { %v1674_v19 = vadd.f32 %v1546_v37, %v1156_v61  ;;  %v514_v37 = vmul.f32 %v4826_v1, %v4916_v30 }
  0xcf   :  { %v4931_v57 = vpop.permute.xlu1 %859  ;;  %v4933_v40 = vpop.permute.xlu0 %363 }
  0xd0   :  { %7583 = vst [vmem:[#allocation19_spill] sm:$0xff] %v4933_v40 }
  0xd1   :  { %4377 = vset.pattern.permute.xlu2 %v7522_v0  ;;  %4376 = vset.pattern.permute.xlu1 %v7520_v3 }
  0xd2   :  { %1405 = vperm.xlu2 %4377, %v4672_v16   ;;  %891 = vperm.xlu1 %4376, %v88_v24   ;;  %v4939_v46 = vpop.permute.xlu2 %867 }
  0xd3   :  { %4446 = vset.pattern.permute.xlu0 %v7522_v0  ;;  %7584 = vst [vmem:[#allocation20_spill] sm:$0xff] %v4939_v46 }
  0xd4   :  { %1409 = vperm.xlu0 %4446, %v88_v24  }
  0xd8   :  { %v4941_v34 = vpop.permute.xlu1 %1377  ;;  %v4943_v48 = vpop.permute.xlu0 %368 }
  0xd9   :  { %7585 = vst [vmem:[#allocation21_spill] sm:$0xff] %v4943_v48 }
  0xda   :  { %4379 = vset.pattern.permute.xlu2 %v7518_v7  ;;  %4378 = vset.pattern.permute.xlu1 %v7518_v7 }
  0xdb   :  { %v4947_v20 = vpop.permute.xlu2 %1899  ;;  %1927 = vperm.xlu2 %4379, %v88_v24   ;;  %1923 = vperm.xlu1 %4378, %v4672_v16   ;;  %v507_v24 = vmul.f32 %v4824_v63, %v4759_v41  ;;  %v7593_v41 = vmov 3  }
  0xdc   :  { %7586 = vst [vmem:[#allocation22_spill] sm:$0xff] %v4947_v20  ;;  %1221 = vperm.xlu0 %4446, %v4955_v53  }
  0xe0   :  { %v4950_v26 = vpop.permute.xlu0 %163 }
  0xe1   :  { %7587 = vst [vmem:[#allocation23_spill] sm:$0xff] %v4950_v26  ;;  %v4957_v58 = vpop.permute.xlu1 %318  ;;  %v647_v26 = vadd.f32 %v4837_v14, %v514_v37  ;;  %v5034_v37 = vld [vmem:[%s7504_s0 + $0x18] sm:$0xff] }
  0xe2   :  { %7588 = vst [vmem:[#allocation24_spill] sm:$0xff] %v4957_v58 }
  0xe3   :  { %4381 = vset.pattern.permute.xlu2 %v7516_v8  ;;  %4380 = vset.pattern.permute.xlu1 %v7516_v8  ;;  %v2064_v8 = vmul.f32 %v4862_v55, %v4803_v56  ;;  %v1039_v56 = vmul.f32 %v4835_v13, %v4931_v57 }
  0xe4   :  { %v4962_v60 = vpop.permute.xlu2 %328  ;;  %113 = vperm.xlu2 %4381, %v4643_v12   ;;  %108 = vperm.xlu1 %4380, %v4773_v44  }
  0xe8   :  { %v4966_v16 = vpop.permute.xlu0 %168 }
  0xe9   :  { %7589 = vst [vmem:[#allocation25_spill] sm:$0xff] %v4966_v16 }
  0xea   :  { %v4970_v9 = vpop.permute.xlu1 %863 }
  0xeb   :  { %7590 = vst [vmem:[#allocation26_spill] sm:$0xff] %v4970_v9 }
  0xec   :  { %4383 = vset.pattern.permute.xlu2 %v7522_v0  ;;  %4382 = vset.pattern.permute.xlu1 %v7520_v3  ;;  %v640_v3 = vadd.f32 %v4831_v6, %v507_v24  ;;  %v2192_v24 = vadd.f32 %v2064_v8, %v1674_v19  ;;  %v7594_v8 = vmov 2   ;;  %v642_v19 = vadd.f32 %v4831_v6, %v509_v10 }
  0xed   :  { %v4977_v35 = vpop.permute.xlu2 %875  ;;  %1213 = vperm.xlu2 %4383, %v4773_v44   ;;  %699 = vperm.xlu1 %4382, %v4643_v12  }
  0xee   :  { %v2320_v21 = vmax.f32 %v2192_v24, 0.0 }
  0xf1   :  { %v4987_v7 = vpop.permute.xlu0 %843 }
  0xf2   :  { %7591 = vst [vmem:[#allocation27_spill] sm:$0xff] %v4987_v7  ;;  %v1030_v0 = vmul.f32 %v4829_v5, %v4987_v7  ;;  %v2066_v7 = vmul.f32 %v4862_v55, %v4742_v36 }
  0xf3   :  { %v4994_v23 = vpop.permute.xlu1 %1385 }
  0xf4   :  { %7592 = vst [vmem:[#allocation28_spill] sm:$0xff] %v4994_v23  ;;  %v1158_v4 = vadd.f32 %v1030_v0, %v640_v3  ;;  %v649_v0 = vadd.f32 %v4837_v14, %v516_v27  ;;  %v1557_v3 = vmul.f32 %v4850_v33, %v4941_v34  ;;  %v1034_v27 = vmul.f32 %v4829_v5, %v4884_v32 }
  0xf5   :  { %4385 = vset.pattern.permute.xlu2 %v7593_v41  ;;  %4384 = vset.pattern.permute.xlu1 %v7594_v8 }
  0xf6   :  { %v1676_v61 = vadd.f32 %v1548_v47, %v1158_v4  ;;  %v5007_v16 = vpop.permute.xlu2 %1393  ;;  %1731 = vperm.xlu2 %4385, %v4773_v44   ;;  %1217 = vperm.xlu1 %4384, %v4643_v12   ;;  %v1032_v4 = vmul.f32 %v4829_v5, %v4763_v42  ;;  %v1167_v54 = vadd.f32 %v1039_v56, %v649_v0 }
  0xf7   :  { %v2075_v44 = vmul.f32 %v4872_v2, %v4753_v39  ;;  %v644_v12 = vadd.f32 %v4831_v6, %v511_v31  ;;  %v1555_v56 = vmul.f32 %v4850_v33, %v4893_v51  ;;  %v1550_v31 = vmul.f32 %v4843_v22, %v4788_v49 }
  0xf8   :  { %v2194_v47 = vadd.f32 %v2066_v7, %v1676_v61  ;;  %v1685_v7 = vadd.f32 %v1557_v3, %v1167_v54  ;;  %v1160_v10 = vadd.f32 %v1032_v4, %v642_v19  ;;  %v2068_v19 = vmul.f32 %v4862_v55, %v4901_v11 }
  0xf9   :  { %v856_v36 = vpop.permute.xlu0 %855  ;;  %v1162_v54 = vadd.f32 %v1034_v27, %v644_v12 }
  0xfa   :  { %v1037_v48 = vmul.f32 %v4835_v13, %v856_v36  ;;  %v2322_v40 = vmax.f32 %v2194_v47, 0.0  ;;  %v1552_v47 = vmul.f32 %v4843_v22, %v4707_v25  ;;  %v1678_v4 = vadd.f32 %v1550_v31, %v1160_v10 }
  0xfb   :  { %v513_v10 = vmul.f32 %v4824_v63, %v4916_v30 }
  0xfc   :  { %v1165_v61 = vadd.f32 %v1037_v48, %v647_v26  ;;  %v5029_v24 = vpop.permute.xlu1 %1903  ;;  %v2412_v0 = vpack.c.bf16 %v2322_v40, %v2320_v21  ;;  %v2073_v48 = vmul.f32 %v4872_v2, %v4912_v18  ;;  %v7596_v26 = vmov 0  }
  0xfd   :  { %7595 = vst [vmem:[#allocation29_spill] sm:$0xff] %v5029_v24  ;;  %v2203_v40 = vadd.f32 %v2075_v44, %v1685_v7  ;;  %v5057_v44 = vld [vmem:[%s7504_s0 + $0x28] sm:$0xff]  ;;  %v2196_v11 = vadd.f32 %v2068_v19, %v1678_v4  ;;  %v646_v19 = vadd.f32 %v4831_v6, %v513_v10  ;;  %v523_v4 = vmul.f32 %v4824_v63, %v4910_v15 }
  0xfe   :  { %v1683_v3 = vadd.f32 %v1555_v56, %v1165_v61  ;;  %2670 = vmatmul.bf16.gmra.mxu1 %v2412_v0  ;;  %4388 = vset.pattern.permute.xlu2 %v7596_v26  ;;  %v2070_v56 = vmul.f32 %v4862_v55, %v4822_v62  ;;  %v1680_v61 = vadd.f32 %v1552_v47, %v1162_v54  ;;  %v7600_v47 = vmov 1  }
  0xff   :  { %v5043_v21 = vpop.permute.xlu2 %338  ;;  %4387 = vset.pattern.permute.xlu1 %v7596_v26  ;;  %123 = vperm.xlu2 %4388, %v5034_v37   ;;  %v2331_v0 = vmax.f32 %v2203_v40, 0.0  ;;  %v2324_v54 = vmax.f32 %v2196_v11, 0.0  ;;  %v515_v40 = vmul.f32 %v4824_v63, %v4856_v43  ;;  %v524_v11 = vmul.f32 %v4826_v1, %v4910_v15 }
 0x100   :  { %7597 = vst [vmem:[#allocation30_spill] sm:$0xff] %v5043_v21  ;;  %118 = vperm.xlu1 %4387, %v4955_v53   ;;  %v2201_v12 = vadd.f32 %v2073_v48, %v1683_v3  ;;  %1233 = vperm.xlu0 %4446, %v5057_v44   ;;  %v2198_v3 = vadd.f32 %v2070_v56, %v1680_v61 }
 0x101   :  { %v5050_v27 = vpop.permute.xlu0 %883  ;;  %v1036_v48 = vmul.f32 %v4829_v5, %v856_v36  ;;  %v1038_v43 = vmul.f32 %v4829_v5, %v4931_v57  ;;  %v521_v56 = vmul.f32 %v4824_v63, %v4962_v60  ;;  %v522_v61 = vmul.f32 %v4826_v1, %v4962_v60 }
 0x102   :  { %7598 = vst [vmem:[#allocation31_spill] sm:$0xff] %v5050_v27  ;;  %v2329_v7 = vmax.f32 %v2201_v12, 0.0  ;;  %v2326_v36 = vmax.f32 %v2198_v3, 0.0  ;;  %v1554_v10 = vmul.f32 %v4843_v22, %v4893_v51  ;;  %v1556_v3 = vmul.f32 %v4843_v22, %v4941_v34 }
 0x103   :  { %v1164_v12 = vadd.f32 %v1036_v48, %v646_v19  ;;  %v656_v15 = vadd.f32 %v4831_v6, %v523_v4  ;;  %v1046_v57 = vmul.f32 %v4829_v5, %v4977_v35  ;;  %v657_v60 = vadd.f32 %v4837_v14, %v524_v11 }
 0x104   :  { %v5062_v49 = vpack.c.bf16 %v2331_v0, %v2329_v7  ;;  %v2414_v7 = vpack.c.bf16 %v2326_v36, %v2324_v54  ;;  %v648_v0 = vadd.f32 %v4831_v6, %v515_v40  ;;  %v1047_v51 = vmul.f32 %v4835_v13, %v4977_v35 }
 0x105   :  { %v872_v31 = vpop.permute.xlu1 %871  ;;  %v1682_v40 = vadd.f32 %v1554_v10, %v1164_v12  ;;  %v654_v34 = vadd.f32 %v4831_v6, %v521_v56  ;;  %v655_v4 = vadd.f32 %v4837_v14, %v522_v61  ;;  %v1174_v12 = vadd.f32 %v1046_v57, %v656_v15 }
 0x106   :  { %7599 = vst [vmem:[#allocation32_spill] sm:$0xff] %v5062_v49  ;;  %v1044_v48 = vmul.f32 %v4829_v5, %v872_v31  ;;  %v1045_v19 = vmul.f32 %v4835_v13, %v872_v31  ;;  %v1166_v54 = vadd.f32 %v1038_v43, %v648_v0  ;;  %v2074_v31 = vmul.f32 %v4862_v55, %v4753_v39 }
 0x107   :  { %4390 = vset.pattern.permute.xlu2 %v7600_v47  ;;  %v1564_v39 = vmul.f32 %v4843_v22, %v5007_v16  ;;  %v2080_v10 = vmul.f32 %v4862_v55, %v4775_v45 }
 0x108   :  { %v5066_v62 = vpop.permute.xlu2 %879  ;;  %4389 = vset.pattern.permute.xlu1 %v7600_v47  ;;  %707 = vperm.xlu2 %4390, %v5034_v37   ;;  %v1684_v11 = vadd.f32 %v1556_v3, %v1166_v54  ;;  %v1172_v56 = vadd.f32 %v1044_v48, %v654_v34  ;;  %v1173_v61 = vadd.f32 %v1045_v19, %v655_v4 }
 0x109   :  { %7601 = vst [vmem:[#allocation33_spill] sm:$0xff] %v5066_v62  ;;  %v5073_v30 = vpop.permute.xlu0 %695  ;;  %703 = vperm.xlu1 %4389, %v4955_v53   ;;  %v2081_v3 = vmul.f32 %v4872_v2, %v4775_v45  ;;  %v517_v19 = vmul.f32 %v4824_v63, %v4957_v58  ;;  %v5132_v45 = vld [vmem:[%s7504_s0 + $0x190] sm:$0xff] }
 0x10a   :  { %v2202_v48 = vadd.f32 %v2074_v31, %v1684_v11  ;;  %v1040_v11 = vmul.f32 %v4829_v5, %v4970_v9 }
 0x10e   :  { %v1390_v49 = vpop.permute.xlu1 %1389  ;;  %2675 = vmatmul.bf16.gmra.mxu1 %v2414_v7  ;;  %v2072_v7 = vmul.f32 %v4862_v55, %v4912_v18  ;;  %v1565_v18 = vmul.f32 %v4850_v33, %v5007_v16 }
 0x10f   :  { %v1562_v36 = vmul.f32 %v4843_v22, %v1390_v49  ;;  %v1563_v25 = vmul.f32 %v4850_v33, %v1390_v49  ;;  %v1175_v49 = vadd.f32 %v1047_v51, %v657_v60  ;;  %v1692_v60 = vadd.f32 %v1564_v39, %v1174_v12 }
 0x110   :  { %4392 = vset.pattern.permute.xlu2 %v7593_v41  ;;  %v2200_v0 = vadd.f32 %v2072_v7, %v1682_v40 }
 0x111   :  { %v5108_v43 = vpop.permute.xlu0 %711  ;;  %v5110_v35 = vpop.permute.xlu2 %1401  ;;  %4391 = vset.pattern.permute.xlu1 %v7594_v8  ;;  %1739 = vperm.xlu2 %4392, %v4955_v53   ;;  %v1690_v15 = vadd.f32 %v1562_v36, %v1172_v56  ;;  %v1691_v57 = vadd.f32 %v1563_v25, %v1173_v61  ;;  %v519_v53 = vmul.f32 %v4824_v63, %v4929_v38  ;;  %v2330_v36 = vmax.f32 %v2202_v48, 0.0 }
 0x112   :  { %7602 = vst [vmem:[#allocation34_spill] sm:$0xff] %v5110_v35  ;;  %1225 = vperm.xlu1 %4391, %v5034_v37   ;;  %v1693_v16 = vadd.f32 %v1565_v18, %v1175_v49  ;;  %v2328_v51 = vmax.f32 %v2200_v0, 0.0  ;;  %v650_v61 = vadd.f32 %v4831_v6, %v517_v19  ;;  %v1042_v49 = vmul.f32 %v4829_v5, %v4939_v46 }
 0x113   :  { %v2208_v25 = vadd.f32 %v2080_v10, %v1690_v15  ;;  %v2209_v4 = vadd.f32 %v2081_v3, %v1691_v57  ;;  %v652_v7 = vadd.f32 %v4831_v6, %v519_v53  ;;  %v1558_v57 = vmul.f32 %v4843_v22, %v4716_v28 }
 0x114   :  { %v2416_v39 = vpack.c.bf16 %v2330_v36, %v2328_v51  ;;  %v1168_v48 = vadd.f32 %v1040_v11, %v650_v61  ;;  %v1560_v53 = vmul.f32 %v4843_v22, %v4994_v23 }
 0x115   :  { %v2336_v0 = vmax.f32 %v2208_v25, 0.0  ;;  %v2337_v3 = vmax.f32 %v2209_v4, 0.0 }
 0x116   :  { %v1686_v25 = vadd.f32 %v1558_v57, %v1168_v48 }
 0x117   :  { %v1912_v54 = vpop.permute.xlu1 %1911 }
 0x118   :  { %v2082_v40 = vmul.f32 %v4862_v55, %v1912_v54  ;;  %v2083_v34 = vmul.f32 %v4872_v2, %v1912_v54  ;;  %v2078_v54 = vmul.f32 %v4862_v55, %v5029_v24 }
 0x119   :  { %v5134_v31 = vpop.permute.xlu0 %907  ;;  %4394 = vset.pattern.permute.xlu2 %v7596_v26 }
 0x11a   :  { %v2211_v12 = vadd.f32 %v2083_v34, %v1693_v16  ;;  %v2210_v56 = vadd.f32 %v2082_v40, %v1692_v60  ;;  %4393 = vset.pattern.permute.xlu1 %v7593_v41  ;;  %358 = vperm.xlu2 %4394, %v5132_v45   ;;  %v5145_v18 = vpop.permute.xlu2 %1919  ;;  %v1170_v16 = vadd.f32 %v1042_v49, %v652_v7 }
 0x11b   :  { %7603 = vst [vmem:[#allocation35_spill] sm:$0xff] %v5145_v18  ;;  %1743 = vperm.xlu1 %4393, %v5034_v37   ;;  %v2076_v40 = vmul.f32 %v4862_v55, %v4947_v20 }
 0x11c   :  { %v2338_v10 = vmax.f32 %v2210_v56, 0.0  ;;  %v2339_v15 = vmax.f32 %v2211_v12, 0.0  ;;  %v1688_v34 = vadd.f32 %v1560_v53, %v1170_v16  ;;  %v525_v53 = vmul.f32 %v4824_v63, %v5043_v21  ;;  %v4290_v16 = vld [vmem:[%s7505_s3 + $0x70] sm:$0xff] }
 0x11d   :  { %v2204_v7 = vadd.f32 %v2076_v40, %v1686_v25  ;;  %v5208_v25 = vld [vmem:[%s7504_s0 + $0x1b8] sm:$0xff] }
 0x11e   :  { %2680 = vmatmul.bf16.gmra.mxu1 %v2416_v39  ;;  %v2420_v19 = vpack.c.bf16 %v2338_v10, %v2336_v0  ;;  %v5152_v60 = vpack.c.bf16 %v2339_v15, %v2337_v3  ;;  %v2206_v36 = vadd.f32 %v2078_v54, %v1688_v34  ;;  %v5180_v0 = vld [vmem:[%s7504_s0 + $0x30] sm:$0xff]  ;;  %v4291_v10 = vld [vmem:[%s7505_s3 + $0x78] sm:$0xff]  ;;  %v1050_v54 = vmul.f32 %v4829_v5, %v5050_v27 }
 0x11f   :  { %v2332_v56 = vmax.f32 %v2204_v7, 0.0  ;;  %1237 = vperm.xlu0 %4446, %v5180_v0   ;;  %2741 = vmatpush.bf16.msrb.mxu1 %v4291_v10  ;;  %v1048_v7 = vmul.f32 %v4829_v5, %v5066_v62  ;;  %v530_v62 = vmul.f32 %v4826_v1, %v4921_v29 }
 0x120   :  { %7604 = vst [vmem:[#allocation36_spill] sm:$0xff] %v5152_v60  ;;  %v5156_v37 = vpop.permute.xlu1 %343  ;;  %v2334_v11 = vmax.f32 %v2206_v36, 0.0  ;;  %v658_v36 = vadd.f32 %v4831_v6, %v525_v53 }
 0x121   :  { %7605 = vst [vmem:[#allocation37_spill] sm:$0xff] %v5156_v37  ;;  %v5158_v51 = vpop.permute.xlu0 %911  ;;  %v527_v57 = vmul.f32 %v4824_v63, %v5156_v37 }
 0x122   :  { %133 = vperm.xlu2 %4394, %v5057_v44   ;;  %v2418_v49 = vpack.c.bf16 %v2334_v11, %v2332_v56  ;;  %v4289_v56 = vld [vmem:[%s7505_s3 + $0x68] sm:$0xff] }
 0x123   :  { %v5163_v4 = vpop.permute.xlu2 %887  ;;  %4395 = vset.pattern.permute.xlu1 %v7596_v26  ;;  %v660_v40 = vadd.f32 %v4831_v6, %v527_v57  ;;  %2742 = vmatpush.bf16.msrb.mxu1 %v4290_v16  ;;  %v1176_v16 = vadd.f32 %v1048_v7, %v658_v36  ;;  %v5241_v36 = vld [vmem:[%s7504_s0 + $0x1c0] sm:$0xff]  ;;  %v4287_v7 = vld [vmem:[%s7505_s3 + $0x58] sm:$0xff] }
 0x124   :  { %128 = vperm.xlu1 %4395, %v4795_v50  }
 0x125   :  { %v1178_v10 = vadd.f32 %v1050_v54, %v660_v40  ;;  %v2086_v54 = vmul.f32 %v4862_v55, %v5145_v18 }
 0x127   :  { %1433 = vperm.xlu0 %4446, %v5208_v25   ;;  %2743 = vmatpush.bf16.msrb.mxu1 %v4289_v56 }
 0x129   :  { %v5167_v12 = vpop.permute.xlu1 %1397 }
 0x12a   :  { %7606 = vst [vmem:[#allocation38_spill] sm:$0xff] %v5167_v12  ;;  %v5169_v61 = vpop.permute.xlu0 %747  ;;  %4397 = vset.pattern.permute.xlu2 %v7600_v47  ;;  %v1566_v57 = vmul.f32 %v4843_v22, %v5167_v12 }
 0x12b   :  { %899 = vperm.xlu2 %4397, %v4679_v17  }
 0x12c   :  { %v5173_v39 = vpop.permute.xlu2 %1405  ;;  %4396 = vset.pattern.permute.xlu1 %v7600_v47  ;;  %v1694_v40 = vadd.f32 %v1566_v57, %v1176_v16  ;;  %v529_v57 = vmul.f32 %v4824_v63, %v4921_v29 }
 0x12d   :  { %895 = vperm.xlu1 %4396, %v5132_v45  }
 0x12e   :  { %2685 = vmatmul.bf16.gmra.mxu1 %v2418_v49  ;;  %v1568_v49 = vmul.f32 %v4843_v22, %v5110_v35  ;;  %v4288_v35 = vld [vmem:[%s7505_s3 + $0x60] sm:$0xff] }
 0x12f   :  { %2744 = vmatpush.bf16.msrb.mxu1 %v4288_v35  ;;  %1437 = vperm.xlu0 %4446, %v5241_v36  }
 0x132   :  { %v5185_v3 = vpop.permute.xlu1 %1915 }
 0x133   :  { %7607 = vst [vmem:[#allocation39_spill] sm:$0xff] %v5185_v3  ;;  %v5188_v15 = vpop.permute.xlu0 %751  ;;  %4398 = vset.pattern.permute.xlu2 %v7594_v8  ;;  %v2084_v60 = vmul.f32 %v4862_v55, %v5185_v3  ;;  %v663_v3 = vadd.f32 %v4837_v14, %v530_v62  ;;  %2745 = vmatpush.bf16.msrb.mxu1 %v4287_v7 }
 0x134   :  { %1413 = vperm.xlu2 %4398, %v5132_v45   ;;  %v662_v62 = vadd.f32 %v4831_v6, %v529_v57 }
 0x135   :  { %715 = vperm.xlu1 %4396, %v5057_v44   ;;  %v5195_v48 = vpop.permute.xlu2 %1927  ;;  %v2212_v56 = vadd.f32 %v2084_v60, %v1694_v40  ;;  %v1053_v60 = vmul.f32 %v4835_v13, %v5163_v4 }
 0x137   :  { %v1181_v37 = vadd.f32 %v1053_v60, %v663_v3 }
 0x13b   :  { %v354_v34 = vpop.permute.xlu1 %353 }
 0x13c   :  { %v5213_v11 = vpop.permute.xlu0 %947  ;;  %1229 = vperm.xlu2 %4398, %v4795_v50   ;;  %v532_v12 = vmul.f32 %v4826_v1, %v354_v34  ;;  %v531_v40 = vmul.f32 %v4824_v63, %v354_v34  ;;  %v1571_v34 = vmul.f32 %v4850_v33, %v5173_v39 }
 0x13d   :  { %4399 = vset.pattern.permute.xlu1 %v7594_v8 }
 0x13e   :  { %2690 = vmatmul.bf16.gmra.mxu1 %v2420_v19  ;;  %1417 = vperm.xlu1 %4399, %v4679_v17   ;;  %v5226_v53 = vpop.permute.xlu2 %113  ;;  %v1696_v19 = vadd.f32 %v1568_v49, %v1178_v10  ;;  %v665_v35 = vadd.f32 %v4837_v14, %v532_v12  ;;  %v2340_v12 = vmax.f32 %v2212_v56, 0.0  ;;  %v664_v57 = vadd.f32 %v4831_v6, %v531_v40 }
 0x140   :  { %v2214_v18 = vadd.f32 %v2086_v54, %v1696_v19  ;;  %v1052_v54 = vmul.f32 %v4829_v5, %v5163_v4 }
 0x142   :  { %v2342_v7 = vmax.f32 %v2214_v18, 0.0  ;;  %v4285_v18 = vld [vmem:[%s7505_s3 + $0x48] sm:$0xff]  ;;  %v1180_v3 = vadd.f32 %v1052_v54, %v662_v62 }
 0x144   :  { %v892_v49 = vpop.permute.xlu1 %891  ;;  %4401 = vset.pattern.permute.xlu2 %v7593_v41  ;;  %v2422_v4 = vpack.c.bf16 %v2342_v7, %v2340_v12 }
 0x145   :  { %v1055_v10 = vmul.f32 %v4835_v13, %v892_v49  ;;  %1935 = vperm.xlu2 %4401, %v4679_v17   ;;  %v4286_v17 = vld [vmem:[%s7505_s3 + $0x50] sm:$0xff]  ;;  %v1054_v19 = vmul.f32 %v4829_v5, %v892_v49  ;;  %v1570_v49 = vmul.f32 %v4843_v22, %v5173_v39  ;;  %v4284_v39 = vld [vmem:[%s7505_s3 + $0x40] sm:$0xff] }
 0x146   :  { %v1410_v16 = vpop.permute.xlu0 %1409  ;;  %4400 = vset.pattern.permute.xlu1 %v7593_v41  ;;  %2746 = vmatpush.bf16.msrb.mxu1 %v4286_v17 }
 0x147   :  { %v1573_v29 = vmul.f32 %v4850_v33, %v1410_v16  ;;  %v1183_v27 = vadd.f32 %v1055_v10, %v665_v35  ;;  %1931 = vperm.xlu1 %4400, %v5132_v45   ;;  %v5260_v21 = vpop.permute.xlu2 %1213  ;;  %v2091_v45 = vmul.f32 %v4872_v2, %v5195_v48  ;;  %v5276_v35 = vld [vmem:[%s7504_s0 + $0x78] sm:$0xff]  ;;  %v1572_v10 = vmul.f32 %v4843_v22, %v1410_v16 }
 0x148   :  { %1273 = vperm.xlu0 %4446, %v5276_v35   ;;  %v1698_v16 = vadd.f32 %v1570_v49, %v1180_v3  ;;  %v5309_v49 = vld [vmem:[%s7504_s0 + $0x38] sm:$0xff] }
 0x149   :  { %v1701_v56 = vadd.f32 %v1573_v29, %v1183_v27  ;;  %v1182_v27 = vadd.f32 %v1054_v19, %v664_v57  ;;  %v1699_v29 = vadd.f32 %v1571_v34, %v1181_v37  ;;  %v55_v37 = vld [vmem:[%s7504_s0 + $0x80] sm:$0xff] }
 0x14a   :  { %2747 = vmatpush.bf16.msrb.mxu1 %v4285_v18 }
 0x14b   :  { %v2219_v40 = vadd.f32 %v2091_v45, %v1701_v56  ;;  %v1700_v19 = vadd.f32 %v1572_v10, %v1182_v27 }
 0x14d   :  { %v1924_v60 = vpop.permute.xlu1 %1923  ;;  %1751 = vperm.xlu2 %4401, %v5057_v44   ;;  %v2090_v44 = vmul.f32 %v4862_v55, %v5195_v48  ;;  %v2347_v34 = vmax.f32 %v2219_v40, 0.0  ;;  %v956_v40 = vmul.f32 %v4829_v5, %v5073_v30 }
 0x14e   :  { %2695 = vmatmul.bf16.gmra.mxu1 %v2422_v4  ;;  %v2089_v12 = vmul.f32 %v4872_v2, %v1924_v60  ;;  %v2088_v17 = vmul.f32 %v4862_v55, %v1924_v60  ;;  %v4518_v60 = vld [vmem:[%s7504_s0 + $0x1a0] sm:$0xff] }
 0x14f   :  { %1747 = vperm.xlu1 %4400, %v4795_v50   ;;  %2748 = vmatpush.bf16.msrb.mxu1 %v4284_v39  ;;  %v2218_v56 = vadd.f32 %v2090_v44, %v1700_v19  ;;  %v436_v44 = vmul.f32 %v4826_v1, %v5226_v53  ;;  %v1474_v19 = vmul.f32 %v4843_v22, %v5260_v21 }
 0x150   :  { %v2217_v62 = vadd.f32 %v2089_v12, %v1699_v29  ;;  %v1732_v54 = vpop.permute.xlu2 %1731  ;;  %v2216_v45 = vadd.f32 %v2088_v17, %v1698_v16  ;;  %1277 = vperm.xlu0 %4446, %v55_v37   ;;  %v957_v12 = vmul.f32 %v4835_v13, %v5073_v30  ;;  %v435_v16 = vmul.f32 %v4824_v63, %v5226_v53 }
 0x151   :  { %v2346_v4 = vmax.f32 %v2218_v56, 0.0  ;;  %v1475_v30 = vmul.f32 %v4850_v33, %v5260_v21  ;;  %v1992_v53 = vmul.f32 %v4862_v55, %v1732_v54 }
 0x152   :  { %v2345_v7 = vmax.f32 %v2217_v62, 0.0  ;;  %v2344_v48 = vmax.f32 %v2216_v45, 0.0  ;;  %v568_v56 = vadd.f32 %v4831_v6, %v435_v16 }
 0x154   :  { %v5298_v50 = vpack.c.bf16 %v2347_v34, %v2345_v7  ;;  %v2424_v3 = vpack.c.bf16 %v2346_v4, %v2344_v48  ;;  %v1993_v4 = vmul.f32 %v4872_v2, %v1732_v54 }
 0x155   :  { %4403 = vset.pattern.permute.xlu2 %v7596_v26 }
 0x156   :  { %7608 = vst [vmem:[#allocation40_spill] sm:$0xff] %v5298_v50  ;;  %138 = vperm.xlu2 %4403, %v5180_v0   ;;  %v109_v57 = vpop.permute.xlu1 %108 }
 0x157   :  { %4402 = vset.pattern.permute.xlu1 %v7596_v26  ;;  %v433_v27 = vmul.f32 %v4824_v63, %v109_v57  ;;  %v434_v10 = vmul.f32 %v4826_v1, %v109_v57  ;;  %v569_v57 = vadd.f32 %v4837_v14, %v436_v44 }
 0x158   :  { %373 = vperm.xlu1 %4402, %v4815_v59   ;;  %4450 = vset.pattern.permute.xlu0 %v7593_v41 }
 0x159   :  { %v5304_v18 = vpop.permute.xlu2 %123  ;;  %1759 = vperm.xlu0 %4450, %v5309_v49   ;;  %v566_v17 = vadd.f32 %v4831_v6, %v433_v27  ;;  %v567_v39 = vadd.f32 %v4837_v14, %v434_v10  ;;  %v1995_v27 = vmul.f32 %v4872_v2, %v4800_v52 }
 0x15b   :  { %v1084_v37 = vadd.f32 %v956_v40, %v566_v17  ;;  %v1085_v7 = vadd.f32 %v957_v12, %v567_v39 }
 0x15d   :  { %v1603_v48 = vadd.f32 %v1475_v30, %v1085_v7  ;;  %v1602_v21 = vadd.f32 %v1474_v19, %v1084_v37 }
 0x15e   :  { %2700 = vmatmul.bf16.gmra.mxu1 %v2424_v3  ;;  %4404 = vset.pattern.permute.xlu2 %v7600_v47  ;;  %v1994_v3 = vmul.f32 %v4862_v55, %v4800_v52 }
 0x15f   :  { %903 = vperm.xlu2 %4404, %v4518_v60   ;;  %v700_v29 = vpop.permute.xlu1 %699  ;;  %v2121_v54 = vadd.f32 %v1993_v4, %v1603_v48  ;;  %v2120_v19 = vadd.f32 %v1992_v53, %v1602_v21  ;;  %v5359_v53 = vld [vmem:[%s7504_s0 + $0x40] sm:$0xff] }
 0x160   :  { %143 = vperm.xlu1 %4402, %v5309_v49   ;;  %v958_v34 = vmul.f32 %v4829_v5, %v700_v29  ;;  %v959_v45 = vmul.f32 %v4835_v13, %v700_v29 }
 0x161   :  { %v2248_v52 = vmax.f32 %v2120_v19, 0.0  ;;  %v2249_v50 = vmax.f32 %v2121_v54, 0.0  ;;  %1763 = vperm.xlu0 %4450, %v5359_v53  }
 0x162   :  { %v5326_v62 = vpop.permute.xlu2 %707  ;;  %v1086_v29 = vadd.f32 %v958_v34, %v568_v56  ;;  %v1087_v40 = vadd.f32 %v959_v45, %v569_v57 }
 0x167   :  { %723 = vperm.xlu2 %4404, %v5309_v49  }
 0x168   :  { %4405 = vset.pattern.permute.xlu1 %v7600_v47  ;;  %v1218_v10 = vpop.permute.xlu1 %1217 }
 0x169   :  { %719 = vperm.xlu1 %4405, %v5180_v0   ;;  %v1476_v12 = vmul.f32 %v4843_v22, %v1218_v10  ;;  %v1477_v17 = vmul.f32 %v4850_v33, %v1218_v10  ;;  %v1222_v10 = vpop.permute.xlu0 %1221 }
 0x16b   :  { %v1740_v39 = vpop.permute.xlu2 %1739  ;;  %v1604_v16 = vadd.f32 %v1476_v12, %v1086_v29  ;;  %v1605_v44 = vadd.f32 %v1477_v17, %v1087_v40  ;;  %v4519_v29 = vld [vmem:[%s7504_s0 + $0x1a8] sm:$0xff]  ;;  %v439_v40 = vmul.f32 %v4824_v63, %v5304_v18  ;;  %v440_v12 = vmul.f32 %v4826_v1, %v5304_v18 }
 0x16c   :  { %v1996_v18 = vmul.f32 %v4862_v55, %v1740_v39 }
 0x16d   :  { %v2122_v30 = vadd.f32 %v1994_v3, %v1604_v16  ;;  %v2123_v37 = vadd.f32 %v1995_v27, %v1605_v44  ;;  %v1478_v16 = vmul.f32 %v4843_v22, %v1222_v10  ;;  %v1479_v44 = vmul.f32 %v4850_v33, %v1222_v10 }
 0x16f   :  { %4407 = vset.pattern.permute.xlu2 %v7594_v8  ;;  %v2250_v7 = vmax.f32 %v2122_v30, 0.0  ;;  %v2251_v34 = vmax.f32 %v2123_v37, 0.0  ;;  %v572_v30 = vadd.f32 %v4831_v6, %v439_v40  ;;  %v573_v37 = vadd.f32 %v4837_v14, %v440_v12  ;;  %v5411_v12 = vld [vmem:[%s7504_s0 + $0x48] sm:$0xff] }
 0x170   :  { %1425 = vperm.xlu2 %4407, %v4815_v59  }
 0x171   :  { %4406 = vset.pattern.permute.xlu1 %v7594_v8  ;;  %v2376_v56 = vpack.c.bf16 %v2250_v7, %v2248_v52  ;;  %v2377_v57 = vpack.c.bf16 %v2251_v34, %v2249_v50  ;;  %v962_v52 = vmul.f32 %v4829_v5, %v5326_v62  ;;  %v963_v7 = vmul.f32 %v4835_v13, %v5326_v62  ;;  %v5401_v62 = vld [vmem:[%s7504_s0 + $0x1b0] sm:$0xff] }
 0x172   :  { %1421 = vperm.xlu1 %4406, %v4518_v60   ;;  %v119_v45 = vpop.permute.xlu1 %118  ;;  %v1997_v34 = vmul.f32 %v4872_v2, %v1740_v39 }
 0x173   :  { %2580 = vmatmul.bf16.vlgmr.msra.gmra.mxu0 %v2376_v56  ;;  %2749 = vmatmul.bf16.vlgmr.msrb.gmra.mxu1 %v2377_v57  ;;  %v437_v50 = vmul.f32 %v4824_v63, %v119_v45  ;;  %v438_v21 = vmul.f32 %v4826_v1, %v119_v45 }
 0x174   :  { %v5354_v48 = vpop.permute.xlu2 %358 }
 0x175   :  { %7609 = vst [vmem:[#allocation41_spill] sm:$0xff] %v5354_v48 }
 0x178   :  { %4408 = vset.pattern.permute.xlu2 %v7593_v41 }
 0x179   :  { %1939 = vperm.xlu2 %4408, %v4518_v60   ;;  %v570_v60 = vadd.f32 %v4831_v6, %v437_v50  ;;  %v1090_v50 = vadd.f32 %v962_v52, %v572_v30 }
 0x17a   :  { %1241 = vperm.xlu1 %4406, %v5309_v49   ;;  %v571_v49 = vadd.f32 %v4837_v14, %v438_v21  ;;  %v1091_v21 = vadd.f32 %v963_v7, %v573_v37 }
 0x17b   :  { %v704_v59 = vpop.permute.xlu1 %703 }
 0x17c   :  { %v5364_v4 = vpop.permute.xlu2 %133  ;;  %v960_v3 = vmul.f32 %v4829_v5, %v704_v59  ;;  %v961_v27 = vmul.f32 %v4835_v13, %v704_v59 }
 0x17e   :  { %v1089_v54 = vadd.f32 %v961_v27, %v571_v49 }
 0x180   :  { %v1607_v56 = vadd.f32 %v1479_v44, %v1089_v54 }
 0x181   :  { %1755 = vperm.xlu2 %4408, %v5180_v0   ;;  %v1088_v0 = vadd.f32 %v960_v3, %v570_v60 }
 0x182   :  { %4409 = vset.pattern.permute.xlu1 %v7593_v41  ;;  %v2125_v27 = vadd.f32 %v1997_v34, %v1607_v56 }
 0x183   :  { %1943 = vperm.xlu1 %4409, %v4519_v29   ;;  %v1606_v45 = vadd.f32 %v1478_v16, %v1088_v0 }
 0x184   :  { %v1226_v17 = vpop.permute.xlu1 %1225  ;;  %v2253_v44 = vmax.f32 %v2125_v27, 0.0 }
 0x185   :  { %v5383_v19 = vpop.permute.xlu2 %899  ;;  %v1480_v57 = vmul.f32 %v4843_v22, %v1226_v17  ;;  %v1481_v59 = vmul.f32 %v4850_v33, %v1226_v17  ;;  %v2124_v3 = vadd.f32 %v1996_v18, %v1606_v45 }
 0x186   :  { %7610 = vst [vmem:[#allocation42_spill] sm:$0xff] %v5383_v19 }
 0x187   :  { %v1608_v10 = vadd.f32 %v1480_v57, %v1090_v50  ;;  %v1609_v60 = vadd.f32 %v1481_v59, %v1091_v21  ;;  %v2252_v54 = vmax.f32 %v2124_v3, 0.0  ;;  %v5429_v57 = vld [vmem:[%s7504_s0 + $0x1c8] sm:$0xff]  ;;  %v533_v3 = vmul.f32 %v4824_v63, %v5354_v48 }
 0x188   :  { %1959 = vperm.xlu0 %4450, %v5429_v57   ;;  %v7614_v50 = vld [vmem:[#allocation19_spill] sm:$0xff] }
 0x189   :  { %4411 = vset.pattern.permute.xlu2 %v7596_v26  ;;  %v535_v21 = vmul.f32 %v4824_v63, %v7614_v50 }
 0x18a   :  { %383 = vperm.xlu2 %4411, %v5208_v25  }
 0x18b   :  { %4410 = vset.pattern.permute.xlu1 %v7596_v26  ;;  %v668_v27 = vadd.f32 %v4831_v6, %v535_v21 }
 0x18c   :  { %378 = vperm.xlu1 %4410, %v5401_v62  }
 0x18d   :  { %v1744_v39 = vpop.permute.xlu1 %1743 }
 0x18e   :  { %v1998_v49 = vmul.f32 %v4862_v55, %v1744_v39  ;;  %v1999_v29 = vmul.f32 %v4872_v2, %v1744_v39  ;;  %v5406_v40 = vpop.permute.xlu2 %1413  ;;  %v1234_v39 = vpop.permute.xlu0 %1233 }
 0x18f   :  { %7611 = vst [vmem:[#allocation43_spill] sm:$0xff] %v5406_v40 }
 0x190   :  { %v2126_v17 = vadd.f32 %v1998_v49, %v1608_v10  ;;  %v2127_v0 = vadd.f32 %v1999_v29, %v1609_v60  ;;  %v1058_v10 = vmul.f32 %v4829_v5, %v5383_v19 }
 0x192   :  { %153 = vperm.xlu2 %4411, %v5411_v12   ;;  %v2254_v16 = vmax.f32 %v2126_v17, 0.0  ;;  %v2255_v30 = vmax.f32 %v2127_v0, 0.0  ;;  %v443_v0 = vmul.f32 %v4824_v63, %v5364_v4 }
 0x194   :  { %148 = vperm.xlu1 %4410, %v5359_v53   ;;  %v2378_v37 = vpack.c.bf16 %v2254_v16, %v2252_v54  ;;  %v2379_v52 = vpack.c.bf16 %v2255_v30, %v2253_v44  ;;  %v444_v54 = vmul.f32 %v4826_v1, %v5364_v4  ;;  %v1186_v16 = vadd.f32 %v1058_v10, %v668_v27 }
 0x195   :  { %v1574_v44 = vmul.f32 %v4843_v22, %v5406_v40 }
 0x196   :  { %2585 = vmatmul.bf16.gmra.mxu0 %v2378_v37  ;;  %2754 = vmatmul.bf16.gmra.mxu1 %v2379_v52  ;;  %v129_v7 = vpop.permute.xlu1 %128  ;;  %v1230_v18 = vpop.permute.xlu2 %1229 }
 0x197   :  { %v441_v30 = vmul.f32 %v4824_v63, %v129_v7  ;;  %v442_v37 = vmul.f32 %v4826_v1, %v129_v7  ;;  %v5466_v10 = vpop.permute.xlu0 %1237  ;;  %v576_v7 = vadd.f32 %v4831_v6, %v443_v0  ;;  %v1483_v48 = vmul.f32 %v4850_v33, %v1230_v18 }
 0x19a   :  { %4413 = vset.pattern.permute.xlu2 %v7600_v47 }
 0x19b   :  { %727 = vperm.xlu2 %4413, %v5359_v53  }
 0x19c   :  { %4412 = vset.pattern.permute.xlu1 %v7600_v47 }
 0x19d   :  { %915 = vperm.xlu1 %4412, %v5208_v25  }
 0x19f   :  { %v5419_v34 = vpop.permute.xlu1 %895  ;;  %v5421_v45 = vpop.permute.xlu2 %1935 }
 0x1a0   :  { %7612 = vst [vmem:[#allocation44_spill] sm:$0xff] %v5419_v34  ;;  %v1056_v29 = vmul.f32 %v4829_v5, %v5419_v34  ;;  %v2094_v21 = vmul.f32 %v4862_v55, %v5421_v45 }
 0x1a1   :  { %7613 = vst [vmem:[#allocation45_spill] sm:$0xff] %v5421_v45 }
 0x1a3   :  { %4414 = vset.pattern.permute.xlu2 %v7594_v8 }
 0x1a4   :  { %1429 = vperm.xlu2 %4414, %v5401_v62  }
 0x1a5   :  { %731 = vperm.xlu1 %4412, %v5411_v12  }
 0x1a7   :  { %v716_v56 = vpop.permute.xlu1 %715  ;;  %v1752_v59 = vpop.permute.xlu2 %1751 }
 0x1a8   :  { %v967_v4 = vmul.f32 %v4835_v13, %v716_v56  ;;  %v2003_v20 = vmul.f32 %v4872_v2, %v1752_v59 }
 0x1ac   :  { %1249 = vperm.xlu2 %4414, %v5411_v12  }
 0x1ad   :  { %4415 = vset.pattern.permute.xlu1 %v7594_v8 }
 0x1ae   :  { %1245 = vperm.xlu1 %4415, %v5359_v53   ;;  %v666_v53 = vadd.f32 %v4831_v6, %v533_v3  ;;  %v966_v3 = vmul.f32 %v4829_v5, %v716_v56  ;;  %v574_v56 = vadd.f32 %v4831_v6, %v441_v30 }
 0x1b0   :  { %v5442_v60 = vpop.permute.xlu1 %1417  ;;  %v5444_v49 = vpop.permute.xlu2 %138  ;;  %v1184_v52 = vadd.f32 %v1056_v29, %v666_v53  ;;  %v577_v29 = vadd.f32 %v4837_v14, %v444_v54  ;;  %v1484_v53 = vmul.f32 %v4843_v22, %v1234_v39  ;;  %v1094_v19 = vadd.f32 %v966_v3, %v576_v7 }
 0x1b1   :  { %7615 = vst [vmem:[#allocation46_spill] sm:$0xff] %v5442_v60  ;;  %v1576_v17 = vmul.f32 %v4843_v22, %v5442_v60  ;;  %v964_v60 = vmul.f32 %v4829_v5, %v5108_v43  ;;  %v1482_v54 = vmul.f32 %v4843_v22, %v1230_v18 }
 0x1b2   :  { %v1095_v34 = vadd.f32 %v967_v4, %v577_v29 }
 0x1b3   :  { %v1704_v27 = vadd.f32 %v1576_v17, %v1186_v16  ;;  %v575_v17 = vadd.f32 %v4837_v14, %v442_v37  ;;  %v1485_v16 = vmul.f32 %v4850_v33, %v1234_v39  ;;  %v1092_v50 = vadd.f32 %v964_v60, %v574_v56 }
 0x1b4   :  { %4417 = vset.pattern.permute.xlu2 %v7593_v41  ;;  %v2002_v39 = vmul.f32 %v4862_v55, %v1752_v59 }
 0x1b5   :  { %1951 = vperm.xlu2 %4417, %v5208_v25   ;;  %v965_v25 = vmul.f32 %v4835_v13, %v5108_v43  ;;  %v2222_v0 = vadd.f32 %v2094_v21, %v1704_v27  ;;  %v5492_v27 = vpop.permute.xlu0 %1433  ;;  %v1610_v18 = vadd.f32 %v1482_v54, %v1092_v50 }
 0x1b6   :  { %4416 = vset.pattern.permute.xlu1 %v7593_v41 }
 0x1b7   :  { %1947 = vperm.xlu1 %4416, %v5401_v62   ;;  %v1702_v62 = vadd.f32 %v1574_v44, %v1184_v52  ;;  %v1093_v37 = vadd.f32 %v965_v25, %v575_v17  ;;  %v1612_v44 = vadd.f32 %v1484_v53, %v1094_v19  ;;  %v1613_v52 = vadd.f32 %v1485_v16, %v1095_v34  ;;  %v5501_v53 = vld [vmem:[%s7504_s0 + $0x50] sm:$0xff] }
 0x1b8   :  { %v2350_v4 = vmax.f32 %v2222_v0, 0.0 }
 0x1b9   :  { %v5479_v45 = vpop.permute.xlu1 %1931  ;;  %v5481_v40 = vpop.permute.xlu2 %903  ;;  %v1611_v60 = vadd.f32 %v1483_v48, %v1093_v37  ;;  %v2130_v19 = vadd.f32 %v2002_v39, %v1612_v44  ;;  %v2131_v34 = vadd.f32 %v2003_v20, %v1613_v52  ;;  %v5521_v44 = vld [vmem:[%s7504_s0 + $0x58] sm:$0xff] }
 0x1ba   :  { %7616 = vst [vmem:[#allocation47_spill] sm:$0xff] %v5479_v45  ;;  %v2092_v43 = vmul.f32 %v4862_v55, %v5479_v45 }
 0x1bb   :  { %v2258_v50 = vmax.f32 %v2130_v19, 0.0  ;;  %v2259_v16 = vmax.f32 %v2131_v34, 0.0 }
 0x1bc   :  { %v2220_v30 = vadd.f32 %v2092_v43, %v1702_v62 }
 0x1bd   :  { %4418 = vset.pattern.permute.xlu2 %v7596_v26  ;;  %v5508_v54 = vpop.permute.xlu0 %1437 }
 0x1be   :  { %388 = vperm.xlu2 %4418, %v5241_v36   ;;  %v2348_v3 = vmax.f32 %v2220_v30, 0.0 }
 0x1bf   :  { %1767 = vperm.xlu1 %4416, %v5411_v12  }
 0x1c0   :  { %v2426_v21 = vpack.c.bf16 %v2350_v4, %v2348_v3  ;;  %v5528_v3 = vld [vmem:[%s7504_s0 + $0x1d0] sm:$0xff] }
 0x1c1   :  { %v1748_v25 = vpop.permute.xlu1 %1747  ;;  %v5494_v7 = vpop.permute.xlu2 %723  ;;  %1963 = vperm.xlu0 %4450, %v5528_v3  }
 0x1c2   :  { %v2000_v59 = vmul.f32 %v4862_v55, %v1748_v25  ;;  %v2001_v29 = vmul.f32 %v4872_v2, %v1748_v25  ;;  %2705 = vmatmul.bf16.vlgmr.msra.gmra.mxu2 %v2426_v21  ;;  %v971_v45 = vmul.f32 %v4835_v13, %v5494_v7 }
 0x1c4   :  { %v2128_v12 = vadd.f32 %v2000_v59, %v1610_v18  ;;  %v2129_v56 = vadd.f32 %v2001_v29, %v1611_v60  ;;  %v445_v18 = vmul.f32 %v4824_v63, %v5444_v49  ;;  %v446_v60 = vmul.f32 %v4826_v1, %v5444_v49  ;;  %v7617_v29 = vld [vmem:[#allocation21_spill] sm:$0xff] }
 0x1c5   :  { %v5516_v39 = vpop.permute.xlu0 %1273  ;;  %v537_v19 = vmul.f32 %v4824_v63, %v7617_v29  ;;  %v538_v34 = vmul.f32 %v4826_v1, %v7617_v29 }
 0x1c6   :  { %158 = vperm.xlu2 %4418, %v5501_v53   ;;  %v2256_v48 = vmax.f32 %v2128_v12, 0.0  ;;  %v2257_v17 = vmax.f32 %v2129_v56, 0.0  ;;  %v579_v49 = vadd.f32 %v4837_v14, %v446_v60 }
 0x1c7   :  { %4419 = vset.pattern.permute.xlu1 %v7596_v26  ;;  %v671_v29 = vadd.f32 %v4837_v14, %v538_v34  ;;  %v1060_v34 = vmul.f32 %v4829_v5, %v5481_v40 }
 0x1c8   :  { %393 = vperm.xlu1 %4419, %v5429_v57   ;;  %v2380_v62 = vpack.c.bf16 %v2258_v50, %v2256_v48  ;;  %v2381_v43 = vpack.c.bf16 %v2259_v16, %v2257_v17  ;;  %v578_v48 = vadd.f32 %v4831_v6, %v445_v18  ;;  %v1486_v17 = vmul.f32 %v4843_v22, %v5466_v10 }
 0x1c9   :  { %v1487_v16 = vmul.f32 %v4850_v33, %v5466_v10 }
 0x1ca   :  { %2590 = vmatmul.bf16.gmra.mxu0 %v2380_v62  ;;  %2759 = vmatmul.bf16.gmra.mxu1 %v2381_v43  ;;  %v374_v20 = vpop.permute.xlu1 %373  ;;  %v5506_v0 = vpop.permute.xlu2 %1425 }
 0x1cb   :  { %v539_v18 = vmul.f32 %v4824_v63, %v374_v20  ;;  %v540_v60 = vmul.f32 %v4826_v1, %v374_v20  ;;  %v1063_v20 = vmul.f32 %v4835_v13, %v5134_v31 }
 0x1cd   :  { %v5532_v21 = vpop.permute.xlu0 %1277  ;;  %v673_v24 = vadd.f32 %v4837_v14, %v540_v60 }
 0x1ce   :  { %4421 = vset.pattern.permute.xlu2 %v7600_v47 }
 0x1cf   :  { %923 = vperm.xlu2 %4421, %v5429_v57  }
 0x1d0   :  { %4420 = vset.pattern.permute.xlu1 %v7600_v47 }
 0x1d1   :  { %919 = vperm.xlu1 %4420, %v5241_v36  }
 0x1d2   :  { %v144_v30 = vpop.permute.xlu1 %143 }
 0x1d3   :  { %v5514_v37 = vpop.permute.xlu2 %1939  ;;  %v447_v50 = vmul.f32 %v4824_v63, %v144_v30 }
 0x1d5   :  { %v580_v10 = vadd.f32 %v4831_v6, %v447_v50 }
 0x1d7   :  { %739 = vperm.xlu2 %4421, %v5521_v44  }
 0x1d9   :  { %735 = vperm.xlu1 %4420, %v5501_v53  }
 0x1db   :  { %v720_v52 = vpop.permute.xlu1 %719  ;;  %v1756_v4 = vpop.permute.xlu2 %1755 }
 0x1dc   :  { %v968_v25 = vmul.f32 %v4829_v5, %v720_v52  ;;  %v969_v59 = vmul.f32 %v4835_v13, %v720_v52  ;;  %v670_v52 = vadd.f32 %v4831_v6, %v537_v19  ;;  %v1062_v19 = vmul.f32 %v4829_v5, %v5134_v31 }
 0x1de   :  { %v1096_v62 = vadd.f32 %v968_v25, %v578_v48  ;;  %v1097_v43 = vadd.f32 %v969_v59, %v579_v49  ;;  %v1760_v59 = vpop.permute.xlu0 %1759  ;;  %v1061_v48 = vmul.f32 %v4835_v13, %v5481_v40  ;;  %v2005_v49 = vmul.f32 %v4872_v2, %v1756_v4 }
 0x1df   :  { %4423 = vset.pattern.permute.xlu2 %v7594_v8  ;;  %v2006_v31 = vmul.f32 %v4862_v55, %v1760_v59  ;;  %v2007_v28 = vmul.f32 %v4872_v2, %v1760_v59  ;;  %v1188_v60 = vadd.f32 %v1060_v34, %v670_v52  ;;  %v1580_v59 = vmul.f32 %v4843_v22, %v5506_v0 }
 0x1e0   :  { %1253 = vperm.xlu2 %4423, %v5501_v53   ;;  %v1615_v50 = vadd.f32 %v1487_v16, %v1097_v43  ;;  %v1189_v32 = vadd.f32 %v1061_v48, %v671_v29 }
 0x1e1   :  { %4422 = vset.pattern.permute.xlu1 %v7594_v8 }
 0x1e2   :  { %1441 = vperm.xlu1 %4422, %v5429_v57   ;;  %v448_v57 = vmul.f32 %v4826_v1, %v144_v30  ;;  %v970_v30 = vmul.f32 %v4829_v5, %v5494_v7  ;;  %v2004_v7 = vmul.f32 %v4862_v55, %v1756_v4 }
 0x1e4   :  { %v1422_v12 = vpop.permute.xlu1 %1421  ;;  %v5547_v56 = vpop.permute.xlu2 %383  ;;  %v581_v25 = vadd.f32 %v4837_v14, %v448_v57  ;;  %v672_v57 = vadd.f32 %v4831_v6, %v539_v18  ;;  %v1098_v40 = vadd.f32 %v970_v30, %v580_v10  ;;  %v2133_v18 = vadd.f32 %v2005_v49, %v1615_v50 }
 0x1e5   :  { %v1578_v4 = vmul.f32 %v4843_v22, %v1422_v12  ;;  %v1191_v10 = vadd.f32 %v1063_v20, %v673_v24 }
 0x1e6   :  { %v1099_v9 = vadd.f32 %v971_v45, %v581_v25  ;;  %v1581_v45 = vmul.f32 %v4850_v33, %v5506_v0  ;;  %v1190_v30 = vadd.f32 %v1062_v19, %v672_v57  ;;  %v2261_v29 = vmax.f32 %v2133_v18, 0.0  ;;  %v5621_v18 = vld [vmem:[%s7504_s0 + $0x68] sm:$0xff] }
 0x1e8   :  { %4424 = vset.pattern.permute.xlu2 %v7593_v41  ;;  %v1708_v19 = vadd.f32 %v1580_v59, %v1190_v30  ;;  %v5633_v30 = vld [vmem:[%s7504_s0 + $0x88] sm:$0xff] }
 0x1e9   :  { %1955 = vperm.xlu2 %4424, %v5241_v36   ;;  %v1614_v36 = vadd.f32 %v1486_v17, %v1096_v62  ;;  %v1579_v17 = vmul.f32 %v4850_v33, %v1422_v12  ;;  %1799 = vperm.xlu0 %4450, %v5633_v30  }
 0x1ea   :  { %1257 = vperm.xlu1 %4422, %v5521_v44  }
 0x1eb   :  { %v2132_v43 = vadd.f32 %v2004_v7, %v1614_v36  ;;  %v1707_v12 = vadd.f32 %v1579_v17, %v1189_v32 }
 0x1ec   :  { %v1242_v23 = vpop.permute.xlu1 %1241  ;;  %v5584_v46 = vpop.permute.xlu2 %153 }
 0x1ed   :  { %v1488_v58 = vmul.f32 %v4843_v22, %v1242_v23  ;;  %v1489_v38 = vmul.f32 %v4850_v33, %v1242_v23  ;;  %v2260_v52 = vmax.f32 %v2132_v43, 0.0 }
 0x1ef   :  { %v1616_v16 = vadd.f32 %v1488_v58, %v1098_v40  ;;  %v1617_v62 = vadd.f32 %v1489_v38, %v1099_v9  ;;  %v2096_v58 = vmul.f32 %v4862_v55, %v5514_v37  ;;  %v2097_v38 = vmul.f32 %v4872_v2, %v5514_v37 }
 0x1f0   :  { %v1706_v9 = vadd.f32 %v1578_v4, %v1188_v60 }
 0x1f1   :  { %v2134_v25 = vadd.f32 %v2006_v31, %v1616_v16  ;;  %v2135_v23 = vadd.f32 %v2007_v28, %v1617_v62  ;;  %1775 = vperm.xlu2 %4424, %v5521_v44   ;;  %v1709_v28 = vadd.f32 %v1581_v45, %v1191_v10  ;;  %v2225_v49 = vadd.f32 %v2097_v38, %v1707_v12  ;;  %v4523_v45 = vld [vmem:[%s7504_s0 + $0x60] sm:$0xff] }
 0x1f2   :  { %4425 = vset.pattern.permute.xlu1 %v7593_v41  ;;  %v2224_v32 = vadd.f32 %v2096_v58, %v1706_v9  ;;  %v543_v9 = vmul.f32 %v4824_v63, %v5547_v56  ;;  %v544_v12 = vmul.f32 %v4826_v1, %v5547_v56 }
 0x1f3   :  { %1771 = vperm.xlu1 %4425, %v5501_v53   ;;  %v2262_v0 = vmax.f32 %v2134_v25, 0.0  ;;  %v2263_v24 = vmax.f32 %v2135_v23, 0.0  ;;  %v5608_v53 = vld [vmem:[%s7504_s0 + $0x1d8] sm:$0xff]  ;;  %v2353_v40 = vmax.f32 %v2225_v49, 0.0  ;;  %v5642_v23 = vld [vmem:[%s7504_s0 + $0xa0] sm:$0xff]  ;;  %v1585_v49 = vmul.f32 %v4850_v33, %v5492_v27 }
 0x1f4   :  { %v2352_v57 = vmax.f32 %v2224_v32, 0.0  ;;  %1811 = vperm.xlu0 %4450, %v5642_v23   ;;  %v676_v56 = vadd.f32 %v4831_v6, %v543_v9  ;;  %v1584_v32 = vmul.f32 %v4843_v22, %v5492_v27 }
 0x1f5   :  { %v1944_v20 = vpop.permute.xlu1 %1943  ;;  %v2382_v44 = vpack.c.bf16 %v2262_v0, %v2260_v52  ;;  %v2383_v34 = vpack.c.bf16 %v2263_v24, %v2261_v29  ;;  %v5601_v48 = vpop.permute.xlu2 %727 }
 0x1f6   :  { %v2098_v7 = vmul.f32 %v4862_v55, %v1944_v20  ;;  %v2099_v37 = vmul.f32 %v4872_v2, %v1944_v20  ;;  %v1065_v20 = vmul.f32 %v4835_v13, %v5158_v51 }
 0x1f7   :  { %2595 = vmatmul.bf16.gmra.mxu0 %v2382_v44  ;;  %2764 = vmatmul.bf16.gmra.mxu1 %v2383_v34 }
 0x1f8   :  { %v2227_v36 = vadd.f32 %v2099_v37, %v1709_v28  ;;  %v2226_v50 = vadd.f32 %v2098_v7, %v1708_v19  ;;  %v677_v19 = vadd.f32 %v4837_v14, %v544_v12  ;;  %v1064_v28 = vmul.f32 %v4829_v5, %v5158_v51 }
 0x1f9   :  { %4427 = vset.pattern.permute.xlu2 %v7596_v26  ;;  %v452_v51 = vmul.f32 %v4826_v1, %v5584_v46 }
 0x1fa   :  { %403 = vperm.xlu2 %4427, %v5608_v53   ;;  %v2354_v31 = vmax.f32 %v2226_v50, 0.0  ;;  %v2355_v4 = vmax.f32 %v2227_v36, 0.0 }
 0x1fb   :  { %4426 = vset.pattern.permute.xlu1 %v7596_v26 }
 0x1fc   :  { %398 = vperm.xlu1 %4426, %v5528_v3   ;;  %v2428_v17 = vpack.c.bf16 %v2354_v31, %v2352_v57  ;;  %v5614_v16 = vpack.c.bf16 %v2355_v4, %v2353_v40  ;;  %4465 = vset.pattern.permute.xlu0 %v7596_v26  ;;  %v451_v57 = vmul.f32 %v4824_v63, %v5584_v46 }
 0x1fe   :  { %2710 = vmatmul.bf16.gmra.mxu2 %v2428_v17  ;;  %v379_v62 = vpop.permute.xlu1 %378  ;;  %v1430_v43 = vpop.permute.xlu2 %1429  ;;  %v584_v46 = vadd.f32 %v4831_v6, %v451_v57 }
 0x1ff   :  { %v541_v52 = vmul.f32 %v4824_v63, %v379_v62  ;;  %v542_v0 = vmul.f32 %v4826_v1, %v379_v62  ;;  %v1582_v31 = vmul.f32 %v4843_v22, %v1430_v43  ;;  %v1583_v40 = vmul.f32 %v4850_v33, %v1430_v43 }
 0x200   :  { %v585_v43 = vadd.f32 %v4837_v14, %v452_v51 }
 0x201   :  { %v674_v44 = vadd.f32 %v4831_v6, %v541_v52  ;;  %v675_v34 = vadd.f32 %v4837_v14, %v542_v0  ;;  %v972_v0 = vmul.f32 %v4829_v5, %v5601_v48 }
 0x202   :  { %4429 = vset.pattern.permute.xlu2 %v7600_v47 }
 0x203   :  { %927 = vperm.xlu2 %4429, %v5528_v3   ;;  %v1192_v4 = vadd.f32 %v1064_v28, %v674_v44  ;;  %v1193_v17 = vadd.f32 %v1065_v20, %v675_v34 }
 0x204   :  { %173 = vperm.xlu1 %4426, %v5621_v18  }
 0x206   :  { %v149_v60 = vpop.permute.xlu1 %148  ;;  %v5624_v59 = vpop.permute.xlu2 %1249 }
 0x207   :  { %v449_v62 = vmul.f32 %v4824_v63, %v149_v60  ;;  %v1493_v57 = vmul.f32 %v4850_v33, %v5624_v59 }
 0x20b   :  { %743 = vperm.xlu2 %4429, %v4523_v45  }
 0x20c   :  { %4430 = vset.pattern.permute.xlu1 %v7600_v47 }
 0x20d   :  { %931 = vperm.xlu1 %4430, %v5608_v53  }
 0x20f   :  { %v916_v10 = vpop.permute.xlu1 %915  ;;  %v1952_v25 = vpop.permute.xlu2 %1951 }
 0x210   :  { %v1066_v29 = vmul.f32 %v4829_v5, %v916_v10  ;;  %v1067_v24 = vmul.f32 %v4835_v13, %v916_v10  ;;  %v450_v10 = vmul.f32 %v4826_v1, %v149_v60  ;;  %v2102_v9 = vmul.f32 %v4862_v55, %v1952_v25 }
 0x211   :  { %v2103_v12 = vmul.f32 %v4872_v2, %v1952_v25  ;;  %v973_v60 = vmul.f32 %v4835_v13, %v5601_v48  ;;  %v582_v25 = vadd.f32 %v4831_v6, %v449_v62 }
 0x212   :  { %v1194_v36 = vadd.f32 %v1066_v29, %v676_v56  ;;  %v1195_v50 = vadd.f32 %v1067_v24, %v677_v19  ;;  %v1710_v29 = vadd.f32 %v1582_v31, %v1192_v4  ;;  %v1711_v24 = vadd.f32 %v1583_v40, %v1193_v17  ;;  %v1764_v56 = vpop.permute.xlu0 %1763  ;;  %v5717_v31 = vld [vmem:[%s7504_s0 + $0x1e0] sm:$0xff] }
 0x213   :  { %4432 = vset.pattern.permute.xlu2 %v7594_v8  ;;  %v2009_v51 = vmul.f32 %v4872_v2, %v1764_v56 }
 0x214   :  { %1449 = vperm.xlu2 %4432, %v5608_v53   ;;  %v1713_v27 = vadd.f32 %v1585_v49, %v1195_v50  ;;  %v1712_v52 = vadd.f32 %v1584_v32, %v1194_v36  ;;  %v1492_v50 = vmul.f32 %v4843_v22, %v5624_v59 }
 0x215   :  { %4431 = vset.pattern.permute.xlu1 %v7594_v8 }
 0x216   :  { %1445 = vperm.xlu1 %4431, %v5528_v3   ;;  %v5662_v3 = vld [vmem:[%s7504_s0 + $0x1e8] sm:$0xff]  ;;  %v2231_v19 = vadd.f32 %v2103_v12, %v1713_v27  ;;  %v2230_v32 = vadd.f32 %v2102_v9, %v1712_v52 }
 0x217   :  { %v732_v58 = vpop.permute.xlu1 %731  ;;  %413 = vperm.xlu0 %4465, %v5662_v3  }
 0x218   :  { %v5647_v38 = vpop.permute.xlu2 %388  ;;  %v974_v28 = vmul.f32 %v4829_v5, %v732_v58  ;;  %v975_v20 = vmul.f32 %v4835_v13, %v732_v58  ;;  %v2008_v58 = vmul.f32 %v4862_v55, %v1764_v56  ;;  %v2358_v27 = vmax.f32 %v2230_v32, 0.0 }
 0x219   :  { %v2359_v9 = vmax.f32 %v2231_v19, 0.0 }
 0x21a   :  { %v1102_v62 = vadd.f32 %v974_v28, %v584_v46 }
 0x21c   :  { %1265 = vperm.xlu2 %4432, %v5621_v18  }
 0x21e   :  { %1261 = vperm.xlu1 %4431, %v4523_v45  }
 0x220   :  { %v1246_v7 = vpop.permute.xlu1 %1245  ;;  %v5673_v37 = vpop.permute.xlu2 %158 }
 0x221   :  { %v1490_v48 = vmul.f32 %v4843_v22, %v1246_v7 }
 0x224   :  { %4434 = vset.pattern.permute.xlu2 %v7593_v41 }
 0x225   :  { %1779 = vperm.xlu2 %4434, %v4523_v45   ;;  %v583_v45 = vadd.f32 %v4837_v14, %v450_v10  ;;  %v1103_v10 = vadd.f32 %v975_v20, %v585_v43 }
 0x226   :  { %4433 = vset.pattern.permute.xlu1 %v7593_v41 }
 0x227   :  { %1967 = vperm.xlu1 %4433, %v5608_v53   ;;  %v1491_v53 = vmul.f32 %v4850_v33, %v1246_v7  ;;  %v1100_v7 = vadd.f32 %v972_v0, %v582_v25  ;;  %v1101_v40 = vadd.f32 %v973_v60, %v583_v45 }
 0x229   :  { %v1948_v44 = vpop.permute.xlu1 %1947  ;;  %v5702_v34 = vpop.permute.xlu2 %923  ;;  %v1618_v59 = vadd.f32 %v1490_v48, %v1100_v7  ;;  %v1619_v12 = vadd.f32 %v1491_v53, %v1101_v40  ;;  %v546_v7 = vmul.f32 %v4826_v1, %v5647_v38 }
 0x22a   :  { %v2100_v49 = vmul.f32 %v4862_v55, %v1948_v44  ;;  %v2101_v36 = vmul.f32 %v4872_v2, %v1948_v44  ;;  %v5721_v44 = vpop.f32.mrf.mxu1 }
 0x22b   :  { %v2136_v25 = vadd.f32 %v2008_v58, %v1618_v59  ;;  %v2137_v45 = vadd.f32 %v2009_v51, %v1619_v12  ;;  %v545_v12 = vmul.f32 %v4824_v63, %v5647_v38  ;;  %v1586_v38 = vmul.f32 %v4843_v22, %v5508_v54 }
 0x22c   :  { %v2229_v4 = vadd.f32 %v2101_v36, %v1711_v24  ;;  %v2228_v17 = vadd.f32 %v2100_v49, %v1710_v29  ;;  %v1621_v29 = vadd.f32 %v1493_v57, %v1103_v10  ;;  %v1620_v24 = vadd.f32 %v1492_v50, %v1102_v62  ;;  %v5735_v36 = vld [vmem:[%s7504_s0 + $0x70] sm:$0xff] }
 0x22d   :  { %4435 = vset.pattern.permute.xlu2 %v7596_v26  ;;  %v2265_v48 = vmax.f32 %v2137_v45, 0.0  ;;  %v679_v62 = vadd.f32 %v4837_v14, %v546_v7 }
 0x22e   :  { %408 = vperm.xlu2 %4435, %v5717_v31   ;;  %v2356_v52 = vmax.f32 %v2228_v17, 0.0  ;;  %v2357_v56 = vmax.f32 %v2229_v4, 0.0  ;;  %v1587_v17 = vmul.f32 %v4850_v33, %v5508_v54  ;;  %v5782_v54 = vld [vmem:[%s7504_s0 + $0x1f0] sm:$0xff] }
 0x22f   :  { %1783 = vperm.xlu1 %4433, %v5621_v18   ;;  %v2264_v18 = vmax.f32 %v2136_v25, 0.0  ;;  %418 = vperm.xlu0 %4465, %v5782_v54  }
 0x230   :  { %v2430_v0 = vpack.c.bf16 %v2358_v27, %v2356_v52  ;;  %v5724_v60 = vpack.c.bf16 %v2359_v9, %v2357_v56  ;;  %v5760_v52 = vld [vmem:[%s7504_s0 + $0x78] sm:$0xff] }
 0x231   :  { %v1768_v46 = vpop.permute.xlu1 %1767  ;;  %v5726_v43 = vpop.permute.xlu2 %739 }
 0x232   :  { %7618 = vst [vmem:[#allocation21_spill] sm:$0xff] %v5724_v60  ;;  %v2010_v19 = vmul.f32 %v4862_v55, %v1768_v46  ;;  %v2011_v28 = vmul.f32 %v4872_v2, %v1768_v46  ;;  %2715 = vmatmul.bf16.gmra.mxu2 %v2430_v0  ;;  %v5738_v58 = vpop.f32.mrf.mxu1 }
 0x234   :  { %v2139_v20 = vadd.f32 %v2011_v28, %v1621_v29  ;;  %v2138_v32 = vadd.f32 %v2010_v19, %v1620_v24  ;;  %v678_v24 = vadd.f32 %v4831_v6, %v545_v12  ;;  %v1070_v28 = vmul.f32 %v4829_v5, %v5702_v34 }
 0x236   :  { %183 = vperm.xlu2 %4435, %v5276_v35   ;;  %v2266_v53 = vmax.f32 %v2138_v32, 0.0  ;;  %v2267_v49 = vmax.f32 %v2139_v20, 0.0  ;;  %v1071_v20 = vmul.f32 %v4835_v13, %v5702_v34 }
 0x237   :  { %4436 = vset.pattern.permute.xlu1 %v7596_v26 }
 0x238   :  { %178 = vperm.xlu1 %4436, %v5735_v36   ;;  %v2384_v50 = vpack.c.bf16 %v2266_v53, %v2264_v18  ;;  %v2385_v57 = vpack.c.bf16 %v2267_v49, %v2265_v48  ;;  %v1960_v18 = vpop.permute.xlu0 %1959 }
 0x23a   :  { %2600 = vmatmul.bf16.gmra.mxu0 %v2384_v50  ;;  %2769 = vmatmul.bf16.gmra.mxu1 %v2385_v57  ;;  %v394_v51 = vpop.permute.xlu1 %393  ;;  %v5740_v35 = vpop.permute.xlu2 %1253  ;;  %v2106_v50 = vmul.f32 %v4862_v55, %v1960_v18  ;;  %v2107_v57 = vmul.f32 %v4872_v2, %v1960_v18  ;;  %v979_v18 = vmul.f32 %v4835_v13, %v5726_v43 }
 0x23b   :  { %v547_v25 = vmul.f32 %v4824_v63, %v394_v51  ;;  %v548_v45 = vmul.f32 %v4826_v1, %v394_v51 }
 0x23d   :  { %v680_v32 = vadd.f32 %v4831_v6, %v547_v25  ;;  %v681_v48 = vadd.f32 %v4837_v14, %v548_v45  ;;  %v453_v25 = vmul.f32 %v4824_v63, %v5673_v37  ;;  %v454_v45 = vmul.f32 %v4826_v1, %v5673_v37 }
 0x23e   :  { %4438 = vset.pattern.permute.xlu2 %v7600_v47 }
 0x23f   :  { %939 = vperm.xlu2 %4438, %v5662_v3   ;;  %v1198_v7 = vadd.f32 %v1070_v28, %v680_v32 }
 0x240   :  { %4437 = vset.pattern.permute.xlu1 %v7600_v47 }
 0x241   :  { %935 = vperm.xlu1 %4437, %v5717_v31  }
 0x243   :  { %v920_v40 = vpop.permute.xlu1 %919  ;;  %v1956_v4 = vpop.permute.xlu2 %1955 }
 0x244   :  { %v1069_v10 = vmul.f32 %v4835_v13, %v920_v40  ;;  %v2105_v9 = vmul.f32 %v4872_v2, %v1956_v4  ;;  %v1068_v0 = vmul.f32 %v4829_v5, %v920_v40  ;;  %v2104_v49 = vmul.f32 %v4862_v55, %v1956_v4 }
 0x245   :  { %v1199_v40 = vadd.f32 %v1071_v20, %v681_v48 }
 0x246   :  { %v1197_v27 = vadd.f32 %v1069_v10, %v679_v62  ;;  %v1196_v19 = vadd.f32 %v1068_v0, %v678_v24 }
 0x247   :  { %4439 = vset.pattern.permute.xlu2 %v7594_v8 }
 0x248   :  { %v1715_v59 = vadd.f32 %v1587_v17, %v1197_v27  ;;  %1453 = vperm.xlu2 %4439, %v5717_v31   ;;  %v1714_v53 = vadd.f32 %v1586_v38, %v1196_v19 }
 0x249   :  { %755 = vperm.xlu1 %4437, %v5760_v52  }
 0x24a   :  { %v2233_v56 = vadd.f32 %v2105_v9, %v1715_v59  ;;  %v2232_v10 = vadd.f32 %v2104_v49, %v1714_v53  ;;  %v7619_v59 = vld [vmem:[#allocation23_spill] sm:$0xff] }
 0x24b   :  { %v736_v29 = vpop.permute.xlu1 %735  ;;  %v5764_v46 = vpop.permute.xlu2 %1775  ;;  %v455_v12 = vmul.f32 %v4824_v63, %v7619_v59  ;;  %v456_v4 = vmul.f32 %v4826_v1, %v7619_v59 }
 0x24c   :  { %v2361_v38 = vmax.f32 %v2233_v56, 0.0  ;;  %v2360_v28 = vmax.f32 %v2232_v10, 0.0  ;;  %v976_v37 = vmul.f32 %v4829_v5, %v736_v29  ;;  %v977_v56 = vmul.f32 %v4835_v13, %v736_v29 }
 0x24d   :  { %v588_v32 = vadd.f32 %v4831_v6, %v455_v12  ;;  %v589_v48 = vadd.f32 %v4837_v14, %v456_v4  ;;  %v1495_v29 = vmul.f32 %v4850_v33, %v5740_v35  ;;  %v2015_v59 = vmul.f32 %v4872_v2, %v5764_v46 }
 0x250   :  { %1269 = vperm.xlu2 %4439, %v5735_v36  }
 0x251   :  { %4440 = vset.pattern.permute.xlu1 %v7594_v8 }
 0x252   :  { %1457 = vperm.xlu1 %4440, %v5662_v3  }
 0x254   :  { %v1442_v34 = vpop.permute.xlu1 %1441  ;;  %v5789_v51 = vpop.permute.xlu2 %403 }
 0x255   :  { %v1588_v17 = vmul.f32 %v4843_v22, %v1442_v34  ;;  %v1589_v62 = vmul.f32 %v4850_v33, %v1442_v34 }
 0x257   :  { %v1716_v27 = vadd.f32 %v1588_v17, %v1198_v7  ;;  %v1717_v9 = vadd.f32 %v1589_v62, %v1199_v40  ;;  %v586_v7 = vadd.f32 %v4831_v6, %v453_v25  ;;  %v587_v40 = vadd.f32 %v4837_v14, %v454_v45 }
 0x258   :  { %4442 = vset.pattern.permute.xlu2 %v7593_v41  ;;  %v1107_v17 = vadd.f32 %v979_v18, %v589_v48  ;;  %v1494_v62 = vmul.f32 %v4843_v22, %v5740_v35 }
 0x259   :  { %v2234_v0 = vadd.f32 %v2106_v50, %v1716_v27  ;;  %v2235_v24 = vadd.f32 %v2107_v57, %v1717_v9  ;;  %1975 = vperm.xlu2 %4442, %v5662_v3   ;;  %v978_v3 = vmul.f32 %v4829_v5, %v5726_v43  ;;  %v1104_v10 = vadd.f32 %v976_v37, %v586_v7 }
 0x25a   :  { %4441 = vset.pattern.permute.xlu1 %v7593_v41  ;;  %v1105_v27 = vadd.f32 %v977_v56, %v587_v40  ;;  %v2014_v9 = vmul.f32 %v4862_v55, %v5764_v46 }
 0x25b   :  { %v2363_v19 = vmax.f32 %v2235_v24, 0.0  ;;  %1971 = vperm.xlu1 %4441, %v5717_v31   ;;  %v2362_v20 = vmax.f32 %v2234_v0, 0.0  ;;  %v1106_v43 = vadd.f32 %v978_v3, %v588_v32  ;;  %v5830_v0 = vpop.f32.mrf.mxu1  ;;  %v1622_v24 = vadd.f32 %v1494_v62, %v1104_v10  ;;  %v1964_v10 = vpop.permute.xlu0 %1963 }
 0x25c   :  { %v1258_v53 = vpop.permute.xlu1 %1257  ;;  %v1623_v25 = vadd.f32 %v1495_v29, %v1105_v27  ;;  %v5867_v27 = vld [vmem:[%s7504_s0 + $0xa8] sm:$0xff] }
 0x25d   :  { %v5813_v49 = vpop.permute.xlu2 %927  ;;  %v2432_v31 = vpack.c.bf16 %v2362_v20, %v2360_v28  ;;  %v5815_v34 = vpack.c.bf16 %v2363_v19, %v2361_v38  ;;  %v1496_v50 = vmul.f32 %v4843_v22, %v1258_v53  ;;  %v1497_v57 = vmul.f32 %v4850_v33, %v1258_v53  ;;  %v5848_v53 = vld [vmem:[%s7504_s0 + $0x1f8] sm:$0xff]  ;;  %213 = vperm.xlu0 %4465, %v5867_v27  }
 0x25e   :  { %v1073_v7 = vmul.f32 %v4835_v13, %v5813_v49 }
 0x25f   :  { %7620 = vst [vmem:[#allocation23_spill] sm:$0xff] %v5815_v34  ;;  %2720 = vmatmul.bf16.gmra.mxu2 %v2432_v31  ;;  %v1624_v12 = vadd.f32 %v1496_v50, %v1106_v43  ;;  %v1625_v4 = vadd.f32 %v1497_v57, %v1107_v17 }
 0x261   :  { %1791 = vperm.xlu2 %4442, %v5760_v52   ;;  %v2143_v35 = vadd.f32 %v2015_v59, %v1625_v4  ;;  %v2142_v28 = vadd.f32 %v2014_v9, %v1624_v12  ;;  %v552_v9 = vmul.f32 %v4826_v1, %v5789_v51 }
 0x263   :  { %1787 = vperm.xlu1 %4441, %v5735_v36   ;;  %v5841_v36 = vld [vmem:[%s7504_s0 + $0x80] sm:$0xff]  ;;  %v2270_v3 = vmax.f32 %v2142_v28, 0.0  ;;  %v2271_v18 = vmax.f32 %v2143_v35, 0.0  ;;  %v5851_v31 = vpop.f32.mrf.mxu1  ;;  %v685_v4 = vadd.f32 %v4837_v14, %v552_v9 }
 0x265   :  { %v1772_v45 = vpop.permute.xlu1 %1771  ;;  %v5835_v19 = vpop.permute.xlu2 %743 }
 0x266   :  { %v2012_v38 = vmul.f32 %v4862_v55, %v1772_v45  ;;  %v2013_v52 = vmul.f32 %v4872_v2, %v1772_v45  ;;  %v5881_v45 = vpop.permute.xlu0 %1799 }
 0x268   :  { %v2140_v20 = vadd.f32 %v2012_v38, %v1622_v24  ;;  %v2141_v32 = vadd.f32 %v2013_v52, %v1623_v25  ;;  %v5886_v38 = vld [vmem:[%s7504_s0 + $0xc0] sm:$0xff] }
 0x269   :  { %4444 = vset.pattern.permute.xlu2 %v7596_v26  ;;  %228 = vperm.xlu0 %4465, %v5886_v38  }
 0x26a   :  { %v2269_v46 = vmax.f32 %v2141_v32, 0.0  ;;  %188 = vperm.xlu2 %4444, %v5841_v36   ;;  %v2268_v48 = vmax.f32 %v2140_v20, 0.0 }
 0x26b   :  { %4443 = vset.pattern.permute.xlu1 %v7596_v26  ;;  %v5893_v28 = vpop.f32.mrf.mxu1 }
 0x26c   :  { %423 = vperm.xlu1 %4443, %v5848_v53   ;;  %v2386_v37 = vpack.c.bf16 %v2270_v3, %v2268_v48  ;;  %v2387_v56 = vpack.c.bf16 %v2271_v18, %v2269_v46  ;;  %7621 = vst [vmem:[#allocation48_spill] sm:$0xff] %v5893_v28  ;;  %v2109_v48 = vmul.f32 %v4872_v2, %v1964_v10 }
 0x26e   :  { %2605 = vmatmul.bf16.gmra.mxu0 %v2386_v37  ;;  %2774 = vmatmul.bf16.gmra.mxu1 %v2387_v56  ;;  %v399_v50 = vpop.permute.xlu1 %398  ;;  %v5853_v57 = vpop.permute.xlu2 %1449  ;;  %v5907_v56 = vld [vmem:[%s7504_s0 + $0x90] sm:$0xff] }
 0x26f   :  { %v550_v40 = vmul.f32 %v4826_v1, %v399_v50  ;;  %v1593_v24 = vmul.f32 %v4850_v33, %v5853_v57  ;;  %v5901_v3 = vpop.permute.xlu0 %1811  ;;  %v549_v18 = vmul.f32 %v4824_v63, %v399_v50  ;;  %v551_v50 = vmul.f32 %v4824_v63, %v5789_v51 }
 0x271   :  { %v683_v43 = vadd.f32 %v4837_v14, %v550_v40  ;;  %4474 = vset.pattern.permute.xlu0 %v7594_v8 }
 0x272   :  { %4445 = vset.pattern.permute.xlu2 %v7600_v47  ;;  %1285 = vperm.xlu0 %4474, %v5907_v56  }
 0x273   :  { %943 = vperm.xlu2 %4445, %v5782_v54   ;;  %v1201_v17 = vadd.f32 %v1073_v7, %v683_v43  ;;  %v5916_v40 = vpop.f32.mrf.mxu1  ;;  %v1072_v43 = vmul.f32 %v4829_v5, %v5813_v49 }
 0x274   :  { %193 = vperm.xlu1 %4443, %v5633_v30   ;;  %7622 = vst [vmem:[#allocation49_spill] sm:$0xff] %v5916_v40 }
 0x276   :  { %v174_v62 = vpop.permute.xlu1 %173  ;;  %v5862_v29 = vpop.permute.xlu2 %1265 }
 0x277   :  { %v459_v51 = vmul.f32 %v4824_v63, %v174_v62 }
 0x27b   :  { %763 = vperm.xlu2 %4445, %v5633_v30  }
 0x27c   :  { %4447 = vset.pattern.permute.xlu1 %v7600_v47 }
 0x27d   :  { %759 = vperm.xlu1 %4447, %v5841_v36  }
 0x27f   :  { %v932_v59 = vpop.permute.xlu1 %931  ;;  %v5875_v12 = vpop.permute.xlu2 %1779 }
 0x280   :  { %v1075_v25 = vmul.f32 %v4835_v13, %v932_v59 }
 0x282   :  { %v1203_v35 = vadd.f32 %v1075_v25, %v685_v4 }
 0x283   :  { %4449 = vset.pattern.permute.xlu2 %v7594_v8 }
 0x284   :  { %1465 = vperm.xlu2 %4449, %v5848_v53   ;;  %v5891_v52 = vadd.f32 %v1593_v24, %v1203_v35  ;;  %v1074_v24 = vmul.f32 %v4829_v5, %v932_v59  ;;  %v460_v59 = vmul.f32 %v4826_v1, %v174_v62  ;;  %v981_v62 = vmul.f32 %v4835_v13, %v5835_v19 }
 0x285   :  { %4448 = vset.pattern.permute.xlu1 %v7594_v8 }
 0x286   :  { %1461 = vperm.xlu1 %4448, %v5782_v54  }
 0x288   :  { %v1446_v20 = vpop.permute.xlu1 %1445  ;;  %v5897_v32 = vpop.permute.xlu2 %408 }
 0x289   :  { %v1591_v46 = vmul.f32 %v4850_v33, %v1446_v20  ;;  %v1590_v25 = vmul.f32 %v4843_v22, %v1446_v20 }
 0x28b   :  { %v1719_v37 = vadd.f32 %v1591_v46, %v1201_v17  ;;  %v682_v17 = vadd.f32 %v4831_v6, %v549_v18  ;;  %v684_v46 = vadd.f32 %v4831_v6, %v551_v50  ;;  %v980_v18 = vmul.f32 %v4829_v5, %v5835_v19 }
 0x28c   :  { %4451 = vset.pattern.permute.xlu2 %v7593_v41  ;;  %v2108_v50 = vmul.f32 %v4862_v55, %v1964_v10  ;;  %v983_v10 = vmul.f32 %v4835_v13, %v5169_v61 }
 0x28d   :  { %v5912_v7 = vadd.f32 %v2109_v48, %v1719_v37  ;;  %1979 = vperm.xlu2 %4451, %v5782_v54   ;;  %v5927_v54 = vpop.permute.xlu0 %413  ;;  %v1200_v48 = vadd.f32 %v1072_v43, %v682_v17  ;;  %v1592_v37 = vmul.f32 %v4843_v22, %v5853_v57  ;;  %v1202_v34 = vadd.f32 %v1074_v24, %v684_v46 }
 0x28e   :  { %1281 = vperm.xlu1 %4448, %v5633_v30   ;;  %v7623_v30 = vld [vmem:[#allocation25_spill] sm:$0xff]  ;;  %v556_v20 = vmul.f32 %v4826_v1, %v5927_v54  ;;  %v982_v17 = vmul.f32 %v4829_v5, %v5169_v61 }
 0x28f   :  { %v457_v35 = vmul.f32 %v4824_v63, %v7623_v30  ;;  %v458_v49 = vmul.f32 %v4826_v1, %v7623_v30  ;;  %v1718_v40 = vadd.f32 %v1590_v25, %v1200_v48  ;;  %v592_v30 = vadd.f32 %v4831_v6, %v459_v51  ;;  %v5960_v51 = vpop.f32.mrf.mxu1 }
 0x290   :  { %v1262_v9 = vpop.permute.xlu1 %1261  ;;  %v5923_v4 = vpop.permute.xlu2 %183  ;;  %v689_v24 = vadd.f32 %v4837_v14, %v556_v20  ;;  %v1720_v48 = vadd.f32 %v1592_v37, %v1202_v34  ;;  %7624 = vst [vmem:[#allocation25_spill] sm:$0xff] %v5960_v51  ;;  %v1501_v34 = vmul.f32 %v4850_v33, %v5862_v29  ;;  %v5974_v37 = vld [vmem:[%s7504_s0 + $0x98] sm:$0xff] }
 0x291   :  { %v590_v43 = vadd.f32 %v4831_v6, %v457_v35  ;;  %v591_v57 = vadd.f32 %v4837_v14, %v458_v49  ;;  %v2236_v35 = vadd.f32 %v2108_v50, %v1718_v40  ;;  %v1498_v46 = vmul.f32 %v4843_v22, %v1262_v9 }
 0x292   :  { %v1500_v40 = vmul.f32 %v4843_v22, %v5862_v29 }
 0x293   :  { %v1108_v25 = vadd.f32 %v980_v18, %v590_v43  ;;  %v1109_v20 = vadd.f32 %v981_v62, %v591_v57  ;;  %v1110_v18 = vadd.f32 %v982_v17, %v592_v30  ;;  %v2016_v17 = vmul.f32 %v4862_v55, %v5875_v12 }
 0x294   :  { %v2017_v62 = vmul.f32 %v4872_v2, %v5875_v12  ;;  %v2365_v30 = vmax.f32 %v5912_v7, 0.0  ;;  %v2364_v29 = vmax.f32 %v2236_v35, 0.0 }
 0x295   :  { %1795 = vperm.xlu2 %4451, %v5841_v36   ;;  %v593_v36 = vadd.f32 %v4837_v14, %v460_v59  ;;  %v1626_v57 = vadd.f32 %v1498_v46, %v1108_v25 }
 0x296   :  { %4452 = vset.pattern.permute.xlu1 %v7593_v41 }
 0x297   :  { %1983 = vperm.xlu1 %4452, %v5848_v53   ;;  %v1499_v53 = vmul.f32 %v4850_v33, %v1262_v9  ;;  %v1111_v9 = vadd.f32 %v983_v10, %v593_v36  ;;  %v2144_v46 = vadd.f32 %v2016_v17, %v1626_v57  ;;  %v554_v17 = vmul.f32 %v4826_v1, %v5897_v32 }
 0x299   :  { %v1968_v28 = vpop.permute.xlu1 %1967  ;;  %v5958_v19 = vpop.permute.xlu2 %939  ;;  %v1627_v51 = vadd.f32 %v1499_v53, %v1109_v20  ;;  %v1629_v12 = vadd.f32 %v1501_v34, %v1111_v9 }
 0x29a   :  { %v2110_v49 = vmul.f32 %v4862_v55, %v1968_v28  ;;  %v2111_v61 = vmul.f32 %v4872_v2, %v1968_v28  ;;  %v1079_v59 = vmul.f32 %v4835_v13, %v5958_v19  ;;  %v5994_v53 = vpop.f32.mrf.mxu1 }
 0x29b   :  { %v2145_v7 = vadd.f32 %v2017_v62, %v1627_v51 }
 0x29c   :  { %v2238_v50 = vadd.f32 %v2110_v49, %v1720_v48  ;;  %v2239_v28 = vadd.f32 %v2111_v61, %v5891_v52  ;;  %v5977_v43 = vadd.f32 %v1079_v59, %v689_v24  ;;  %v1628_v24 = vadd.f32 %v1500_v40, %v1110_v18 }
 0x29d   :  { %4454 = vset.pattern.permute.xlu2 %v7596_v26  ;;  %v2273_v40 = vmax.f32 %v2145_v7, 0.0 }
 0x29e   :  { %v2367_v60 = vmax.f32 %v2239_v28, 0.0  ;;  %203 = vperm.xlu2 %4454, %v5974_v37   ;;  %v2366_v10 = vmax.f32 %v2238_v50, 0.0 }
 0x29f   :  { %4453 = vset.pattern.permute.xlu1 %v7596_v26 }
 0x2a0   :  { %198 = vperm.xlu1 %4453, %v5907_v56   ;;  %v2434_v52 = vpack.c.bf16 %v2366_v10, %v2364_v29  ;;  %v5988_v36 = vpack.c.bf16 %v2367_v60, %v2365_v30  ;;  %v2272_v60 = vmax.f32 %v2144_v46, 0.0  ;;  %v687_v29 = vadd.f32 %v4837_v14, %v554_v17 }
 0x2a1   :  { %v1784_v48 = vpop.permute.xlu1 %1783  ;;  %v464_v17 = vmul.f32 %v4826_v1, %v5923_v4 }
 0x2a2   :  { %v2018_v49 = vmul.f32 %v4862_v55, %v1784_v48  ;;  %v2019_v25 = vmul.f32 %v4872_v2, %v1784_v48  ;;  %2725 = vmatmul.bf16.gmra.mxu2 %v2434_v52  ;;  %v5992_v35 = vpop.permute.xlu2 %1453  ;;  %v6002_v28 = vpop.f32.mrf.mxu1 }
 0x2a3   :  { %7625 = vst [vmem:[#allocation50_spill] sm:$0xff] %v6002_v28  ;;  %v1595_v57 = vmul.f32 %v4850_v33, %v5992_v35 }
 0x2a4   :  { %v2146_v61 = vadd.f32 %v2018_v49, %v1628_v24  ;;  %v2147_v59 = vadd.f32 %v2019_v25, %v1629_v12  ;;  %v555_v49 = vmul.f32 %v4824_v63, %v5927_v54  ;;  %v6036_v25 = vld [vmem:[%s7504_s0 + $0xb8] sm:$0xff]  ;;  %v1078_v54 = vmul.f32 %v4829_v5, %v5958_v19 }
 0x2a5   :  { %v463_v19 = vmul.f32 %v4824_v63, %v5923_v4 }
 0x2a6   :  { %v2275_v20 = vmax.f32 %v2147_v59, 0.0  ;;  %4456 = vset.pattern.permute.xlu2 %v7600_v47  ;;  %v2274_v18 = vmax.f32 %v2146_v61, 0.0  ;;  %v688_v61 = vadd.f32 %v4831_v6, %v555_v49 }
 0x2a7   :  { %771 = vperm.xlu2 %4456, %v5974_v37  }
 0x2a8   :  { %4455 = vset.pattern.permute.xlu1 %v7600_v47  ;;  %v2388_v51 = vpack.c.bf16 %v2274_v18, %v2272_v60  ;;  %v2389_v34 = vpack.c.bf16 %v2275_v20, %v2273_v40  ;;  %v6055_v40 = vpop.permute.xlu0 %418 }
 0x2a9   :  { %767 = vperm.xlu1 %4455, %v5907_v56   ;;  %v558_v49 = vmul.f32 %v4826_v1, %v6055_v40 }
 0x2aa   :  { %2610 = vmatmul.bf16.gmra.mxu0 %v2388_v51  ;;  %2779 = vmatmul.bf16.gmra.mxu1 %v2389_v34  ;;  %v179_v9 = vpop.permute.xlu1 %178  ;;  %v6000_v50 = vpop.permute.xlu2 %1269 }
 0x2ab   :  { %v6014_v24 = vpop.f32.mrf.mxu1 }
 0x2ac   :  { %7626 = vst [vmem:[#allocation51_spill] sm:$0xff] %v6014_v24 }
 0x2af   :  { %4458 = vset.pattern.permute.xlu2 %v7593_v41 }
 0x2b0   :  { %1803 = vperm.xlu2 %4458, %v5907_v56   ;;  %v6022_v56 = vld [vmem:[%s7504_s0 + $0xc8] sm:$0xff] }
 0x2b1   :  { %4457 = vset.pattern.permute.xlu1 %v7594_v8  ;;  %1313 = vperm.xlu0 %4474, %v6022_v56  }
 0x2b2   :  { %1289 = vperm.xlu1 %4457, %v5974_v37  }
 0x2b3   :  { %v936_v62 = vpop.permute.xlu1 %935  ;;  %v1976_v30 = vpop.permute.xlu2 %1975 }
 0x2b4   :  { %v1077_v10 = vmul.f32 %v4835_v13, %v936_v62  ;;  %v6039_v46 = vpop.f32.mrf.mxu1  ;;  %v1076_v60 = vmul.f32 %v4829_v5, %v936_v62  ;;  %v2114_v4 = vmul.f32 %v4862_v55, %v1976_v30 }
 0x2b5   :  { %7627 = vst [vmem:[#allocation52_spill] sm:$0xff] %v6039_v46 }
 0x2b6   :  { %v1205_v52 = vadd.f32 %v1077_v10, %v687_v29  ;;  %v461_v29 = vmul.f32 %v4824_v63, %v179_v9  ;;  %v462_v10 = vmul.f32 %v4826_v1, %v179_v9  ;;  %v597_v9 = vadd.f32 %v4837_v14, %v464_v17 }
 0x2b8   :  { %4460 = vset.pattern.permute.xlu2 %v7596_v26  ;;  %v6017_v12 = vadd.f32 %v1595_v57, %v1205_v52  ;;  %v1594_v57 = vmul.f32 %v4843_v22, %v5992_v35  ;;  %v1206_v52 = vadd.f32 %v1078_v54, %v688_v61  ;;  %v596_v35 = vadd.f32 %v4831_v6, %v463_v19 }
 0x2b9   :  { %208 = vperm.xlu2 %4460, %v5642_v23   ;;  %4479 = vset.pattern.permute.xlu0 %v7600_v47  ;;  %v594_v54 = vadd.f32 %v4831_v6, %v461_v29 }
 0x2ba   :  { %4459 = vset.pattern.permute.xlu1 %v7593_v41  ;;  %787 = vperm.xlu0 %4479, %v6036_v25  }
 0x2bb   :  { %1807 = vperm.xlu1 %4459, %v5974_v37   ;;  %v756_v48 = vpop.permute.xlu1 %755  ;;  %v6028_v7 = vpop.permute.xlu2 %1791  ;;  %v553_v37 = vmul.f32 %v4824_v63, %v5897_v32  ;;  %v2115_v32 = vmul.f32 %v4872_v2, %v1976_v30  ;;  %v1504_v30 = vmul.f32 %v4843_v22, %v5516_v39 }
 0x2bc   :  { %v987_v46 = vmul.f32 %v4835_v13, %v756_v48  ;;  %v6082_v61 = vpop.f32.mrf.mxu1 }
 0x2bd   :  { %v686_v51 = vadd.f32 %v4831_v6, %v553_v37  ;;  %7628 = vst [vmem:[#allocation53_spill] sm:$0xff] %v6082_v61 }
 0x2bf   :  { %v1204_v37 = vadd.f32 %v1076_v60, %v686_v51  ;;  %v595_v60 = vadd.f32 %v4837_v14, %v462_v10 }
 0x2c1   :  { %4462 = vset.pattern.permute.xlu2 %v7600_v47  ;;  %v1722_v19 = vadd.f32 %v1594_v57, %v1204_v37 }
 0x2c2   :  { %779 = vperm.xlu2 %4462, %v5867_v27  }
 0x2c3   :  { %4461 = vset.pattern.permute.xlu1 %v7600_v47 }
 0x2c4   :  { %775 = vperm.xlu1 %4461, %v5642_v23   ;;  %v1458_v59 = vpop.permute.xlu1 %1457  ;;  %v6050_v20 = vpop.permute.xlu2 %188 }
 0x2c5   :  { %v1597_v18 = vmul.f32 %v4850_v33, %v1458_v59  ;;  %v1596_v34 = vmul.f32 %v4843_v22, %v1458_v59  ;;  %v986_v59 = vmul.f32 %v4829_v5, %v756_v48  ;;  %v985_v48 = vmul.f32 %v4835_v13, %v5188_v15 }
 0x2c7   :  { %v1725_v62 = vadd.f32 %v1597_v18, %v5977_v43  ;;  %v1724_v28 = vadd.f32 %v1596_v34, %v1206_v52  ;;  %v984_v43 = vmul.f32 %v4829_v5, %v5188_v15  ;;  %v1505_v18 = vmul.f32 %v4850_v33, %v5516_v39 }
 0x2c8   :  { %v1114_v51 = vadd.f32 %v986_v59, %v596_v35  ;;  %v1115_v34 = vadd.f32 %v987_v46, %v597_v9  ;;  %v1502_v39 = vmul.f32 %v4843_v22, %v6000_v50  ;;  %v1503_v46 = vmul.f32 %v4850_v33, %v6000_v50 }
 0x2c9   :  { %v2243_v24 = vadd.f32 %v2115_v32, %v1725_v62  ;;  %v691_v32 = vadd.f32 %v4837_v14, %v558_v49  ;;  %v2242_v52 = vadd.f32 %v2114_v4, %v1724_v28  ;;  %v1112_v49 = vadd.f32 %v984_v43, %v594_v54  ;;  %v6112_v4 = vld [vmem:[%s7504_s0 + $0xb0] sm:$0xff] }
 0x2ca   :  { %4464 = vset.pattern.permute.xlu2 %v7594_v8  ;;  %v1632_v35 = vadd.f32 %v1504_v30, %v1114_v51  ;;  %v1633_v9 = vadd.f32 %v1505_v18, %v1115_v34  ;;  %v2023_v28 = vmul.f32 %v4872_v2, %v6028_v7 }
 0x2cb   :  { %1297 = vperm.xlu2 %4464, %v5867_v27   ;;  %v2370_v54 = vmax.f32 %v2242_v52, 0.0 }
 0x2cc   :  { %4463 = vset.pattern.permute.xlu1 %v7594_v8  ;;  %v2151_v34 = vadd.f32 %v2023_v28, %v1633_v9  ;;  %v1083_v9 = vmul.f32 %v4835_v13, %v5213_v11 }
 0x2cd   :  { %1293 = vperm.xlu1 %4463, %v5642_v23   ;;  %v1972_v15 = vpop.permute.xlu1 %1971  ;;  %v6092_v17 = vpop.permute.xlu2 %943  ;;  %v1113_v23 = vadd.f32 %v985_v48, %v595_v60  ;;  %v2371_v48 = vmax.f32 %v2243_v24, 0.0  ;;  %v1630_v60 = vadd.f32 %v1502_v39, %v1112_v49 }
 0x2ce   :  { %v2112_v29 = vmul.f32 %v4862_v55, %v1972_v15  ;;  %v2113_v62 = vmul.f32 %v4872_v2, %v1972_v15  ;;  %v1081_v10 = vmul.f32 %v4835_v13, %v6092_v17  ;;  %v2022_v15 = vmul.f32 %v4862_v55, %v6028_v7 }
 0x2cf   :  { %v2279_v52 = vmax.f32 %v2151_v34, 0.0  ;;  %v4296_v34 = vld [vmem:[%s7509_s5 + $0x20] sm:$0xff] }
 0x2d0   :  { %v2240_v57 = vadd.f32 %v2112_v29, %v1722_v19  ;;  %v2241_v37 = vadd.f32 %v2113_v62, %v6017_v12  ;;  %v6103_v59 = vadd.f32 %v1081_v10, %v691_v32  ;;  %v1631_v32 = vadd.f32 %v1503_v46, %v1113_v23  ;;  %v6124_v29 = vpop.f32.mrf.mxu1 }
 0x2d1   :  { %v2150_v18 = vadd.f32 %v2022_v15, %v1632_v35  ;;  %7629 = vst [vmem:[#allocation54_spill] sm:$0xff] %v6124_v29 }
 0x2d2   :  { %v2369_v50 = vmax.f32 %v2241_v37, 0.0  ;;  %v2368_v43 = vmax.f32 %v2240_v57, 0.0 }
 0x2d3   :  { %4467 = vset.pattern.permute.xlu2 %v7596_v26  ;;  %v2278_v46 = vmax.f32 %v2150_v18, 0.0  ;;  %v4297_v18 = vld [vmem:[%s7509_s5 + $0x28] sm:$0xff] }
 0x2d4   :  { %v2436_v12 = vpack.c.bf16 %v2370_v54, %v2368_v43  ;;  %218 = vperm.xlu2 %4467, %v6112_v4   ;;  %v6116_v30 = vpack.c.bf16 %v2371_v48, %v2369_v50  ;;  %v4299_v43 = vld [vmem:[%s7509_s5 + $0x38] sm:$0xff] }
 0x2d5   :  { %4466 = vset.pattern.permute.xlu1 %v7593_v41  ;;  %v1788_v7 = vpop.permute.xlu1 %1787  ;;  %v6119_v51 = vpop.permute.xlu2 %763  ;;  %3074 = vmatpush.bf16.msrb.mxu2 %v4299_v43 }
 0x2d6   :  { %v2020_v19 = vmul.f32 %v4862_v55, %v1788_v7  ;;  %v2021_v24 = vmul.f32 %v4872_v2, %v1788_v7  ;;  %1815 = vperm.xlu1 %4466, %v5867_v27   ;;  %2730 = vmatmul.bf16.gmra.mxu2 %v2436_v12  ;;  %v4298_v12 = vld [vmem:[%s7509_s5 + $0x30] sm:$0xff] }
 0x2d8   :  { %v2148_v62 = vadd.f32 %v2020_v19, %v1630_v60  ;;  %v2149_v10 = vadd.f32 %v2021_v24, %v1631_v32  ;;  %v6138_v15 = vpop.f32.mrf.mxu1 }
 0x2d9   :  { %7630 = vst [vmem:[#allocation55_spill] sm:$0xff] %v6138_v15  ;;  %3075 = vmatpush.bf16.msrb.mxu2 %v4298_v12 }
 0x2da   :  { %v2277_v49 = vmax.f32 %v2149_v10, 0.0  ;;  %v2276_v39 = vmax.f32 %v2148_v62, 0.0  ;;  %v4295_v62 = vld [vmem:[%s7509_s5 + $0x18] sm:$0xff]  ;;  %v465_v10 = vmul.f32 %v4824_v63, %v6050_v20 }
 0x2dc   :  { %v2390_v23 = vpack.c.bf16 %v2278_v46, %v2276_v39  ;;  %v2391_v57 = vpack.c.bf16 %v2279_v52, %v2277_v49  ;;  %4469 = vset.pattern.permute.xlu2 %v7600_v47  ;;  %v466_v52 = vmul.f32 %v4826_v1, %v6050_v20  ;;  %v6187_v39 = vpop.f32.mrf.mxu0 }
 0x2dd   :  { %783 = vperm.xlu2 %4469, %v6112_v4   ;;  %3076 = vmatpush.bf16.msrb.mxu2 %v4297_v18 }
 0x2de   :  { %4468 = vset.pattern.permute.xlu1 %v7596_v26  ;;  %2615 = vmatmul.bf16.gmra.mxu0 %v2390_v23  ;;  %v6129_v37 = vpop.permute.xlu1 %423  ;;  %v6131_v27 = vpop.permute.xlu2 %1465  ;;  %v598_v23 = vadd.f32 %v4831_v6, %v465_v10  ;;  %v1507_v10 = vmul.f32 %v4850_v33, %v5532_v21 }
 0x2df   :  { %2784 = vmatmul.bf16.gmra.mxu1 %v2391_v57  ;;  %v560_v35 = vmul.f32 %v4826_v1, %v6129_v37  ;;  %223 = vperm.xlu1 %4468, %v6036_v25   ;;  %v1601_v50 = vmul.f32 %v4850_v33, %v6131_v27  ;;  %v599_v57 = vadd.f32 %v4837_v14, %v466_v52 }
 0x2e0   :  { %v6160_v7 = vpop.f32.mrf.mxu1  ;;  %v557_v52 = vmul.f32 %v4824_v63, %v6055_v40  ;;  %v6231_v40 = vld [vmem:[%s7504_s0 + $0xd8] sm:$0xff] }
 0x2e1   :  { %v693_v28 = vadd.f32 %v4837_v14, %v560_v35  ;;  %7631 = vst [vmem:[#allocation56_spill] sm:$0xff] %v6160_v7  ;;  %3077 = vmatpush.bf16.msrb.mxu2 %v4296_v34 }
 0x2e3   :  { %v1211_v54 = vadd.f32 %v1083_v9, %v693_v28  ;;  %v4293_v28 = vld [vmem:[%s7509_s5 + $0x8] sm:$0xff] }
 0x2e5   :  { %v6146_v48 = vadd.f32 %v1601_v50, %v1211_v54  ;;  %4471 = vset.pattern.permute.xlu2 %v7594_v8  ;;  %3078 = vmatpush.bf16.msrb.mxu2 %v4295_v62  ;;  %v1506_v62 = vmul.f32 %v4843_v22, %v5532_v21  ;;  %v2026_v21 = vmul.f32 %v4862_v55, %v5881_v45 }
 0x2e6   :  { %v194_v60 = vpop.permute.xlu1 %193  ;;  %1305 = vperm.xlu2 %4471, %v6036_v25  }
 0x2e7   :  { %4470 = vset.pattern.permute.xlu1 %v7594_v8  ;;  %v6154_v32 = vpop.permute.xlu2 %1979  ;;  %v467_v50 = vmul.f32 %v4824_v63, %v194_v60  ;;  %v468_v43 = vmul.f32 %v4826_v1, %v194_v60  ;;  %v990_v60 = vmul.f32 %v4829_v5, %v6119_v51 }
 0x2e8   :  { %1301 = vperm.xlu1 %4470, %v6112_v4   ;;  %v6176_v49 = vpop.f32.mrf.mxu1  ;;  %v2117_v54 = vmul.f32 %v4872_v2, %v6154_v32 }
 0x2e9   :  { %7632 = vst [vmem:[#allocation57_spill] sm:$0xff] %v6176_v49 }
 0x2ee   :  { %4473 = vset.pattern.permute.xlu2 %v7593_v41 }
 0x2ef   :  { %v760_v19 = vpop.permute.xlu1 %759  ;;  %1823 = vperm.xlu2 %4473, %v6036_v25   ;;  %v1796_v24 = vpop.permute.xlu2 %1795  ;;  %v6181_v25 = vld [vmem:[%s7504_s0 + $0xd0] sm:$0xff] }
 0x2f0   :  { %4472 = vset.pattern.permute.xlu1 %v7593_v41  ;;  %799 = vperm.xlu0 %4479, %v6181_v25   ;;  %v988_v46 = vmul.f32 %v4829_v5, %v760_v19  ;;  %v989_v20 = vmul.f32 %v4835_v13, %v760_v19 }
 0x2f1   :  { %1819 = vperm.xlu1 %4472, %v6112_v4   ;;  %v4294_v4 = vld [vmem:[%s7509_s5 + $0x10] sm:$0xff] }
 0x2f2   :  { %3079 = vmatpush.bf16.msrb.mxu2 %v4294_v4  ;;  %v1116_v18 = vadd.f32 %v988_v46, %v598_v23  ;;  %v1117_v34 = vadd.f32 %v989_v20, %v599_v57  ;;  %v6216_v4 = vpop.f32.mrf.mxu1  ;;  %v991_v46 = vmul.f32 %v4835_v13, %v6119_v51  ;;  %v601_v20 = vadd.f32 %v4837_v14, %v468_v43  ;;  %v4292_v51 = vld [vmem:[%s7509_s5] sm:$0xff] }
 0x2f3   :  { %v559_v57 = vmul.f32 %v4824_v63, %v6129_v37  ;;  %v2024_v43 = vmul.f32 %v4862_v55, %v1796_v24  ;;  %v2027_v37 = vmul.f32 %v4872_v2, %v5881_v45  ;;  %v2583_v45 = vpop.f32.mrf.mxu0 }
 0x2f5   :  { %v692_v7 = vadd.f32 %v4831_v6, %v559_v57  ;;  %v1600_v57 = vmul.f32 %v4843_v22, %v6131_v27 }
 0x2f6   :  { %3080 = vmatpush.bf16.msrb.mxu2 %v4293_v28  ;;  %v1634_v28 = vadd.f32 %v1506_v62, %v1116_v18 }
 0x2f7   :  { %4476 = vset.pattern.permute.xlu2 %v7600_v47 }
 0x2f8   :  { %v1462_v35 = vpop.permute.xlu1 %1461  ;;  %791 = vperm.xlu2 %4476, %v5886_v38   ;;  %v6195_v9 = vpop.permute.xlu2 %203  ;;  %4488 = vset.pattern.permute.xlu0 %v7593_v41 }
 0x2f9   :  { %v1599_v12 = vmul.f32 %v4850_v33, %v1462_v35  ;;  %4475 = vset.pattern.permute.xlu1 %v7596_v26  ;;  %1839 = vperm.xlu0 %4488, %v6231_v40  }
 0x2fa   :  { %233 = vperm.xlu1 %4475, %v6022_v56   ;;  %3081 = vmatpush.bf16.msrb.mxu2 %v4292_v51 }
 0x2fb   :  { %v1727_v19 = vadd.f32 %v1599_v12, %v6103_v59  ;;  %v600_v59 = vadd.f32 %v4831_v6, %v467_v50  ;;  %v1635_v50 = vadd.f32 %v1507_v10, %v1117_v34  ;;  %v1080_v12 = vmul.f32 %v4829_v5, %v6092_v17 }
 0x2fc   :  { %v1119_v34 = vadd.f32 %v991_v46, %v601_v20  ;;  %v1598_v17 = vmul.f32 %v4843_v22, %v1462_v35  ;;  %v2116_v35 = vmul.f32 %v4862_v55, %v6154_v32 }
 0x2fd   :  { %v6222_v23 = vadd.f32 %v2117_v54, %v1727_v19  ;;  %v2025_v54 = vmul.f32 %v4872_v2, %v1796_v24  ;;  %v690_v19 = vadd.f32 %v4831_v6, %v557_v52  ;;  %v1118_v18 = vadd.f32 %v990_v60, %v600_v59 }
 0x2fe   :  { %v2152_v52 = vadd.f32 %v2024_v43, %v1634_v28  ;;  %v2752_v28 = vpop.f32.mrf.mxu1 }
 0x2ff   :  { %v2153_v15 = vadd.f32 %v2025_v54, %v1635_v50  ;;  %v1208_v46 = vadd.f32 %v1080_v12, %v690_v19 }
 0x300   :  { %v1282_v49 = vpop.permute.xlu1 %1281  ;;  %4478 = vset.pattern.permute.xlu2 %v7594_v8  ;;  %v2280_v43 = vmax.f32 %v2152_v52, 0.0 }
 0x301   :  { %v1508_v62 = vmul.f32 %v4843_v22, %v1282_v49  ;;  %v1509_v24 = vmul.f32 %v4850_v33, %v1282_v49  ;;  %1309 = vperm.xlu2 %4478, %v5886_v38   ;;  %v6249_v10 = vpop.permute.xlu2 %771  ;;  %v1082_v49 = vmul.f32 %v4829_v5, %v5213_v11  ;;  %v1726_v61 = vadd.f32 %v1598_v17, %v1208_v46 }
 0x302   :  { %4477 = vset.pattern.permute.xlu1 %v7600_v47  ;;  %v2281_v50 = vmax.f32 %v2153_v15, 0.0  ;;  %4493 = vset.pattern.permute.xlu0 %v7594_v8 }
 0x303   :  { %v1636_v51 = vadd.f32 %v1508_v62, %v1118_v18  ;;  %v1637_v60 = vadd.f32 %v1509_v24, %v1119_v34  ;;  %795 = vperm.xlu1 %4477, %v6022_v56   ;;  %v1210_v29 = vadd.f32 %v1082_v49, %v692_v7  ;;  %v2586_v7 = vpop.f32.mrf.mxu0  ;;  %v2244_v32 = vadd.f32 %v2116_v35, %v1726_v61 }
 0x304   :  { %v2373_v61 = vmax.f32 %v6222_v23, 0.0 }
 0x305   :  { %v2155_v59 = vadd.f32 %v2027_v37, %v1637_v60  ;;  %v2154_v20 = vadd.f32 %v2026_v21, %v1636_v51  ;;  %v1728_v21 = vadd.f32 %v1600_v57, %v1210_v29  ;;  %v6271_v29 = vpop.permute.xlu0 %213  ;;  %v2372_v17 = vmax.f32 %v2244_v32, 0.0  ;;  %v6277_v60 = vld [vmem:[%s7504_s0 + $0xe0] sm:$0xff] }
 0x306   :  { %v2755_v51 = vpop.f32.mrf.mxu1  ;;  %1325 = vperm.xlu0 %4493, %v6277_v60  }
 0x307   :  { %v2282_v54 = vmax.f32 %v2154_v20, 0.0  ;;  %v2283_v18 = vmax.f32 %v2155_v59, 0.0 }
 0x309   :  { %v1984_v34 = vpop.permute.xlu1 %1983  ;;  %v2392_v11 = vpack.c.bf16 %v2282_v54, %v2280_v43  ;;  %v2393_v12 = vpack.c.bf16 %v2283_v18, %v2281_v50  ;;  %4481 = vset.pattern.permute.xlu2 %v7593_v41 }
 0x30a   :  { %v2118_v27 = vmul.f32 %v4862_v55, %v1984_v34  ;;  %v2119_v37 = vmul.f32 %v4872_v2, %v1984_v34  ;;  %1831 = vperm.xlu2 %4481, %v6022_v56   ;;  %v6267_v15 = vpop.permute.xlu2 %1803 }
 0x30b   :  { %4480 = vset.pattern.permute.xlu1 %v7593_v41  ;;  %2620 = vmatmul.bf16.gmra.mxu0 %v2392_v11  ;;  %v2588_v46 = vpop.f32.mrf.mxu0 }
 0x30c   :  { %v2246_v19 = vadd.f32 %v2118_v27, %v1728_v21  ;;  %v2247_v62 = vadd.f32 %v2119_v37, %v6146_v48  ;;  %2789 = vmatmul.bf16.gmra.mxu1 %v2393_v12  ;;  %1827 = vperm.xlu1 %4480, %v5886_v38   ;;  %v6285_v38 = vld [vmem:[%s7508_s4] ss:$0 sm:$0xff] }
 0x30d   :  { %v2584_v23 = vadd.f32 %v6285_v38, %v2583_v45  ;;  %v2582_v20 = vadd.f32 %v6285_v38, %v6187_v39  ;;  %v6296_v35 = vpop.permute.xlu0 %228  ;;  %v2587_v32 = vadd.f32 %v6285_v38, %v2586_v7 }
 0x30e   :  { %v2375_v24 = vmax.f32 %v2247_v62, 0.0  ;;  %v2374_v52 = vmax.f32 %v2246_v19, 0.0  ;;  %v2757_v50 = vpop.f32.mrf.mxu1  ;;  %4498 = vset.pattern.permute.xlu0 %v7596_v26  ;;  %v2589_v19 = vadd.f32 %v6285_v38, %v2588_v46 }
 0x30f   :  { %v2753_v57 = vadd.f32 %v2752_v28, %v2584_v23  ;;  %v2751_v43 = vadd.f32 %v6216_v4, %v2582_v20  ;;  %v2756_v20 = vadd.f32 %v2755_v51, %v2587_v32 }
 0x310   :  { %v2438_v56 = vpack.c.bf16 %v2374_v52, %v2372_v17  ;;  %v6279_v49 = vpack.c.bf16 %v2375_v24, %v2373_v61  ;;  %v471_v17 = vmul.f32 %v4824_v63, %v6195_v9  ;;  %v472_v52 = vmul.f32 %v4826_v1, %v6195_v9 }
 0x311   :  { %v2911_v45 = vmax.f32 %v2753_v57, 0.0  ;;  %v2910_v34 = vmax.f32 %v2751_v43, 0.0  ;;  %v2758_v57 = vadd.f32 %v2757_v50, %v2589_v19  ;;  %v2912_v32 = vmax.f32 %v2756_v20, 0.0 }
 0x312   :  { %2735 = vmatmul.bf16.gmra.mxu2 %v2438_v56  ;;  %v199_v48 = vpop.permute.xlu1 %198  ;;  %4483 = vset.pattern.permute.xlu2 %v7596_v26  ;;  %v604_v9 = vadd.f32 %v4831_v6, %v471_v17  ;;  %v605_v43 = vadd.f32 %v4837_v14, %v472_v52 }
 0x313   :  { %243 = vperm.xlu2 %4483, %v6231_v40   ;;  %v6292_v59 = vpop.permute.xlu2 %208  ;;  %v6301_v18 = vpop.f32.mrf.mxu0  ;;  %v469_v39 = vmul.f32 %v4824_v63, %v199_v48  ;;  %v470_v28 = vmul.f32 %v4826_v1, %v199_v48  ;;  %v2974_v4 = vpack.c.bf16 %v2911_v45, %v2910_v34  ;;  %v995_v45 = vmul.f32 %v4835_v13, %v6249_v10 }
 0x314   :  { %4482 = vset.pattern.permute.xlu1 %v7596_v26  ;;  %v2029_v34 = vmul.f32 %v4872_v2, %v6267_v15 }
 0x315   :  { %238 = vperm.xlu1 %4482, %v6181_v25   ;;  %v1286_v37 = vpop.permute.xlu0 %1285  ;;  %v602_v62 = vadd.f32 %v4831_v6, %v469_v39  ;;  %v603_v24 = vadd.f32 %v4837_v14, %v470_v28 }
 0x316   :  { %v6310_v12 = vpop.f32.mrf.mxu1  ;;  %v1510_v23 = vmul.f32 %v4843_v22, %v1286_v37  ;;  %v1511_v7 = vmul.f32 %v4850_v33, %v1286_v37  ;;  %v1123_v37 = vadd.f32 %v995_v45, %v605_v43 }
 0x31b   :  { %v768_v54 = vpop.permute.xlu1 %767  ;;  %4485 = vset.pattern.permute.xlu2 %v7594_v8  ;;  %v2593_v46 = vpop.f32.mrf.mxu0 }
 0x31c   :  { %1317 = vperm.xlu2 %4485, %v6181_v25   ;;  %v6308_v11 = vpop.permute.xlu2 %779  ;;  %v992_v21 = vmul.f32 %v4829_v5, %v768_v54  ;;  %v993_v27 = vmul.f32 %v4835_v13, %v768_v54  ;;  %v994_v54 = vmul.f32 %v4829_v5, %v6249_v10  ;;  %v2913_v10 = vmax.f32 %v2758_v57, 0.0 }
 0x31d   :  { %4484 = vset.pattern.permute.xlu1 %v7600_v47  ;;  %v2594_v45 = vadd.f32 %v6285_v38, %v2593_v46 }
 0x31e   :  { %803 = vperm.xlu1 %4484, %v6231_v40   ;;  %v1120_v56 = vadd.f32 %v992_v21, %v602_v62  ;;  %v1121_v48 = vadd.f32 %v993_v27, %v603_v24  ;;  %v6345_v21 = vld [vmem:[%s7504_s0 + $0xe8] sm:$0xff]  ;;  %v1122_v27 = vadd.f32 %v994_v54, %v604_v9  ;;  %v6358_v54 = vld [vmem:[%s7504_s0 + $0xf8] sm:$0xff] }
 0x31f   :  { %263 = vperm.xlu0 %4498, %v6358_v54  }
 0x320   :  { %v1638_v51 = vadd.f32 %v1510_v23, %v1120_v56  ;;  %v1639_v50 = vadd.f32 %v1511_v7, %v1121_v48  ;;  %v2975_v7 = vpack.c.bf16 %v2913_v10, %v2912_v32  ;;  %v475_v32 = vmul.f32 %v4824_v63, %v6271_v29 }
 0x322   :  { %3082 = vmatmul.bf16.vlgmr.msrb.gmra.mxu2 %v2974_v4  ;;  %v2762_v4 = vpop.f32.mrf.mxu1  ;;  %v2157_v19 = vadd.f32 %v2029_v34, %v1639_v50 }
 0x323   :  { %v6348_v24 = vpop.f32.mrf.mxu0  ;;  %v2763_v10 = vadd.f32 %v2762_v4, %v2594_v45  ;;  %v476_v4 = vmul.f32 %v4826_v1, %v6271_v29 }
 0x324   :  { %v1290_v61 = vpop.permute.xlu1 %1289  ;;  %4487 = vset.pattern.permute.xlu2 %v7593_v41  ;;  %v2285_v43 = vmax.f32 %v2157_v19, 0.0  ;;  %v473_v19 = vmul.f32 %v4824_v63, %v6292_v59 }
 0x325   :  { %1835 = vperm.xlu2 %4487, %v6181_v25   ;;  %v2028_v25 = vmul.f32 %v4862_v55, %v6267_v15  ;;  %v6338_v39 = vpop.permute.xlu2 %1297  ;;  %v1513_v28 = vmul.f32 %v4850_v33, %v1290_v61 }
 0x326   :  { %4486 = vset.pattern.permute.xlu1 %v7594_v8 }
 0x327   :  { %1321 = vperm.xlu1 %4486, %v6231_v40   ;;  %v1512_v40 = vmul.f32 %v4843_v22, %v1290_v61  ;;  %v2156_v62 = vadd.f32 %v2028_v25, %v1638_v51  ;;  %v1641_v52 = vadd.f32 %v1513_v28, %v1123_v37  ;;  %v2915_v37 = vmax.f32 %v2763_v10, 0.0  ;;  %4503 = vset.pattern.permute.xlu0 %v7593_v41 }
 0x328   :  { %v1516_v10 = vmul.f32 %v4843_v22, %v6338_v39 }
 0x329   :  { %v1640_v17 = vadd.f32 %v1512_v40, %v1122_v27  ;;  %v2284_v57 = vmax.f32 %v2156_v62, 0.0  ;;  %v2592_v40 = vadd.f32 %v6285_v38, %v6301_v18  ;;  %v6378_v18 = vld [vmem:[%s7504_s0 + $0xf0] sm:$0xff]  ;;  %v474_v62 = vmul.f32 %v4826_v1, %v6292_v59 }
 0x32a   :  { %v6361_v25 = vpop.f32.mrf.mxu1  ;;  %1851 = vperm.xlu0 %4503, %v6378_v18   ;;  %v999_v59 = vmul.f32 %v4835_v13, %v6308_v11 }
 0x32b   :  { %v2598_v27 = vpop.f32.mrf.mxu0  ;;  %v2761_v46 = vadd.f32 %v6310_v12, %v2592_v40 }
 0x32d   :  { %v1808_v15 = vpop.permute.xlu1 %1807  ;;  %4490 = vset.pattern.permute.xlu2 %v7596_v26  ;;  %v2914_v12 = vmax.f32 %v2761_v46, 0.0  ;;  %v1517_v46 = vmul.f32 %v4850_v33, %v6338_v39  ;;  %v6420_v39 = vpop.f32.mrf.mxu2 }
 0x32e   :  { %v2030_v61 = vmul.f32 %v4862_v55, %v1808_v15  ;;  %v2031_v56 = vmul.f32 %v4872_v2, %v1808_v15  ;;  %253 = vperm.xlu2 %4490, %v6345_v21   ;;  %v6363_v34 = vpop.permute.xlu2 %218 }
 0x32f   :  { %4489 = vset.pattern.permute.xlu1 %v7596_v26  ;;  %v2976_v29 = vpack.c.bf16 %v2915_v37, %v2914_v12 }
 0x330   :  { %v2158_v48 = vadd.f32 %v2030_v61, %v1640_v17  ;;  %v2159_v23 = vadd.f32 %v2031_v56, %v1641_v52  ;;  %248 = vperm.xlu1 %4489, %v6277_v60   ;;  %v608_v52 = vadd.f32 %v4831_v6, %v475_v32 }
 0x332   :  { %v2287_v20 = vmax.f32 %v2159_v23, 0.0  ;;  %3087 = vmatmul.bf16.gmra.mxu2 %v2975_v7  ;;  %v2286_v9 = vmax.f32 %v2158_v48, 0.0  ;;  %v2767_v15 = vpop.f32.mrf.mxu1  ;;  %v609_v7 = vadd.f32 %v4837_v14, %v476_v4  ;;  %4508 = vset.pattern.permute.xlu0 %v7600_v47  ;;  %v2597_v4 = vadd.f32 %v6285_v38, %v6348_v24 }
 0x333   :  { %v6393_v23 = vpop.f32.mrf.mxu0 }
 0x334   :  { %v2394_v51 = vpack.c.bf16 %v2286_v9, %v2284_v57  ;;  %v2395_v50 = vpack.c.bf16 %v2287_v20, %v2285_v43  ;;  %v606_v20 = vadd.f32 %v4831_v6, %v473_v19  ;;  %v998_v57 = vmul.f32 %v4829_v5, %v6308_v11 }
 0x335   :  { %v607_v9 = vadd.f32 %v4837_v14, %v474_v62  ;;  %v2033_v19 = vmul.f32 %v4872_v2, %v5901_v3  ;;  %v2766_v24 = vadd.f32 %v6361_v25, %v2597_v4 }
 0x336   :  { %2625 = vmatmul.bf16.gmra.mxu0 %v2394_v51  ;;  %2794 = vmatmul.bf16.gmra.mxu1 %v2395_v50  ;;  %v776_v28 = vpop.permute.xlu1 %775  ;;  %v2599_v51 = vadd.f32 %v6285_v38, %v2598_v27  ;;  %v1126_v11 = vadd.f32 %v998_v57, %v608_v52  ;;  %v2032_v27 = vmul.f32 %v4862_v55, %v5901_v3  ;;  %v6427_v3 = vpop.permute.xlu0 %1313 }
 0x337   :  { %4492 = vset.pattern.permute.xlu2 %v7600_v47  ;;  %v6388_v17 = vpop.permute.xlu2 %783  ;;  %v996_v61 = vmul.f32 %v4829_v5, %v776_v28  ;;  %v997_v56 = vmul.f32 %v4835_v13, %v776_v28  ;;  %v1127_v28 = vadd.f32 %v999_v59, %v609_v7 }
 0x338   :  { %4491 = vset.pattern.permute.xlu1 %v7600_v47  ;;  %811 = vperm.xlu2 %4492, %v6345_v21   ;;  %v2768_v62 = vadd.f32 %v2767_v15, %v2599_v51  ;;  %v1644_v52 = vadd.f32 %v1516_v10, %v1126_v11  ;;  %v6434_v10 = vld [vmem:[%s7504_s0 + $0x108] sm:$0xff] }
 0x339   :  { %807 = vperm.xlu1 %4491, %v6277_v60   ;;  %v1124_v50 = vadd.f32 %v996_v61, %v606_v20  ;;  %v1125_v40 = vadd.f32 %v997_v56, %v607_v9  ;;  %v1645_v61 = vadd.f32 %v1517_v46, %v1127_v28  ;;  %827 = vperm.xlu0 %4508, %v6434_v10  }
 0x33a   :  { %v2770_v37 = vpop.f32.mrf.mxu1  ;;  %v2917_v9 = vmax.f32 %v2768_v62, 0.0 }
 0x33b   :  { %v2603_v57 = vpop.f32.mrf.mxu0 }
 0x33c   :  { %v2604_v62 = vadd.f32 %v6285_v38, %v2603_v57 }
 0x33f   :  { %v1294_v48 = vpop.permute.xlu1 %1293 }
 0x340   :  { %4495 = vset.pattern.permute.xlu2 %v7593_v41  ;;  %v1514_v43 = vmul.f32 %v4843_v22, %v1294_v48  ;;  %v1515_v45 = vmul.f32 %v4850_v33, %v1294_v48  ;;  %v1306_v12 = vpop.permute.xlu2 %1305 }
 0x341   :  { %4494 = vset.pattern.permute.xlu1 %v7594_v8  ;;  %1843 = vperm.xlu2 %4495, %v6277_v60  }
 0x342   :  { %1329 = vperm.xlu1 %4494, %v6345_v21   ;;  %3092 = vmatmul.bf16.gmra.mxu2 %v2976_v29  ;;  %v1642_v32 = vadd.f32 %v1514_v43, %v1124_v50  ;;  %v1643_v60 = vadd.f32 %v1515_v45, %v1125_v40  ;;  %v2916_v40 = vmax.f32 %v2766_v24, 0.0  ;;  %v2772_v11 = vpop.f32.mrf.mxu1 }
 0x343   :  { %v2773_v24 = vadd.f32 %v2772_v11, %v2604_v62  ;;  %4513 = vset.pattern.permute.xlu0 %v7593_v41 }
 0x344   :  { %v2161_v48 = vadd.f32 %v2033_v19, %v1643_v60  ;;  %v2160_v20 = vadd.f32 %v2032_v27, %v1642_v32  ;;  %v2977_v46 = vpack.c.bf16 %v2917_v9, %v2916_v40  ;;  %v6437_v60 = vpop.f32.mrf.mxu0  ;;  %v6444_v19 = vpop.f32.mrf.mxu2  ;;  %v1520_v9 = vmul.f32 %v4843_v22, %v1306_v12 }
 0x346   :  { %v2288_v45 = vmax.f32 %v2160_v20, 0.0  ;;  %v2289_v50 = vmax.f32 %v2161_v48, 0.0 }
 0x348   :  { %v1816_v56 = vpop.permute.xlu1 %1815 }
 0x349   :  { %v2034_v29 = vmul.f32 %v4862_v55, %v1816_v56  ;;  %v2035_v7 = vmul.f32 %v4872_v2, %v1816_v56  ;;  %4497 = vset.pattern.permute.xlu2 %v7596_v26  ;;  %v1824_v32 = vpop.permute.xlu2 %1823 }
 0x34a   :  { %4496 = vset.pattern.permute.xlu1 %v7593_v41  ;;  %258 = vperm.xlu2 %4497, %v6378_v18   ;;  %v6450_v56 = vpop.f32.mrf.mxu1 }
 0x34b   :  { %v2162_v15 = vadd.f32 %v2034_v29, %v1644_v52  ;;  %v2163_v59 = vadd.f32 %v2035_v7, %v1645_v61  ;;  %1847 = vperm.xlu1 %4496, %v6345_v21   ;;  %v788_v52 = vpop.permute.xlu0 %787  ;;  %v2602_v61 = vadd.f32 %v6285_v38, %v6393_v23  ;;  %v478_v23 = vmul.f32 %v4826_v1, %v6363_v34 }
 0x34c   :  { %v1002_v7 = vmul.f32 %v4829_v5, %v788_v52  ;;  %v1003_v20 = vmul.f32 %v4835_v13, %v788_v52  ;;  %v6466_v40 = vpop.f32.mrf.mxu2  ;;  %v2608_v11 = vpop.f32.mrf.mxu0 }
 0x34d   :  { %v2291_v43 = vmax.f32 %v2163_v59, 0.0  ;;  %v2290_v51 = vmax.f32 %v2162_v15, 0.0  ;;  %v2771_v57 = vadd.f32 %v2770_v37, %v2602_v61  ;;  %v477_v15 = vmul.f32 %v4824_v63, %v6363_v34 }
 0x34e   :  { %v2919_v37 = vmax.f32 %v2773_v24, 0.0 }
 0x34f   :  { %v2396_v28 = vpack.c.bf16 %v2290_v51, %v2288_v45  ;;  %v2397_v25 = vpack.c.bf16 %v2291_v43, %v2289_v50  ;;  %v1521_v43 = vmul.f32 %v4850_v33, %v1306_v12  ;;  %v2918_v34 = vmax.f32 %v2771_v57, 0.0 }
 0x350   :  { %v611_v12 = vadd.f32 %v4837_v14, %v478_v23 }
 0x351   :  { %2630 = vmatmul.bf16.gmra.mxu0 %v2396_v28  ;;  %2799 = vmatmul.bf16.gmra.mxu1 %v2397_v25  ;;  %v224_v21 = vpop.permute.xlu1 %223  ;;  %v610_v28 = vadd.f32 %v4831_v6, %v477_v15  ;;  %v1000_v25 = vmul.f32 %v4829_v5, %v6388_v17  ;;  %v2978_v61 = vpack.c.bf16 %v2919_v37, %v2918_v34 }
 0x352   :  { %3097 = vmatmul.bf16.gmra.mxu2 %v2977_v46  ;;  %4500 = vset.pattern.permute.xlu2 %v7600_v47  ;;  %v479_v4 = vmul.f32 %v4824_v63, %v224_v21  ;;  %v480_v27 = vmul.f32 %v4826_v1, %v224_v21  ;;  %v6463_v50 = vpop.permute.xlu2 %791  ;;  %v1001_v46 = vmul.f32 %v4835_v13, %v6388_v17 }
 0x353   :  { %4499 = vset.pattern.permute.xlu1 %v7600_v47  ;;  %819 = vperm.xlu2 %4500, %v6358_v54   ;;  %v2038_v21 = vmul.f32 %v4862_v55, %v1824_v32  ;;  %v2609_v17 = vadd.f32 %v6285_v38, %v2608_v11  ;;  %v2607_v37 = vadd.f32 %v6285_v38, %v6437_v60 }
 0x354   :  { %815 = vperm.xlu1 %4499, %v6378_v18   ;;  %v612_v48 = vadd.f32 %v4831_v6, %v479_v4  ;;  %v613_v29 = vadd.f32 %v4837_v14, %v480_v27  ;;  %v2039_v4 = vmul.f32 %v4872_v2, %v1824_v32  ;;  %v2611_v15 = vpop.f32.mrf.mxu0 }
 0x356   :  { %v1130_v45 = vadd.f32 %v1002_v7, %v612_v48  ;;  %v1131_v51 = vadd.f32 %v1003_v20, %v613_v29  ;;  %v2777_v48 = vpop.f32.mrf.mxu1  ;;  %v1128_v29 = vadd.f32 %v1000_v25, %v610_v28  ;;  %v1129_v7 = vadd.f32 %v1001_v46, %v611_v12  ;;  %v6484_v20 = vld [vmem:[%s7504_s0 + $0x100] sm:$0xff] }
 0x357   :  { %v2778_v28 = vadd.f32 %v2777_v48, %v2609_v17  ;;  %v482_v17 = vmul.f32 %v4826_v1, %v6296_v35 }
 0x358   :  { %v1648_v27 = vadd.f32 %v1520_v9, %v1130_v45  ;;  %v1649_v62 = vadd.f32 %v1521_v43, %v1131_v51  ;;  %v6494_v51 = vpop.f32.mrf.mxu2 }
 0x35a   :  { %v1302_v59 = vpop.permute.xlu1 %1301  ;;  %v2166_v32 = vadd.f32 %v2038_v21, %v1648_v27  ;;  %v2167_v57 = vadd.f32 %v2039_v4, %v1649_v62  ;;  %v2776_v27 = vadd.f32 %v6450_v56, %v2607_v37  ;;  %v481_v56 = vmul.f32 %v4824_v63, %v6296_v35 }
 0x35b   :  { %4502 = vset.pattern.permute.xlu2 %v7594_v8  ;;  %v1518_v52 = vmul.f32 %v4843_v22, %v1302_v59  ;;  %v6490_v45 = vpop.permute.xlu2 %1309  ;;  %v1005_v35 = vmul.f32 %v4835_v13, %v6463_v50 }
 0x35c   :  { %4501 = vset.pattern.permute.xlu1 %v7594_v8  ;;  %1337 = vperm.xlu2 %4502, %v6358_v54   ;;  %v2294_v46 = vmax.f32 %v2166_v32, 0.0  ;;  %v2295_v21 = vmax.f32 %v2167_v57, 0.0  ;;  %v2613_v48 = vpop.f32.mrf.mxu0  ;;  %v614_v57 = vadd.f32 %v4831_v6, %v481_v56 }
 0x35d   :  { %1333 = vperm.xlu1 %4501, %v6378_v18   ;;  %v1519_v18 = vmul.f32 %v4850_v33, %v1302_v59  ;;  %v1646_v23 = vadd.f32 %v1518_v52, %v1128_v29 }
 0x35e   :  { %v2780_v4 = vpop.f32.mrf.mxu1 }
 0x35f   :  { %v1647_v9 = vadd.f32 %v1519_v18, %v1129_v7  ;;  %v2921_v18 = vmax.f32 %v2778_v28, 0.0 }
 0x360   :  { %v6501_v60 = vpop.f32.mrf.mxu2 }
 0x362   :  { %3102 = vmatmul.bf16.gmra.mxu2 %v2978_v61 }
 0x363   :  { %v1820_v24 = vpop.permute.xlu1 %1819 }
 0x364   :  { %v2036_v59 = vmul.f32 %v4862_v55, %v1820_v24  ;;  %v2037_v43 = vmul.f32 %v4872_v2, %v1820_v24  ;;  %4505 = vset.pattern.permute.xlu2 %v7596_v26  ;;  %v1832_v29 = vpop.permute.xlu2 %1831  ;;  %v2616_v37 = vpop.f32.mrf.mxu0 }
 0x365   :  { %4504 = vset.pattern.permute.xlu1 %v7593_v41  ;;  %268 = vperm.xlu2 %4505, %v6484_v20   ;;  %v2043_v56 = vmul.f32 %v4872_v2, %v1832_v29 }
 0x366   :  { %v2164_v11 = vadd.f32 %v2036_v59, %v1646_v23  ;;  %v2165_v34 = vadd.f32 %v2037_v43, %v1647_v9  ;;  %1855 = vperm.xlu1 %4504, %v6358_v54   ;;  %v2920_v54 = vmax.f32 %v2776_v27, 0.0  ;;  %v2782_v32 = vpop.f32.mrf.mxu1  ;;  %v615_v23 = vadd.f32 %v4837_v14, %v482_v17 }
 0x367   :  { %v2612_v9 = vadd.f32 %v6285_v38, %v2611_v15  ;;  %v1004_v59 = vmul.f32 %v4829_v5, %v6463_v50  ;;  %v1524_v15 = vmul.f32 %v4843_v22, %v6427_v3 }
 0x368   :  { %v2293_v12 = vmax.f32 %v2165_v34, 0.0  ;;  %v2292_v25 = vmax.f32 %v2164_v11, 0.0  ;;  %v2979_v7 = vpack.c.bf16 %v2921_v18, %v2920_v54  ;;  %v1522_v54 = vmul.f32 %v4843_v22, %v6490_v45 }
 0x369   :  { %v1132_v18 = vadd.f32 %v1004_v59, %v614_v57 }
 0x36a   :  { %v2398_v62 = vpack.c.bf16 %v2294_v46, %v2292_v25  ;;  %v2399_v52 = vpack.c.bf16 %v2295_v21, %v2293_v12  ;;  %v1525_v25 = vmul.f32 %v4850_v33, %v6427_v3  ;;  %v6533_v46 = vpop.f32.mrf.mxu2 }
 0x36c   :  { %2635 = vmatmul.bf16.gmra.mxu0 %v2398_v62  ;;  %2804 = vmatmul.bf16.gmra.mxu1 %v2399_v52  ;;  %v234_v61 = vpop.permute.xlu1 %233  ;;  %v2781_v52 = vadd.f32 %v2780_v4, %v2612_v9 }
 0x36d   :  { %4507 = vset.pattern.permute.xlu2 %v7600_v47  ;;  %v483_v24 = vmul.f32 %v4824_v63, %v234_v61  ;;  %v484_v47 = vmul.f32 %v4826_v1, %v234_v61  ;;  %v6530_v50 = vpop.permute.xlu2 %243  ;;  %v1133_v61 = vadd.f32 %v1005_v35, %v615_v23  ;;  %v2618_v35 = vpop.f32.mrf.mxu0 }
 0x36e   :  { %4506 = vset.pattern.permute.xlu1 %v7596_v26  ;;  %823 = vperm.xlu2 %4507, %v6484_v20   ;;  %v2614_v26 = vadd.f32 %v6285_v38, %v2613_v48  ;;  %v2785_v3 = vpop.f32.mrf.mxu1  ;;  %v2042_v48 = vmul.f32 %v4862_v55, %v1832_v29 }
 0x36f   :  { %273 = vperm.xlu1 %4506, %v6434_v10   ;;  %v616_v11 = vadd.f32 %v4831_v6, %v483_v24  ;;  %v617_v34 = vadd.f32 %v4837_v14, %v484_v47  ;;  %v2922_v47 = vmax.f32 %v2781_v52, 0.0 }
 0x370   :  { %v2783_v21 = vadd.f32 %v2782_v32, %v2614_v26  ;;  %v1650_v32 = vadd.f32 %v1522_v54, %v1132_v18 }
 0x372   :  { %3107 = vmatmul.bf16.gmra.mxu2 %v2979_v7  ;;  %v2923_v24 = vmax.f32 %v2783_v21, 0.0  ;;  %v2619_v21 = vadd.f32 %v6285_v38, %v2618_v35 }
 0x374   :  { %v2980_v29 = vpack.c.bf16 %v2923_v24, %v2922_v47 }
 0x375   :  { %v796_v43 = vpop.permute.xlu1 %795 }
 0x376   :  { %v1006_v28 = vmul.f32 %v4829_v5, %v796_v43  ;;  %v1007_v12 = vmul.f32 %v4835_v13, %v796_v43  ;;  %4510 = vset.pattern.permute.xlu2 %v7594_v8 }
 0x377   :  { %4509 = vset.pattern.permute.xlu1 %v7594_v8  ;;  %1345 = vperm.xlu2 %4510, %v6434_v10   ;;  %v1523_v8 = vmul.f32 %v4850_v33, %v6490_v45  ;;  %v6545_v45 = vpop.f32.mrf.mxu2 }
 0x378   :  { %v1134_v27 = vadd.f32 %v1006_v28, %v616_v11  ;;  %v1135_v62 = vadd.f32 %v1007_v12, %v617_v34  ;;  %1341 = vperm.xlu1 %4509, %v6484_v20   ;;  %v1318_v34 = vpop.permute.xlu2 %1317 }
 0x379   :  { %v1651_v26 = vadd.f32 %v1523_v8, %v1133_v61  ;;  %v1526_v35 = vmul.f32 %v4843_v22, %v1318_v34 }
 0x37a   :  { %v1652_v7 = vadd.f32 %v1524_v15, %v1134_v27  ;;  %v1653_v17 = vadd.f32 %v1525_v25, %v1135_v62  ;;  %v2787_v27 = vpop.f32.mrf.mxu1 }
 0x37b   :  { %v2788_v18 = vadd.f32 %v2787_v27, %v2619_v21 }
 0x37c   :  { %v2170_v9 = vadd.f32 %v2042_v48, %v1652_v7  ;;  %v2171_v59 = vadd.f32 %v2043_v56, %v1653_v17  ;;  %v800_v17 = vpop.permute.xlu0 %799 }
 0x37d   :  { %v2925_v56 = vmax.f32 %v2788_v18, 0.0 }
 0x37e   :  { %v1828_v4 = vpop.permute.xlu1 %1827  ;;  %v2298_v15 = vmax.f32 %v2170_v9, 0.0  ;;  %v2299_v25 = vmax.f32 %v2171_v59, 0.0  ;;  %v487_v59 = vmul.f32 %v4824_v63, %v6530_v50 }
 0x37f   :  { %v2040_v57 = vmul.f32 %v4862_v55, %v1828_v4  ;;  %v2041_v23 = vmul.f32 %v4872_v2, %v1828_v4  ;;  %4512 = vset.pattern.permute.xlu2 %v7593_v41  ;;  %v6552_v54 = vpop.f32.mrf.mxu2  ;;  %v1009_v4 = vmul.f32 %v4835_v13, %v800_v17 }
 0x380   :  { %4511 = vset.pattern.permute.xlu1 %v7593_v41  ;;  %1863 = vperm.xlu2 %4512, %v6434_v10   ;;  %v2617_v41 = vadd.f32 %v6285_v38, %v2616_v37  ;;  %v1836_v48 = vpop.permute.xlu2 %1835  ;;  %v1008_v37 = vmul.f32 %v4829_v5, %v800_v17 }
 0x381   :  { %v2168_v43 = vadd.f32 %v2040_v57, %v1650_v32  ;;  %v2169_v11 = vadd.f32 %v2041_v23, %v1651_v26  ;;  %1859 = vperm.xlu1 %4511, %v6484_v20  }
 0x382   :  { %3112 = vmatmul.bf16.gmra.mxu2 %v2980_v29  ;;  %v2786_v20 = vadd.f32 %v2785_v3, %v2617_v41 }
 0x383   :  { %v2296_v28 = vmax.f32 %v2168_v43, 0.0  ;;  %v2297_v12 = vmax.f32 %v2169_v11, 0.0  ;;  %v488_v11 = vmul.f32 %v4826_v1, %v6530_v50 }
 0x384   :  { %v2924_v47 = vmax.f32 %v2786_v20, 0.0 }
 0x385   :  { %v2400_v62 = vpack.c.bf16 %v2298_v15, %v2296_v28  ;;  %v2401_v52 = vpack.c.bf16 %v2299_v25, %v2297_v12  ;;  %v1527_v28 = vmul.f32 %v4850_v33, %v1318_v34  ;;  %v621_v50 = vadd.f32 %v4837_v14, %v488_v11 }
 0x386   :  { %v2981_v23 = vpack.c.bf16 %v2925_v56, %v2924_v47  ;;  %v2045_v34 = vmul.f32 %v4872_v2, %v1836_v48 }
 0x387   :  { %2640 = vmatmul.bf16.gmra.mxu0 %v2400_v62  ;;  %2809 = vmatmul.bf16.gmra.mxu1 %v2401_v52  ;;  %v239_v10 = vpop.permute.xlu1 %238  ;;  %v6560_v9 = vpop.f32.mrf.mxu2  ;;  %v620_v52 = vadd.f32 %v4831_v6, %v487_v59 }
 0x388   :  { %v2621_v61 = vpop.f32.mrf.mxu0  ;;  %v485_v8 = vmul.f32 %v4824_v63, %v239_v10  ;;  %v486_v7 = vmul.f32 %v4826_v1, %v239_v10  ;;  %v254_v43 = vpop.permute.xlu2 %253  ;;  %v2044_v10 = vmul.f32 %v4862_v55, %v1836_v48 }
 0x389   :  { %v2790_v24 = vpop.f32.mrf.mxu1  ;;  %v2622_v25 = vadd.f32 %v6285_v38, %v2621_v61  ;;  %v1840_v62 = vpop.permute.xlu0 %1839 }
 0x38a   :  { %v618_v32 = vadd.f32 %v4831_v6, %v485_v8  ;;  %v619_v26 = vadd.f32 %v4837_v14, %v486_v7  ;;  %v2046_v61 = vmul.f32 %v4862_v55, %v1840_v62  ;;  %v2047_v17 = vmul.f32 %v4872_v2, %v1840_v62 }
 0x38b   :  { %v2791_v56 = vadd.f32 %v2790_v24, %v2622_v25 }
 0x38c   :  { %v1136_v29 = vadd.f32 %v1008_v37, %v618_v32  ;;  %v1137_v12 = vadd.f32 %v1009_v4, %v619_v26 }
 0x38d   :  { %v2926_v24 = vmax.f32 %v2791_v56, 0.0 }
 0x38e   :  { %v1654_v41 = vadd.f32 %v1526_v35, %v1136_v29  ;;  %v1655_v20 = vadd.f32 %v1527_v28, %v1137_v12 }
 0x390   :  { %v804_v57 = vpop.permute.xlu1 %803  ;;  %v2623_v3 = vpop.f32.mrf.mxu0  ;;  %v2172_v4 = vadd.f32 %v2044_v10, %v1654_v41 }
 0x391   :  { %v2624_v15 = vadd.f32 %v6285_v38, %v2623_v3  ;;  %v1010_v21 = vmul.f32 %v4829_v5, %v804_v57  ;;  %v1011_v27 = vmul.f32 %v4835_v13, %v804_v57  ;;  %v2792_v18 = vpop.f32.mrf.mxu1  ;;  %v6580_v57 = vpop.f32.mrf.mxu2 }
 0x392   :  { %3117 = vmatmul.bf16.gmra.mxu2 %v2981_v23  ;;  %v2173_v23 = vadd.f32 %v2045_v34, %v1655_v20  ;;  %v812_v35 = vpop.permute.xlu2 %811  ;;  %v2300_v28 = vmax.f32 %v2172_v4, 0.0  ;;  %v492_v4 = vmul.f32 %v4826_v1, %v254_v43 }
 0x393   :  { %v2793_v8 = vadd.f32 %v2792_v18, %v2624_v15  ;;  %v1138_v47 = vadd.f32 %v1010_v21, %v620_v52  ;;  %v1139_v32 = vadd.f32 %v1011_v27, %v621_v50 }
 0x394   :  { %v2301_v12 = vmax.f32 %v2173_v23, 0.0 }
 0x395   :  { %v2927_v3 = vmax.f32 %v2793_v8, 0.0 }
 0x397   :  { %v2982_v21 = vpack.c.bf16 %v2927_v3, %v2926_v24 }
 0x399   :  { %v1322_v7 = vpop.permute.xlu1 %1321  ;;  %v6582_v41 = vpop.f32.mrf.mxu2 }
 0x39a   :  { %v1528_v37 = vmul.f32 %v4843_v22, %v1322_v7  ;;  %v1529_v26 = vmul.f32 %v4850_v33, %v1322_v7 }
 0x39b   :  { %v1844_v10 = vpop.permute.xlu2 %1843 }
 0x39c   :  { %v1656_v59 = vadd.f32 %v1528_v37, %v1138_v47  ;;  %v1657_v48 = vadd.f32 %v1529_v26, %v1139_v32 }
 0x39e   :  { %v2174_v29 = vadd.f32 %v2046_v61, %v1656_v59  ;;  %v2175_v11 = vadd.f32 %v2047_v17, %v1657_v48  ;;  %v1326_v61 = vpop.permute.xlu0 %1325  ;;  %v491_v17 = vmul.f32 %v4824_v63, %v254_v43 }
 0x39f   :  { %v1530_v48 = vmul.f32 %v4843_v22, %v1326_v61  ;;  %v1531_v24 = vmul.f32 %v4850_v33, %v1326_v61 }
 0x3a0   :  { %v2302_v15 = vmax.f32 %v2174_v29, 0.0  ;;  %v2303_v25 = vmax.f32 %v2175_v11, 0.0  ;;  %v624_v11 = vadd.f32 %v4831_v6, %v491_v17 }
 0x3a1   :  { %v6584_v50 = vpop.f32.mrf.mxu2 }
 0x3a2   :  { %3122 = vmatmul.bf16.gmra.mxu2 %v2982_v21  ;;  %v249_v27 = vpop.permute.xlu1 %248  ;;  %v2402_v62 = vpack.c.bf16 %v2302_v15, %v2300_v28  ;;  %v2403_v52 = vpack.c.bf16 %v2303_v25, %v2301_v12  ;;  %v1014_v28 = vmul.f32 %v4829_v5, %v812_v35  ;;  %v625_v12 = vadd.f32 %v4837_v14, %v492_v4 }
 0x3a3   :  { %v489_v20 = vmul.f32 %v4824_v63, %v249_v27  ;;  %v490_v34 = vmul.f32 %v4826_v1, %v249_v27  ;;  %v1015_v15 = vmul.f32 %v4835_v13, %v812_v35  ;;  %v2048_v25 = vmul.f32 %v4862_v55, %v1844_v10 }
 0x3a4   :  { %2645 = vmatmul.bf16.gmra.mxu0 %v2402_v62  ;;  %2814 = vmatmul.bf16.gmra.mxu1 %v2403_v52  ;;  %v6588_v8 = vpop.permute.xlu2 %258  ;;  %v2049_v62 = vmul.f32 %v4872_v2, %v1844_v10 }
 0x3a5   :  { %v622_v47 = vadd.f32 %v4831_v6, %v489_v20  ;;  %v623_v32 = vadd.f32 %v4837_v14, %v490_v34  ;;  %v1142_v34 = vadd.f32 %v1014_v28, %v624_v11 }
 0x3a9   :  { %v6598_v29 = vpop.f32.mrf.mxu2 }
 0x3ab   :  { %v808_v18 = vpop.permute.xlu1 %807 }
 0x3ac   :  { %v1012_v56 = vmul.f32 %v4829_v5, %v808_v18  ;;  %v1013_v7 = vmul.f32 %v4835_v13, %v808_v18 }
 0x3ad   :  { %v820_v18 = vpop.permute.xlu2 %819 }
 0x3ae   :  { %v1140_v3 = vadd.f32 %v1012_v56, %v622_v47  ;;  %v1141_v59 = vadd.f32 %v1013_v7, %v623_v32  ;;  %v1143_v7 = vadd.f32 %v1015_v15, %v625_v12 }
 0x3b0   :  { %v1658_v21 = vadd.f32 %v1530_v48, %v1140_v3  ;;  %v1659_v27 = vadd.f32 %v1531_v24, %v1141_v59 }
 0x3b1   :  { %v6612_v24 = vpop.f32.mrf.mxu2 }
 0x3b2   :  { %v2176_v35 = vadd.f32 %v2048_v25, %v1658_v21  ;;  %v2177_v47 = vadd.f32 %v2049_v62, %v1659_v27  ;;  %7633 = vst [vmem:[#allocation58_spill] sm:$0xff] %v6612_v24 }
 0x3b3   :  { %v2626_v37 = vpop.f32.mrf.mxu0  ;;  %v2795_v26 = vpop.f32.mrf.mxu1 }
 0x3b4   :  { %v1330_v23 = vpop.permute.xlu1 %1329  ;;  %v2627_v43 = vadd.f32 %v6285_v38, %v2626_v37  ;;  %v2305_v15 = vmax.f32 %v2177_v47, 0.0 }
 0x3b5   :  { %v1532_v52 = vmul.f32 %v4843_v22, %v1330_v23  ;;  %v1533_v20 = vmul.f32 %v4850_v33, %v1330_v23 }
 0x3b6   :  { %v2796_v61 = vadd.f32 %v2795_v26, %v2627_v43  ;;  %v2304_v26 = vmax.f32 %v2176_v35, 0.0  ;;  %v1338_v27 = vpop.permute.xlu2 %1337  ;;  %v494_v35 = vmul.f32 %v4826_v1, %v6588_v8 }
 0x3b7   :  { %v1660_v32 = vadd.f32 %v1532_v52, %v1142_v34  ;;  %v1661_v3 = vadd.f32 %v1533_v20, %v1143_v7  ;;  %v264_v34 = vpop.permute.xlu0 %263 }
 0x3b8   :  { %v2928_v23 = vmax.f32 %v2796_v61, 0.0  ;;  %v495_v7 = vmul.f32 %v4824_v63, %v264_v34  ;;  %v496_v61 = vmul.f32 %v4826_v1, %v264_v34  ;;  %v1537_v34 = vmul.f32 %v4850_v33, %v1338_v27 }
 0x3bb   :  { %v2628_v56 = vpop.f32.mrf.mxu0  ;;  %v2797_v4 = vpop.f32.mrf.mxu1 }
 0x3bc   :  { %v2629_v17 = vadd.f32 %v6285_v38, %v2628_v56  ;;  %v6614_v56 = vpop.f32.mrf.mxu2 }
 0x3bd   :  { %v1848_v37 = vpop.permute.xlu1 %1847 }
 0x3be   :  { %v2798_v59 = vadd.f32 %v2797_v4, %v2629_v17  ;;  %v2050_v10 = vmul.f32 %v4862_v55, %v1848_v37  ;;  %v2051_v48 = vmul.f32 %v4872_v2, %v1848_v37  ;;  %v493_v17 = vmul.f32 %v4824_v63, %v6588_v8 }
 0x3bf   :  { %v6622_v47 = vpop.permute.xlu2 %268 }
 0x3c0   :  { %v2929_v11 = vmax.f32 %v2798_v59, 0.0  ;;  %v2178_v28 = vadd.f32 %v2050_v10, %v1660_v32  ;;  %v2179_v12 = vadd.f32 %v2051_v48, %v1661_v3  ;;  %v628_v32 = vadd.f32 %v4831_v6, %v495_v7 }
 0x3c1   :  { %v1018_v59 = vmul.f32 %v4829_v5, %v820_v18  ;;  %v1019_v10 = vmul.f32 %v4835_v13, %v820_v18  ;;  %v629_v48 = vadd.f32 %v4837_v14, %v496_v61 }
 0x3c2   :  { %v2306_v43 = vmax.f32 %v2178_v28, 0.0  ;;  %v2307_v25 = vmax.f32 %v2179_v12, 0.0  ;;  %v2983_v21 = vpack.c.bf16 %v2929_v11, %v2928_v23  ;;  %v626_v28 = vadd.f32 %v4831_v6, %v493_v17 }
 0x3c3   :  { %v627_v12 = vadd.f32 %v4837_v14, %v494_v35 }
 0x3c4   :  { %3127 = vmatmul.bf16.gmra.mxu2 %v2983_v21  ;;  %v2404_v62 = vpack.c.bf16 %v2306_v43, %v2304_v26  ;;  %v2405_v52 = vpack.c.bf16 %v2307_v25, %v2305_v15  ;;  %v1852_v15 = vpop.permute.xlu0 %1851  ;;  %v1146_v21 = vadd.f32 %v1018_v59, %v628_v32  ;;  %v6644_v32 = vld [vmem:[%s7508_s4] ss:$0 sm:$0xff] }
 0x3c5   :  { %v2052_v61 = vmul.f32 %v4862_v55, %v1852_v15  ;;  %v2053_v35 = vmul.f32 %v4872_v2, %v1852_v15 }
 0x3c6   :  { %2650 = vmatmul.bf16.gmra.mxu0 %v2404_v62  ;;  %2819 = vmatmul.bf16.gmra.mxu1 %v2405_v52  ;;  %v816_v20 = vpop.permute.xlu1 %815  ;;  %v1147_v62 = vadd.f32 %v1019_v10, %v629_v48  ;;  %v6635_v52 = vpop.f32.mrf.mxu2 }
 0x3c7   :  { %v1016_v4 = vmul.f32 %v4829_v5, %v816_v20  ;;  %v1017_v23 = vmul.f32 %v4835_v13, %v816_v20  ;;  %v1536_v20 = vmul.f32 %v4843_v22, %v1338_v27 }
 0x3c8   :  { %v1665_v59 = vadd.f32 %v1537_v34, %v1147_v62 }
 0x3c9   :  { %v1144_v43 = vadd.f32 %v1016_v4, %v626_v28  ;;  %v1145_v25 = vadd.f32 %v1017_v23, %v627_v12  ;;  %v824_v4 = vpop.permute.xlu2 %823 }
 0x3ce   :  { %v2631_v37 = vpop.f32.mrf.mxu0  ;;  %v2800_v3 = vpop.f32.mrf.mxu1 }
 0x3cf   :  { %v1334_v11 = vpop.permute.xlu1 %1333  ;;  %v2632_v18 = vadd.f32 %v6285_v38, %v2631_v37  ;;  %v1664_v37 = vadd.f32 %v1536_v20, %v1146_v21 }
 0x3d0   :  { %v1534_v8 = vmul.f32 %v4843_v22, %v1334_v11  ;;  %v1535_v26 = vmul.f32 %v4850_v33, %v1334_v11 }
 0x3d1   :  { %v2801_v24 = vadd.f32 %v2800_v3, %v2632_v18  ;;  %v4303_v18 = vld [vmem:[%s7511_s7 + $0x18] sm:$0xff] }
 0x3d2   :  { %v1662_v7 = vadd.f32 %v1534_v8, %v1144_v43  ;;  %v1663_v17 = vadd.f32 %v1535_v26, %v1145_v25  ;;  %3476 = vmatpush.bf16.msrb.mxu0 %v4303_v18  ;;  %4322 = vmatpush.bf16.msra.mxu3 %v4303_v18 }
 0x3d3   :  { %v2930_v3 = vmax.f32 %v2801_v24, 0.0  ;;  %v4302_v24 = vld [vmem:[%s7511_s7 + $0x10] sm:$0xff] }
 0x3d4   :  { %v2180_v10 = vadd.f32 %v2052_v61, %v1662_v7  ;;  %v2181_v23 = vadd.f32 %v2053_v35, %v1663_v17  ;;  %v6652_v7 = vpop.f32.mrf.mxu2  ;;  %v1346_v35 = vpop.permute.xlu2 %1345 }
 0x3d5   :  { %v1540_v18 = vmul.f32 %v4843_v22, %v1346_v35 }
 0x3d6   :  { %v2633_v11 = vpop.f32.mrf.mxu0  ;;  %v2802_v27 = vpop.f32.mrf.mxu1  ;;  %v2308_v25 = vmax.f32 %v2180_v10, 0.0  ;;  %v2309_v21 = vmax.f32 %v2181_v23, 0.0  ;;  %3477 = vmatpush.bf16.msrb.mxu0 %v4302_v24  ;;  %4323 = vmatpush.bf16.msra.mxu3 %v4302_v24  ;;  %v4301_v10 = vld [vmem:[%s7511_s7 + $0x8] sm:$0xff]  ;;  %v1021_v24 = vmul.f32 %v4835_v13, %v824_v4 }
 0x3d7   :  { %v2634_v38 = vadd.f32 %v6644_v32, %v2633_v11 }
 0x3d8   :  { %v1856_v48 = vpop.permute.xlu1 %1855 }
 0x3d9   :  { %v2803_v28 = vadd.f32 %v2802_v27, %v2634_v38  ;;  %v2054_v8 = vmul.f32 %v4862_v55, %v1856_v48  ;;  %v2055_v12 = vmul.f32 %v4872_v2, %v1856_v48 }
 0x3da   :  { %3478 = vmatpush.bf16.msrb.mxu0 %v4301_v10  ;;  %4324 = vmatpush.bf16.msra.mxu3 %v4301_v10 }
 0x3db   :  { %v2931_v26 = vmax.f32 %v2803_v28, 0.0  ;;  %v2182_v15 = vadd.f32 %v2054_v8, %v1664_v37  ;;  %v2183_v43 = vadd.f32 %v2055_v12, %v1665_v59  ;;  %v828_v59 = vpop.permute.xlu0 %827  ;;  %v4300_v12 = vld [vmem:[%s7511_s7] sm:$0xff] }
 0x3dc   :  { %v1022_v23 = vmul.f32 %v4829_v5, %v828_v59  ;;  %v1023_v28 = vmul.f32 %v4835_v13, %v828_v59  ;;  %v6666_v8 = vpop.f32.mrf.mxu2 }
 0x3dd   :  { %v2310_v62 = vmax.f32 %v2182_v15, 0.0  ;;  %v2311_v20 = vmax.f32 %v2183_v43, 0.0  ;;  %v2984_v34 = vpack.c.bf16 %v2931_v26, %v2930_v3  ;;  %v497_v3 = vmul.f32 %v4824_v63, %v6622_v47 }
 0x3de   :  { %v498_v43 = vmul.f32 %v4826_v1, %v6622_v47  ;;  %3479 = vmatpush.bf16.msrb.mxu0 %v4300_v12  ;;  %4325 = vmatpush.bf16.msra.mxu3 %v4300_v12 }
 0x3df   :  { %3132 = vmatmul.bf16.gmra.mxu2 %v2984_v34  ;;  %v2406_v61 = vpack.c.bf16 %v2310_v62, %v2308_v25  ;;  %v2407_v17 = vpack.c.bf16 %v2311_v20, %v2309_v21  ;;  %v1541_v21 = vmul.f32 %v4850_v33, %v1346_v35  ;;  %v1864_v34 = vpop.permute.xlu2 %1863 }
 0x3e0   :  { %v2058_v47 = vmul.f32 %v4862_v55, %v1864_v34  ;;  %v2059_v59 = vmul.f32 %v4872_v2, %v1864_v34 }
 0x3e1   :  { %2655 = vmatmul.bf16.gmra.mxu0 %v2406_v61  ;;  %2824 = vmatmul.bf16.gmra.mxu1 %v2407_v17  ;;  %v274_v11 = vpop.permute.xlu1 %273  ;;  %v630_v61 = vadd.f32 %v4831_v6, %v497_v3  ;;  %v1020_v17 = vmul.f32 %v4829_v5, %v824_v4 }
 0x3e2   :  { %v499_v38 = vmul.f32 %v4824_v63, %v274_v11  ;;  %v500_v37 = vmul.f32 %v4826_v1, %v274_v11  ;;  %v631_v63 = vadd.f32 %v4837_v14, %v498_v43 }
 0x3e4   :  { %v632_v27 = vadd.f32 %v4831_v6, %v499_v38  ;;  %v633_v48 = vadd.f32 %v4837_v14, %v500_v37  ;;  %v1149_v5 = vadd.f32 %v1021_v24, %v631_v63 }
 0x3e6   :  { %v1150_v62 = vadd.f32 %v1022_v23, %v632_v27  ;;  %v1151_v20 = vadd.f32 %v1023_v28, %v633_v48  ;;  %v1148_v27 = vadd.f32 %v1020_v17, %v630_v61  ;;  %v6686_v48 = vpop.f32.mrf.mxu2 }
 0x3e8   :  { %v1668_v38 = vadd.f32 %v1540_v18, %v1150_v62  ;;  %v1669_v37 = vadd.f32 %v1541_v21, %v1151_v20 }
 0x3e9   :  { %v2636_v26 = vpop.f32.mrf.mxu0  ;;  %v2805_v15 = vpop.f32.mrf.mxu1 }
 0x3ea   :  { %v1342_v25 = vpop.permute.xlu1 %1341  ;;  %v2637_v11 = vadd.f32 %v6644_v32, %v2636_v26  ;;  %v2186_v28 = vadd.f32 %v2058_v47, %v1668_v38  ;;  %v2187_v12 = vadd.f32 %v2059_v59, %v1669_v37 }
 0x3eb   :  { %v1538_v35 = vmul.f32 %v4843_v22, %v1342_v25  ;;  %v1539_v10 = vmul.f32 %v4850_v33, %v1342_v25 }
 0x3ec   :  { %v2806_v23 = vadd.f32 %v2805_v15, %v2637_v11  ;;  %v2314_v17 = vmax.f32 %v2186_v28, 0.0  ;;  %v2315_v63 = vmax.f32 %v2187_v12, 0.0 }
 0x3ed   :  { %v1666_v3 = vadd.f32 %v1538_v35, %v1148_v27  ;;  %v1667_v18 = vadd.f32 %v1539_v10, %v1149_v5  ;;  %v7634_v35 = vld [vmem:[#allocation8_spill] sm:$0xff] }
 0x3ee   :  { %v2932_v25 = vmax.f32 %v2806_v23, 0.0  ;;  %v6691_v37 = vpop.f32.mrf.mxu2  ;;  %v508_v10 = vmul.f32 %v4826_v1, %v7634_v35  ;;  %v7635_v23 = vld [vmem:[#allocation27_spill] sm:$0xff] }
 0x3f1   :  { %v2638_v6 = vpop.f32.mrf.mxu0  ;;  %v2807_v26 = vpop.f32.mrf.mxu1 }
 0x3f2   :  { %v2639_v4 = vadd.f32 %v6644_v32, %v2638_v6 }
 0x3f3   :  { %v1860_v43 = vpop.permute.xlu1 %1859 }
 0x3f4   :  { %v2808_v21 = vadd.f32 %v2807_v26, %v2639_v4  ;;  %v2056_v62 = vmul.f32 %v4862_v55, %v1860_v43  ;;  %v2057_v22 = vmul.f32 %v4872_v2, %v1860_v43  ;;  %v6696_v55 = vld [vmem:[%s7510_s6] ss:$0 sm:$0xff]  ;;  %v1031_v4 = vmul.f32 %v4835_v13, %v7635_v23 }
 0x3f5   :  { %v3086_v59 = vadd.f32 %v6696_v55, %v6635_v52  ;;  %v3084_v27 = vadd.f32 %v6696_v55, %v6614_v56  ;;  %v641_v43 = vadd.f32 %v4837_v14, %v508_v10  ;;  %v7641_v10 = vld [vmem:[#allocation7_spill] sm:$0xff] }
 0x3f6   :  { %v2933_v20 = vmax.f32 %v2808_v21, 0.0  ;;  %v2184_v34 = vadd.f32 %v2056_v62, %v1666_v3  ;;  %v2185_v61 = vadd.f32 %v2057_v22, %v1667_v18  ;;  %v6706_v12 = vpop.f32.mrf.mxu2  ;;  %v7636_v3 = vld [vmem:[#allocation2_spill] sm:$0xff]  ;;  %v7637_v22 = vld [vmem:[#allocation4_spill] sm:$0xff] }
 0x3f7   :  { %v3244_v28 = vmax.f32 %v3086_v59, 0.0  ;;  %v506_v26 = vmul.f32 %v4826_v1, %v7636_v3  ;;  %v3243_v52 = vmax.f32 %v3084_v27, 0.0  ;;  %v1159_v21 = vadd.f32 %v1031_v4, %v641_v43 }
 0x3f8   :  { %v2312_v15 = vmax.f32 %v2184_v34, 0.0  ;;  %v2313_v24 = vmax.f32 %v2185_v61, 0.0  ;;  %v2985_v11 = vpack.c.bf16 %v2933_v20, %v2932_v25  ;;  %v1029_v25 = vmul.f32 %v4835_v13, %v7637_v22  ;;  %v7638_v20 = vld [vmem:[#allocation6_spill] sm:$0xff]  ;;  %v7644_v22 = vld [vmem:[#allocation13_spill] sm:$0xff] }
 0x3f9   :  { %v3307_v62 = vpack.c.bf16 %v3244_v28, %v3243_v52  ;;  %v639_v56 = vadd.f32 %v4837_v14, %v506_v26  ;;  %v1549_v34 = vmul.f32 %v4850_v33, %v7638_v20  ;;  %v2067_v27 = vmul.f32 %v4872_v2, %v7641_v10 }
 0x3fa   :  { %3137 = vmatmul.bf16.gmra.mxu2 %v2985_v11  ;;  %v2408_v47 = vpack.c.bf16 %v2314_v17, %v2312_v15  ;;  %v2409_v38 = vpack.c.bf16 %v2315_v63, %v2313_v24  ;;  %v7639_v17 = vld [vmem:[#allocation17_spill] sm:$0xff]  ;;  %v3091_v52 = vadd.f32 %v6696_v55, %v6666_v8 }
 0x3fb   :  { %v7640_v24 = vld [vmem:[#allocation9_spill] sm:$0xff]  ;;  %v1157_v35 = vadd.f32 %v1029_v25, %v639_v56  ;;  %v3089_v56 = vadd.f32 %v6696_v55, %v6652_v7  ;;  %v512_v25 = vmul.f32 %v4826_v1, %v7644_v22  ;;  %v3094_v22 = vadd.f32 %v6696_v55, %v6686_v48 }
 0x3fc   :  { %2660 = vmatmul.bf16.gmra.mxu0 %v2408_v47  ;;  %2829 = vmatmul.bf16.gmra.mxu1 %v2409_v38  ;;  %v1547_v11 = vmul.f32 %v4850_v33, %v7640_v24  ;;  %v1677_v47 = vadd.f32 %v1549_v34, %v1159_v21  ;;  %v3246_v34 = vmax.f32 %v3091_v52, 0.0 }
 0x3fe   :  { %v3100_v4 = vpop.f32.mrf.mxu2  ;;  %v1675_v26 = vadd.f32 %v1547_v11, %v1157_v35  ;;  %v645_v11 = vadd.f32 %v4837_v14, %v512_v25  ;;  %v7646_v35 = vld [vmem:[#allocation3_spill] sm:$0xff] }
 0x3ff   :  { %v1553_v10 = vmul.f32 %v4850_v33, %v7646_v35 }
 0x404   :  { %v2641_v6 = vpop.f32.mrf.mxu0  ;;  %v2810_v5 = vpop.f32.mrf.mxu1 }
 0x405   :  { %v2642_v18 = vadd.f32 %v6644_v32, %v2641_v6  ;;  %v7642_v6 = vld [vmem:[#allocation11_spill] sm:$0xff] }
 0x406   :  { %v2065_v23 = vmul.f32 %v4872_v2, %v7642_v6 }
 0x407   :  { %v2811_v63 = vadd.f32 %v2810_v5, %v2642_v18  ;;  %v7643_v5 = vld [vmem:[#allocation15_spill] sm:$0xff]  ;;  %v2195_v18 = vadd.f32 %v2067_v27, %v1677_v47  ;;  %v7647_v27 = vld [vmem:[#allocation10_spill] sm:$0xff] }
 0x408   :  { %v510_v43 = vmul.f32 %v4826_v1, %v7643_v5  ;;  %v1551_v6 = vmul.f32 %v4850_v33, %v7647_v27  ;;  %v7649_v5 = vld [vmem:[#allocation12_spill] sm:$0xff]  ;;  %v3101_v27 = vadd.f32 %v6696_v55, %v3100_v4 }
 0x409   :  { %v2934_v28 = vmax.f32 %v2811_v63, 0.0  ;;  %v7645_v63 = vld [vmem:[#allocation14_spill] sm:$0xff] }
 0x40a   :  { %v643_v20 = vadd.f32 %v4837_v14, %v510_v43  ;;  %v1035_v8 = vmul.f32 %v4835_v13, %v7645_v63  ;;  %v2071_v43 = vmul.f32 %v4872_v2, %v7649_v5  ;;  %v7652_v5 = vld [vmem:[#allocation26_spill] sm:$0xff] }
 0x40c   :  { %v2643_v61 = vpop.f32.mrf.mxu0  ;;  %2834 = vmatmul.bf16.gmra.mxu1 %v7639_v17  ;;  %4204 = vmatmul.msk.bf16.vlgmr.msrb.gmra.mxu0 %vm3375_vm0, %v3307_v62  ;;  %v2812_v38 = vpop.f32.mrf.mxu1  ;;  %v2193_v62 = vadd.f32 %v2065_v23, %v1675_v26  ;;  %v1033_v17 = vmul.f32 %v4835_v13, %v4763_v42  ;;  %v1163_v23 = vadd.f32 %v1035_v8, %v645_v11 }
 0x40d   :  { %v2644_v15 = vadd.f32 %v6644_v32, %v2643_v61  ;;  %v2323_v61 = vmax.f32 %v2195_v18, 0.0 }
 0x40e   :  { %v2321_v24 = vmax.f32 %v2193_v62, 0.0  ;;  %v1161_v47 = vadd.f32 %v1033_v17, %v643_v20  ;;  %v1681_v26 = vadd.f32 %v1553_v10, %v1163_v23  ;;  %v3096_v62 = vadd.f32 %v6696_v55, %v6691_v37  ;;  %v7650_v23 = vld [vmem:[#allocation18_spill] sm:$0xff] }
 0x40f   :  { %v2813_v59 = vadd.f32 %v2812_v38, %v2644_v15  ;;  %v3245_v15 = vmax.f32 %v3089_v56, 0.0  ;;  %v6740_v38 = vpop.f32.mrf.mxu2  ;;  %v3247_v17 = vmax.f32 %v3094_v22, 0.0  ;;  %v7654_v22 = vld [vmem:[#allocation5_spill] sm:$0xff] }
 0x410   :  { %v1679_v42 = vadd.f32 %v1551_v6, %v1161_v47  ;;  %v2199_v56 = vadd.f32 %v2071_v43, %v1681_v26  ;;  %v3248_v20 = vmax.f32 %v3096_v62, 0.0  ;;  %v3099_v6 = vadd.f32 %v6696_v55, %v6706_v12  ;;  %v7653_v62 = vld [vmem:[#allocation20_spill] sm:$0xff] }
 0x411   :  { %v2935_v3 = vmax.f32 %v2813_v59, 0.0  ;;  %v3308_v7 = vpack.c.bf16 %v3246_v34, %v3245_v15  ;;  %v2413_v59 = vpack.c.bf16 %v2323_v61, %v2321_v24  ;;  %v3250_v26 = vmax.f32 %v3101_v27, 0.0 }
 0x412   :  { %v2327_v63 = vmax.f32 %v2199_v56, 0.0  ;;  %v3309_v15 = vpack.c.bf16 %v3248_v20, %v3247_v17  ;;  %v1041_v43 = vmul.f32 %v4835_v13, %v7652_v5  ;;  %v1043_v56 = vmul.f32 %v4835_v13, %v7653_v62 }
 0x413   :  { %v2986_v21 = vpack.c.bf16 %v2935_v3, %v2934_v28  ;;  %v7648_v28 = vld [vmem:[#allocation16_spill] sm:$0xff]  ;;  %v1559_v20 = vmul.f32 %v4850_v33, %v7654_v22 }
 0x414   :  { %v2069_v3 = vmul.f32 %v4872_v2, %v7648_v28  ;;  %v7651_v28 = vld [vmem:[#allocation24_spill] sm:$0xff] }
 0x415   :  { %3142 = vmatmul.bf16.gmra.mxu2 %v2986_v21 }
 0x416   :  { %v2197_v21 = vadd.f32 %v2069_v3, %v1679_v42  ;;  %v520_v42 = vmul.f32 %v4826_v1, %v7650_v23  ;;  %v518_v3 = vmul.f32 %v4826_v1, %v7651_v28 }
 0x417   :  { %v3105_v25 = vpop.f32.mrf.mxu2 }
 0x418   :  { %v2325_v61 = vmax.f32 %v2197_v21, 0.0  ;;  %v653_v21 = vadd.f32 %v4837_v14, %v520_v42  ;;  %v651_v4 = vadd.f32 %v4837_v14, %v518_v3  ;;  %v3104_v42 = vadd.f32 %v6696_v55, %v6740_v38 }
 0x41a   :  { %v2415_v47 = vpack.c.bf16 %v2327_v63, %v2325_v61  ;;  %v7655_v61 = vld [vmem:[#allocation28_spill] sm:$0xff] }
 0x41b   :  { %v1561_v17 = vmul.f32 %v4850_v33, %v7655_v61  ;;  %v7656_v63 = vld [vmem:[#allocation32_spill] sm:$0xff] }
 0x41c   :  { %2839 = vmatmul.bf16.gmra.mxu1 %v2413_v59  ;;  %4205 = vmatmul.msk.bf16.gmra.mxu0 %vm3375_vm0, %v3308_v7 }
 0x41f   :  { %v3108_v37 = vpop.f32.mrf.mxu2 }
 0x421   :  { %v2646_v52 = vpop.f32.mrf.mxu0  ;;  %v2815_v18 = vpop.f32.mrf.mxu1 }
 0x422   :  { %v2647_v34 = vadd.f32 %v6644_v32, %v2646_v52  ;;  %v3249_v52 = vmax.f32 %v3099_v6, 0.0 }
 0x424   :  { %v2816_v24 = vadd.f32 %v2815_v18, %v2647_v34  ;;  %v3310_v12 = vpack.c.bf16 %v3250_v26, %v3249_v52  ;;  %v1169_v34 = vadd.f32 %v1041_v43, %v651_v4  ;;  %v3251_v26 = vmax.f32 %v3104_v42, 0.0  ;;  %v7663_v42 = vld [vmem:[#allocation34_spill] sm:$0xff] }
 0x426   :  { %v2936_v48 = vmax.f32 %v2816_v24, 0.0 }
 0x427   :  { %v3110_v18 = vpop.f32.mrf.mxu2 }
 0x429   :  { %v2648_v8 = vpop.f32.mrf.mxu0  ;;  %v2817_v7 = vpop.f32.mrf.mxu1 }
 0x42a   :  { %v2649_v11 = vadd.f32 %v6644_v32, %v2648_v8  ;;  %v1171_v8 = vadd.f32 %v1043_v56, %v653_v21 }
 0x42c   :  { %v2818_v59 = vadd.f32 %v2817_v7, %v2649_v11  ;;  %2844 = vmatmul.bf16.gmra.mxu1 %v2415_v47  ;;  %4206 = vmatmul.msk.bf16.gmra.mxu0 %vm3375_vm0, %v3309_v15  ;;  %v7657_v15 = vld [vmem:[#allocation29_spill] sm:$0xff]  ;;  %v1687_v11 = vadd.f32 %v1559_v20, %v1169_v34  ;;  %v7658_v47 = vld [vmem:[#allocation22_spill] sm:$0xff]  ;;  %v3111_v34 = vadd.f32 %v6696_v55, %v3110_v18 }
 0x42d   :  { %v2079_v24 = vmul.f32 %v4872_v2, %v7657_v15  ;;  %v2077_v7 = vmul.f32 %v4872_v2, %v7658_v47  ;;  %v7660_v15 = vld [vmem:[#allocation30_spill] sm:$0xff] }
 0x42e   :  { %v2937_v35 = vmax.f32 %v2818_v59, 0.0  ;;  %v1689_v59 = vadd.f32 %v1561_v17, %v1171_v8  ;;  %v7659_v17 = vld [vmem:[#allocation37_spill] sm:$0xff]  ;;  %v3109_v8 = vadd.f32 %v6696_v55, %v3108_v37  ;;  %v1569_v37 = vmul.f32 %v4850_v33, %v7663_v42 }
 0x42f   :  { %v2205_v23 = vadd.f32 %v2077_v7, %v1687_v11  ;;  %v3254_v11 = vmax.f32 %v3111_v34, 0.0  ;;  %v7661_v7 = vld [vmem:[#allocation31_spill] sm:$0xff] }
 0x430   :  { %v2987_v10 = vpack.c.bf16 %v2937_v35, %v2936_v48  ;;  %v2207_v48 = vadd.f32 %v2079_v24, %v1689_v59  ;;  %v3106_v35 = vadd.f32 %v6696_v55, %v3105_v25  ;;  %v526_v24 = vmul.f32 %v4826_v1, %v7660_v15 }
 0x431   :  { %v2333_v43 = vmax.f32 %v2205_v23, 0.0  ;;  %v1051_v59 = vmul.f32 %v4835_v13, %v7661_v7 }
 0x432   :  { %3147 = vmatmul.bf16.gmra.mxu2 %v2987_v10  ;;  %v3113_v10 = vpop.f32.mrf.mxu2  ;;  %v3252_v28 = vmax.f32 %v3106_v35, 0.0  ;;  %v2335_v3 = vmax.f32 %v2207_v48, 0.0  ;;  %v3253_v35 = vmax.f32 %v3109_v8, 0.0  ;;  %v659_v18 = vadd.f32 %v4837_v14, %v526_v24 }
 0x433   :  { %v3114_v8 = vadd.f32 %v6696_v55, %v3113_v10 }
 0x434   :  { %v3311_v52 = vpack.c.bf16 %v3252_v28, %v3251_v26  ;;  %v2419_v21 = vpack.c.bf16 %v2335_v3, %v2333_v43  ;;  %v3312_v23 = vpack.c.bf16 %v3254_v11, %v3253_v35  ;;  %v7664_v3 = vld [vmem:[#allocation38_spill] sm:$0xff] }
 0x435   :  { %v1567_v26 = vmul.f32 %v4850_v33, %v7664_v3 }
 0x43a   :  { %v3115_v62 = vpop.f32.mrf.mxu2 }
 0x43c   :  { %2849 = vmatmul.bf16.gmra.mxu1 %v7656_v63  ;;  %4207 = vmatmul.msk.bf16.gmra.mxu0 %vm3375_vm0, %v3310_v12  ;;  %v528_v63 = vmul.f32 %v4826_v1, %v7659_v17 }
 0x43e   :  { %v661_v48 = vadd.f32 %v4837_v14, %v528_v63 }
 0x440   :  { %v1179_v28 = vadd.f32 %v1051_v59, %v661_v48  ;;  %v3255_v48 = vmax.f32 %v3114_v8, 0.0 }
 0x442   :  { %v3118_v47 = vpop.f32.mrf.mxu2 }
 0x443   :  { %v2651_v27 = vpop.f32.mrf.mxu0  ;;  %v2820_v6 = vpop.f32.mrf.mxu1  ;;  %v3119_v3 = vadd.f32 %v6696_v55, %v3118_v47 }
 0x444   :  { %v2652_v5 = vadd.f32 %v6644_v32, %v2651_v27  ;;  %v7662_v27 = vld [vmem:[#allocation33_spill] sm:$0xff] }
 0x446   :  { %v2821_v56 = vadd.f32 %v2820_v6, %v2652_v5  ;;  %v1049_v6 = vmul.f32 %v4835_v13, %v7662_v27  ;;  %v7665_v5 = vld [vmem:[#allocation36_spill] sm:$0xff] }
 0x448   :  { %v2938_v20 = vmax.f32 %v2821_v56, 0.0  ;;  %v1177_v43 = vadd.f32 %v1049_v6, %v659_v18 }
 0x44b   :  { %v2653_v4 = vpop.f32.mrf.mxu0  ;;  %v2822_v12 = vpop.f32.mrf.mxu1 }
 0x44c   :  { %v2654_v25 = vadd.f32 %v6644_v32, %v2653_v4  ;;  %2854 = vmatmul.bf16.gmra.mxu1 %v2419_v21  ;;  %4208 = vmatmul.msk.bf16.gmra.mxu0 %vm3375_vm0, %v3311_v52  ;;  %v7666_v52 = vld [vmem:[#allocation39_spill] sm:$0xff] }
 0x44d   :  { %v2085_v21 = vmul.f32 %v4872_v2, %v7666_v52  ;;  %v7669_v52 = vld [vmem:[#allocation41_spill] sm:$0xff] }
 0x44e   :  { %v2823_v22 = vadd.f32 %v2822_v12, %v2654_v25  ;;  %v1697_v25 = vadd.f32 %v1569_v37, %v1179_v28  ;;  %v7667_v12 = vld [vmem:[#allocation35_spill] sm:$0xff] }
 0x450   :  { %v2939_v38 = vmax.f32 %v2823_v22, 0.0  ;;  %v2087_v22 = vmul.f32 %v4872_v2, %v7667_v12  ;;  %v3257_v12 = vmax.f32 %v3119_v3, 0.0 }
 0x452   :  { %v2988_v61 = vpack.c.bf16 %v2939_v38, %v2938_v20  ;;  %v1695_v20 = vadd.f32 %v1567_v26, %v1177_v43  ;;  %v3120_v38 = vpop.f32.mrf.mxu2  ;;  %v2215_v63 = vadd.f32 %v2087_v22, %v1697_v25 }
 0x453   :  { %v3121_v10 = vadd.f32 %v6696_v55, %v3120_v38 }
 0x454   :  { %3152 = vmatmul.bf16.gmra.mxu2 %v2988_v61  ;;  %v2213_v34 = vadd.f32 %v2085_v21, %v1695_v20  ;;  %v3116_v61 = vadd.f32 %v6696_v55, %v3115_v62  ;;  %v2343_v18 = vmax.f32 %v2215_v63, 0.0  ;;  %v534_v21 = vmul.f32 %v4826_v1, %v7669_v52  ;;  %v7672_v63 = vld [vmem:[#allocation43_spill] sm:$0xff] }
 0x455   :  { %v1575_v8 = vmul.f32 %v4850_v33, %v7672_v63 }
 0x456   :  { %v3256_v15 = vmax.f32 %v3116_v61, 0.0  ;;  %v2341_v11 = vmax.f32 %v2213_v34, 0.0  ;;  %v667_v38 = vadd.f32 %v4837_v14, %v534_v21  ;;  %v7671_v61 = vld [vmem:[#allocation42_spill] sm:$0xff] }
 0x457   :  { %v1059_v47 = vmul.f32 %v4835_v13, %v7671_v61 }
 0x458   :  { %v3313_v6 = vpack.c.bf16 %v3256_v15, %v3255_v48  ;;  %v2423_v42 = vpack.c.bf16 %v2343_v18, %v2341_v11  ;;  %v7675_v48 = vld [vmem:[#allocation47_spill] sm:$0xff] }
 0x45c   :  { %2859 = vmatmul.bf16.gmra.mxu1 %v7665_v5  ;;  %4209 = vmatmul.msk.bf16.gmra.mxu0 %vm3375_vm0, %v3312_v23  ;;  %v3123_v23 = vpop.f32.mrf.mxu2  ;;  %v7668_v5 = vld [vmem:[#allocation19_spill] sm:$0xff] }
 0x45d   :  { %v536_v43 = vmul.f32 %v4826_v1, %v7668_v5  ;;  %v7673_v1 = vld [vmem:[#allocation46_spill] sm:$0xff]  ;;  %v3124_v3 = vadd.f32 %v6696_v55, %v3123_v23 }
 0x45e   :  { %v2656_v4 = vpop.f32.mrf.mxu0  ;;  %v2825_v56 = vpop.f32.mrf.mxu1 }
 0x45f   :  { %v2657_v17 = vadd.f32 %v6644_v32, %v2656_v4  ;;  %v3258_v4 = vmax.f32 %v3121_v10, 0.0  ;;  %v669_v34 = vadd.f32 %v4837_v14, %v536_v43  ;;  %v2093_v14 = vmul.f32 %v4872_v2, %v7675_v48 }
 0x461   :  { %v2826_v7 = vadd.f32 %v2825_v56, %v2657_v17  ;;  %v7670_v56 = vld [vmem:[#allocation44_spill] sm:$0xff]  ;;  %v3314_v17 = vpack.c.bf16 %v3258_v4, %v3257_v12 }
 0x462   :  { %v1057_v25 = vmul.f32 %v4835_v13, %v7670_v56  ;;  %v7676_v13 = vld [vmem:[#allocation45_spill] sm:$0xff] }
 0x463   :  { %v2940_v37 = vmax.f32 %v2826_v7, 0.0  ;;  %v7674_v7 = vld [vmem:[#allocation40_spill] sm:$0xff]  ;;  %v2095_v18 = vmul.f32 %v4872_v2, %v7676_v13  ;;  %v3259_v2 = vmax.f32 %v3124_v3, 0.0 }
 0x464   :  { %v3125_v26 = vpop.f32.mrf.mxu2  ;;  %v1185_v15 = vadd.f32 %v1057_v25, %v667_v38 }
 0x466   :  { %v2658_v24 = vpop.f32.mrf.mxu0  ;;  %v2827_v35 = vpop.f32.mrf.mxu1 }
 0x467   :  { %v2659_v59 = vadd.f32 %v6644_v32, %v2658_v24  ;;  %v1577_v24 = vmul.f32 %v4850_v33, %v7673_v1  ;;  %v3126_v33 = vadd.f32 %v6696_v55, %v3125_v26 }
 0x469   :  { %v2828_v27 = vadd.f32 %v2827_v35, %v2659_v59  ;;  %v1187_v59 = vadd.f32 %v1059_v47, %v669_v34  ;;  %v3260_v52 = vmax.f32 %v3126_v33, 0.0  ;;  %v2667_v47 = vadd.f32 %v6644_v32, %v5721_v44 }
 0x46b   :  { %v2941_v62 = vmax.f32 %v2828_v27, 0.0  ;;  %v1705_v27 = vadd.f32 %v1577_v24, %v1187_v59  ;;  %v3315_v61 = vpack.c.bf16 %v3260_v52, %v3259_v2 }
 0x46c   :  { %2864 = vmatmul.bf16.gmra.mxu1 %v2423_v42  ;;  %4210 = vmatmul.msk.bf16.gmra.mxu0 %vm3375_vm0, %v3313_v6  ;;  %v3128_v11 = vpop.f32.mrf.mxu2  ;;  %v1703_v6 = vadd.f32 %v1575_v8, %v1185_v15 }
 0x46d   :  { %v2989_v28 = vpack.c.bf16 %v2941_v62, %v2940_v37  ;;  %v2223_v43 = vadd.f32 %v2095_v18, %v1705_v27  ;;  %v3129_v48 = vadd.f32 %v6696_v55, %v3128_v11  ;;  %v2672_v11 = vadd.f32 %v6644_v32, %v5830_v0 }
 0x46e   :  { %v2221_v62 = vadd.f32 %v2093_v14, %v1703_v6 }
 0x46f   :  { %3157 = vmatmul.bf16.gmra.mxu2 %v2989_v28 }
 0x470   :  { %v2349_v25 = vmax.f32 %v2221_v62, 0.0 }
 0x474   :  { %v3130_v21 = vpop.f32.mrf.mxu2 }
 0x475   :  { %v3131_v1 = vadd.f32 %v6696_v55, %v3130_v21 }
 0x477   :  { %v3262_v18 = vmax.f32 %v3131_v1, 0.0 }
 0x479   :  { %v2661_v22 = vpop.f32.mrf.mxu0  ;;  %v2830_v20 = vpop.f32.mrf.mxu1 }
 0x47a   :  { %v2662_v35 = vadd.f32 %v6644_v32, %v2661_v22  ;;  %v2351_v22 = vmax.f32 %v2223_v43, 0.0 }
 0x47c   :  { %2869 = vmatmul.bf16.gmra.mxu1 %v7674_v7  ;;  %4211 = vmatmul.msk.bf16.gmra.mxu0 %vm3375_vm0, %v3314_v17  ;;  %v2831_v28 = vadd.f32 %v2830_v20, %v2662_v35  ;;  %v2427_v26 = vpack.c.bf16 %v2351_v22, %v2349_v25  ;;  %v6843_v20 = vld [vmem:[%s7512_s8] ss:$0 sm:$0xff]  ;;  %v3133_v23 = vpop.f32.mrf.mxu2  ;;  %v2669_v17 = vadd.f32 %v6644_v32, %v5738_v58  ;;  %v3261_v58 = vmax.f32 %v3129_v48, 0.0 }
 0x47e   :  { %v2942_v4 = vmax.f32 %v2831_v28, 0.0  ;;  %v3316_v33 = vpack.c.bf16 %v3262_v18, %v3261_v58  ;;  %v2674_v28 = vadd.f32 %v6644_v32, %v5851_v31 }
 0x481   :  { %v2663_v42 = vpop.f32.mrf.mxu0  ;;  %v2832_v37 = vpop.f32.mrf.mxu1 }
 0x482   :  { %v2664_v10 = vadd.f32 %v6644_v32, %v2663_v42 }
 0x484   :  { %v2833_v5 = vadd.f32 %v2832_v37, %v2664_v10  ;;  %v3135_v6 = vpop.f32.mrf.mxu2 }
 0x485   :  { %v3136_v52 = vadd.f32 %v6696_v55, %v3135_v6 }
 0x486   :  { %v2943_v56 = vmax.f32 %v2833_v5, 0.0 }
 0x487   :  { %v3264_v0 = vmax.f32 %v3136_v52, 0.0  ;;  %v7680_v52 = vld [vmem:[#allocation23_spill] sm:$0xff] }
 0x488   :  { %v2990_v12 = vpack.c.bf16 %v2943_v56, %v2942_v4 }
 0x489   :  { %v2835_v34 = vpop.f32.mrf.mxu1  ;;  %v3481_v38 = vpop.f32.mrf.mxu0 }
 0x48a   :  { %3162 = vmatmul.bf16.gmra.mxu2 %v2990_v12  ;;  %v3482_v63 = vadd.f32 %v6843_v20, %v3481_v38  ;;  %v2836_v24 = vadd.f32 %v2835_v34, %v2667_v47 }
 0x48c   :  { %2874 = vmatmul.bf16.gmra.mxu1 %v2427_v26  ;;  %4212 = vmatmul.msk.bf16.gmra.mxu0 %vm3375_vm0, %v3315_v61  ;;  %v3641_v14 = vmax.f32 %v3482_v63, 0.0  ;;  %v2944_v44 = vmax.f32 %v2836_v24, 0.0  ;;  %v3138_v10 = vpop.f32.mrf.mxu2  ;;  %v7677_v63 = vld [vmem:[#allocation21_spill] sm:$0xff] }
 0x491   :  { %v2837_v8 = vpop.f32.mrf.mxu1  ;;  %v3483_v15 = vpop.f32.mrf.mxu0 }
 0x492   :  { %v2838_v7 = vadd.f32 %v2837_v8, %v2669_v17  ;;  %v3484_v59 = vadd.f32 %v6843_v20, %v3483_v15  ;;  %v7678_v8 = vld [vmem:[#allocation48_spill] sm:$0xff]  ;;  %v7679_v15 = vld [vmem:[#allocation49_spill] sm:$0xff] }
 0x493   :  { %v2679_v1 = vadd.f32 %v6644_v32, %v7679_v15 }
 0x494   :  { %v2945_v35 = vmax.f32 %v2838_v7, 0.0  ;;  %v3642_v13 = vmax.f32 %v3484_v59, 0.0  ;;  %v3140_v17 = vpop.f32.mrf.mxu2 }
 0x495   :  { %v3141_v48 = vadd.f32 %v6696_v55, %v3140_v17 }
 0x496   :  { %v6854_v27 = vpack.c.bf16 %v3642_v13, %v3641_v14  ;;  %v2991_v42 = vpack.c.bf16 %v2945_v35, %v2944_v44  ;;  %v3139_v44 = vadd.f32 %v6696_v55, %v3138_v10 }
 0x499   :  { %v2840_v37 = vpop.f32.mrf.mxu1  ;;  %v3486_v62 = vpop.f32.mrf.mxu0 }
 0x49a   :  { %3167 = vmatmul.bf16.gmra.mxu2 %v2991_v42  ;;  %v3487_v3 = vadd.f32 %v6843_v20, %v3486_v62  ;;  %v2841_v21 = vadd.f32 %v2840_v37, %v2672_v11  ;;  %v3266_v37 = vmax.f32 %v3141_v48, 0.0  ;;  %v3265_v11 = vmax.f32 %v3139_v44, 0.0 }
 0x49c   :  { %2879 = vmatmul.bf16.gmra.mxu1 %v5614_v16  ;;  %4213 = vmatmul.msk.bf16.gmra.mxu0 %vm3375_vm0, %v3316_v33  ;;  %v3134_v16 = vadd.f32 %v6696_v55, %v3133_v23  ;;  %v3643_v25 = vmax.f32 %v3487_v3, 0.0  ;;  %v2946_v22 = vmax.f32 %v2841_v21, 0.0  ;;  %v2677_v23 = vadd.f32 %v6644_v32, %v7678_v8  ;;  %v3143_v18 = vpop.f32.mrf.mxu2 }
 0x49e   :  { %v3263_v31 = vmax.f32 %v3134_v16, 0.0 }
 0x4a0   :  { %v3317_v47 = vpack.c.bf16 %v3264_v0, %v3263_v31 }
 0x4a1   :  { %v2842_v5 = vpop.f32.mrf.mxu1  ;;  %v3488_v43 = vpop.f32.mrf.mxu0 }
 0x4a2   :  { %v2843_v4 = vadd.f32 %v2842_v5, %v2674_v28  ;;  %v3489_v56 = vadd.f32 %v6843_v20, %v3488_v43  ;;  %v3318_v43 = vpack.c.bf16 %v3266_v37, %v3265_v11 }
 0x4a4   :  { %v2947_v2 = vmax.f32 %v2843_v4, 0.0  ;;  %v3644_v12 = vmax.f32 %v3489_v56, 0.0  ;;  %v3145_v21 = vpop.f32.mrf.mxu2  ;;  %v7681_v4 = vld [vmem:[#allocation25_spill] sm:$0xff]  ;;  %v2684_v56 = vadd.f32 %v6644_v32, %v5994_v53 }
 0x4a5   :  { %v2682_v10 = vadd.f32 %v6644_v32, %v7681_v4  ;;  %v7685_v4 = vld [vmem:[#allocation53_spill] sm:$0xff] }
 0x4a6   :  { %v6866_v34 = vpack.c.bf16 %v3644_v12, %v3643_v25  ;;  %v2992_v38 = vpack.c.bf16 %v2947_v2, %v2946_v22  ;;  %v3146_v12 = vadd.f32 %v6696_v55, %v3145_v21 }
 0x4a9   :  { %v2845_v61 = vpop.f32.mrf.mxu1  ;;  %v3491_v26 = vpop.f32.mrf.mxu0 }
 0x4aa   :  { %3172 = vmatmul.bf16.gmra.mxu2 %v2992_v38  ;;  %v3492_v24 = vadd.f32 %v6843_v20, %v3491_v26  ;;  %v2846_v14 = vadd.f32 %v2845_v61, %v2677_v23  ;;  %v3144_v38 = vadd.f32 %v6696_v55, %v3143_v18 }
 0x4ac   :  { %2884 = vmatmul.bf16.gmra.mxu1 %v7677_v63  ;;  %4214 = vmatmul.msk.bf16.gmra.mxu0 %vm3375_vm0, %v3317_v47  ;;  %v3645_v58 = vmax.f32 %v3492_v24, 0.0  ;;  %v2948_v62 = vmax.f32 %v2846_v14, 0.0  ;;  %v3268_v63 = vmax.f32 %v3146_v12, 0.0  ;;  %v3267_v53 = vmax.f32 %v3144_v38, 0.0  ;;  %v7683_v14 = vld [vmem:[#allocation51_spill] sm:$0xff] }
 0x4ae   :  { %v3319_v24 = vpack.c.bf16 %v3268_v63, %v3267_v53  ;;  %v7687_v63 = vld [vmem:[#allocation55_spill] sm:$0xff] }
 0x4b1   :  { %v2847_v7 = vpop.f32.mrf.mxu1  ;;  %v3493_v59 = vpop.f32.mrf.mxu0 }
 0x4b2   :  { %v2848_v35 = vadd.f32 %v2847_v7, %v2679_v1  ;;  %v3494_v13 = vadd.f32 %v6843_v20, %v3493_v59  ;;  %v7682_v59 = vld [vmem:[#allocation50_spill] sm:$0xff] }
 0x4b3   :  { %v2687_v48 = vadd.f32 %v6644_v32, %v7682_v59 }
 0x4b4   :  { %v2949_v6 = vmax.f32 %v2848_v35, 0.0  ;;  %v3646_v42 = vmax.f32 %v3494_v13, 0.0  ;;  %v2689_v35 = vadd.f32 %v6644_v32, %v7683_v14 }
 0x4b5   :  { %v3148_v17 = vpop.f32.mrf.mxu2 }
 0x4b6   :  { %v6878_v33 = vpack.c.bf16 %v3646_v42, %v3645_v58  ;;  %v2993_v28 = vpack.c.bf16 %v2949_v6, %v2948_v62  ;;  %v3149_v6 = vadd.f32 %v6696_v55, %v3148_v17 }
 0x4b8   :  { %v3269_v11 = vmax.f32 %v3149_v6, 0.0 }
 0x4b9   :  { %v2850_v3 = vpop.f32.mrf.mxu1  ;;  %v3496_v5 = vpop.f32.mrf.mxu0 }
 0x4ba   :  { %3177 = vmatmul.bf16.gmra.mxu2 %v2993_v28  ;;  %v3497_v16 = vadd.f32 %v6843_v20, %v3496_v5  ;;  %v2851_v0 = vadd.f32 %v2850_v3, %v2682_v10  ;;  %v2694_v10 = vadd.f32 %v6644_v32, %v7685_v4 }
 0x4bc   :  { %2889 = vmatmul.bf16.gmra.mxu1 %v7680_v52  ;;  %4215 = vmatmul.msk.bf16.gmra.mxu0 %vm3375_vm0, %v3318_v43  ;;  %v3647_v61 = vmax.f32 %v3497_v16, 0.0  ;;  %v2950_v8 = vmax.f32 %v2851_v0, 0.0  ;;  %v7684_v52 = vld [vmem:[#allocation52_spill] sm:$0xff] }
 0x4bd   :  { %v3150_v7 = vpop.f32.mrf.mxu2  ;;  %v2692_v21 = vadd.f32 %v6644_v32, %v7684_v52 }
 0x4be   :  { %v3151_v18 = vadd.f32 %v6696_v55, %v3150_v7 }
 0x4c0   :  { %v3270_v37 = vmax.f32 %v3151_v18, 0.0 }
 0x4c1   :  { %v2852_v25 = vpop.f32.mrf.mxu1  ;;  %v3498_v2 = vpop.f32.mrf.mxu0 }
 0x4c2   :  { %v2853_v22 = vadd.f32 %v2852_v25, %v2684_v56  ;;  %v3499_v31 = vadd.f32 %v6843_v20, %v3498_v2  ;;  %v3320_v5 = vpack.c.bf16 %v3270_v37, %v3269_v11 }
 0x4c4   :  { %v2951_v26 = vmax.f32 %v2853_v22, 0.0  ;;  %v3648_v47 = vmax.f32 %v3499_v31, 0.0 }
 0x4c6   :  { %v6890_v23 = vpack.c.bf16 %v3648_v47, %v3647_v61  ;;  %v2994_v15 = vpack.c.bf16 %v2951_v26, %v2950_v8  ;;  %v7686_v47 = vld [vmem:[#allocation54_spill] sm:$0xff]  ;;  %v2699_v8 = vadd.f32 %v6644_v32, %v7687_v63 }
 0x4c7   :  { %v2697_v17 = vadd.f32 %v6644_v32, %v7686_v47 }
 0x4c9   :  { %v2855_v1 = vpop.f32.mrf.mxu1 }
 0x4ca   :  { %3182 = vmatmul.bf16.gmra.mxu2 %v2994_v15  ;;  %v2856_v44 = vadd.f32 %v2855_v1, %v2687_v48 }
 0x4cc   :  { %2894 = vmatmul.bf16.gmra.mxu1 %v5988_v36  ;;  %4216 = vmatmul.msk.bf16.gmra.mxu0 %vm3375_vm0, %v3319_v24  ;;  %v2952_v62 = vmax.f32 %v2856_v44, 0.0 }
 0x4d1   :  { %v2857_v13 = vpop.f32.mrf.mxu1 }
 0x4d2   :  { %v2858_v58 = vadd.f32 %v2857_v13, %v2689_v35  ;;  %v6915_v13 = vpop.f32.mrf.mxu0 }
 0x4d4   :  { %v2953_v42 = vmax.f32 %v2858_v58, 0.0 }
 0x4d6   :  { %v2995_v28 = vpack.c.bf16 %v2953_v42, %v2952_v62  ;;  %v7688_v42 = vld [vmem:[#allocation56_spill] sm:$0xff]  ;;  %v7689_v62 = vld [vmem:[#allocation57_spill] sm:$0xff] }
 0x4d7   :  { %v3153_v36 = vpop.f32.mrf.mxu2  ;;  %v2702_v37 = vadd.f32 %v6644_v32, %v7688_v42 }
 0x4d8   :  { %v3154_v12 = vadd.f32 %v6696_v55, %v3153_v36  ;;  %v2704_v36 = vadd.f32 %v6644_v32, %v7689_v62 }
 0x4d9   :  { %v2860_v3 = vpop.f32.mrf.mxu1 }
 0x4da   :  { %3187 = vmatmul.bf16.gmra.mxu2 %v2995_v28  ;;  %v2861_v16 = vadd.f32 %v2860_v3, %v2692_v21 }
 0x4dc   :  { %2899 = vmatmul.bf16.gmra.mxu1 %v6116_v30  ;;  %4217 = vmatmul.msk.bf16.gmra.mxu0 %vm3375_vm0, %v3320_v5  ;;  %v2954_v22 = vmax.f32 %v2861_v16, 0.0  ;;  %v3271_v30 = vmax.f32 %v3154_v12, 0.0  ;;  %v6923_v5 = vpop.f32.mrf.mxu0  ;;  %v2707_v16 = vadd.f32 %v6644_v32, %v6420_v39 }
 0x4df   :  { %v3155_v43 = vpop.f32.mrf.mxu2 }
 0x4e0   :  { %v3156_v25 = vadd.f32 %v6696_v55, %v3155_v43 }
 0x4e1   :  { %v2862_v56 = vpop.f32.mrf.mxu1 }
 0x4e2   :  { %v2863_v2 = vadd.f32 %v2862_v56, %v2694_v10  ;;  %v3272_v31 = vmax.f32 %v3156_v25, 0.0  ;;  %v2709_v25 = vadd.f32 %v6644_v32, %v6444_v19  ;;  %v6939_v32 = vld [vmem:[%s7508_s4] ss:$0 sm:$0xff] }
 0x4e3   :  { %v2717_v62 = vadd.f32 %v6939_v32, %v6501_v60 }
 0x4e4   :  { %v2955_v0 = vmax.f32 %v2863_v2, 0.0  ;;  %v3321_v26 = vpack.c.bf16 %v3272_v31, %v3271_v30  ;;  %v6925_v56 = vpop.f32.mrf.mxu0 }
 0x4e6   :  { %v2996_v38 = vpack.c.bf16 %v2955_v0, %v2954_v22 }
 0x4e9   :  { %v2865_v61 = vpop.f32.mrf.mxu1 }
 0x4ea   :  { %3192 = vmatmul.bf16.gmra.mxu2 %v2996_v38  ;;  %v2866_v15 = vadd.f32 %v2865_v61, %v2697_v17 }
 0x4ec   :  { %2904 = vmatmul.bf16.gmra.mxu1 %v6279_v49  ;;  %4218 = vmatmul.msk.bf16.gmra.mxu0 %vm3375_vm0, %v3321_v26  ;;  %v2956_v59 = vmax.f32 %v2866_v15, 0.0  ;;  %v6933_v26 = vpop.f32.mrf.mxu0  ;;  %v2714_v15 = vadd.f32 %v6939_v32, %v6494_v51 }
 0x4f1   :  { %v2867_v53 = vpop.f32.mrf.mxu1 }
 0x4f2   :  { %v2868_v1 = vadd.f32 %v2867_v53, %v2699_v8  ;;  %v3158_v24 = vpop.f32.mrf.mxu2  ;;  %v2712_v53 = vadd.f32 %v6939_v32, %v6466_v40 }
 0x4f3   :  { %v3159_v14 = vadd.f32 %v6696_v55, %v3158_v24 }
 0x4f4   :  { %v2957_v7 = vmax.f32 %v2868_v1, 0.0  ;;  %v6945_v24 = vpop.f32.mrf.mxu0 }
 0x4f5   :  { %v3273_v44 = vmax.f32 %v3159_v14, 0.0 }
 0x4f6   :  { %v2997_v48 = vpack.c.bf16 %v2957_v7, %v2956_v59 }
 0x4f9   :  { %v2870_v35 = vpop.f32.mrf.mxu1 }
 0x4fa   :  { %v3160_v49 = vpop.f32.mrf.mxu2  ;;  %3197 = vmatmul.bf16.gmra.mxu2 %v2997_v48  ;;  %v2871_v28 = vadd.f32 %v2870_v35, %v2702_v37 }
 0x4fb   :  { %v3161_v18 = vadd.f32 %v6696_v55, %v3160_v49 }
 0x4fc   :  { %v2958_v52 = vmax.f32 %v2871_v28, 0.0  ;;  %v6949_v37 = vpop.f32.mrf.mxu0 }
 0x4fd   :  { %v3274_v58 = vmax.f32 %v3161_v18, 0.0 }
 0x4ff   :  { %v3322_v6 = vpack.c.bf16 %v3274_v58, %v3273_v44 }
 0x501   :  { %v2872_v11 = vpop.f32.mrf.mxu1  ;;  %4219 = vmatmul.msk.bf16.gmra.mxu0 %vm3375_vm0, %v3322_v6 }
 0x502   :  { %v2873_v3 = vadd.f32 %v2872_v11, %v2704_v36  ;;  %v2719_v36 = vadd.f32 %v6939_v32, %v6533_v46 }
 0x504   :  { %v2959_v43 = vmax.f32 %v2873_v3, 0.0 }
 0x506   :  { %v2998_v21 = vpack.c.bf16 %v2959_v43, %v2958_v52 }
 0x509   :  { %v2875_v4 = vpop.f32.mrf.mxu1 }
 0x50a   :  { %3202 = vmatmul.bf16.gmra.mxu2 %v2998_v21  ;;  %v2876_v12 = vadd.f32 %v2875_v4, %v2707_v16  ;;  %v6957_v4 = vpop.f32.mrf.mxu0 }
 0x50c   :  { %v2960_v38 = vmax.f32 %v2876_v12, 0.0 }
 0x50d   :  { %v3163_v10 = vpop.f32.mrf.mxu2 }
 0x50e   :  { %v3164_v22 = vadd.f32 %v6696_v55, %v3163_v10 }
 0x510   :  { %v3275_v47 = vmax.f32 %v3164_v22, 0.0  ;;  %v2722_v22 = vadd.f32 %v6939_v32, %v6545_v45 }
 0x511   :  { %v2877_v2 = vpop.f32.mrf.mxu1 }
 0x512   :  { %v2878_v0 = vadd.f32 %v2877_v2, %v2709_v25 }
 0x514   :  { %v2961_v31 = vmax.f32 %v2878_v0, 0.0 }
 0x515   :  { %v3165_v30 = vpop.f32.mrf.mxu2 }
 0x516   :  { %v3166_v61 = vadd.f32 %v6696_v55, %v3165_v30  ;;  %v2999_v17 = vpack.c.bf16 %v2961_v31, %v2960_v38  ;;  %v2724_v31 = vadd.f32 %v6939_v32, %v6552_v54  ;;  %v6965_v30 = vpop.f32.mrf.mxu0 }
 0x518   :  { %v3276_v63 = vmax.f32 %v3166_v61, 0.0 }
 0x519   :  { %v2880_v8 = vpop.f32.mrf.mxu1 }
 0x51a   :  { %v3323_v39 = vpack.c.bf16 %v3276_v63, %v3275_v47  ;;  %3207 = vmatmul.bf16.gmra.mxu2 %v2999_v17  ;;  %v2881_v7 = vadd.f32 %v2880_v8, %v2712_v53 }
 0x51c   :  { %4220 = vmatmul.msk.bf16.gmra.mxu0 %vm3375_vm0, %v3323_v39  ;;  %v2962_v49 = vmax.f32 %v2881_v7, 0.0 }
 0x51d   :  { %v3168_v19 = vpop.f32.mrf.mxu2 }
 0x51e   :  { %v3169_v48 = vadd.f32 %v6696_v55, %v3168_v19  ;;  %v6969_v45 = vpop.f32.mrf.mxu0 }
 0x520   :  { %v3277_v44 = vmax.f32 %v3169_v48, 0.0  ;;  %v2727_v48 = vadd.f32 %v6939_v32, %v6560_v9 }
 0x521   :  { %v2882_v1 = vpop.f32.mrf.mxu1 }
 0x522   :  { %v2883_v59 = vadd.f32 %v2882_v1, %v2714_v15 }
 0x524   :  { %v2963_v14 = vmax.f32 %v2883_v59, 0.0 }
 0x525   :  { %v3170_v35 = vpop.f32.mrf.mxu2 }
 0x526   :  { %v3171_v18 = vadd.f32 %v6696_v55, %v3170_v35  ;;  %v3000_v58 = vpack.c.bf16 %v2963_v14, %v2962_v49  ;;  %v2729_v14 = vadd.f32 %v6939_v32, %v6580_v57 }
 0x528   :  { %v3278_v6 = vmax.f32 %v3171_v18, 0.0 }
 0x529   :  { %v2885_v42 = vpop.f32.mrf.mxu1 }
 0x52a   :  { %v3324_v40 = vpack.c.bf16 %v3278_v6, %v3277_v44  ;;  %3212 = vmatmul.bf16.gmra.mxu2 %v3000_v58  ;;  %v2886_v28 = vadd.f32 %v2885_v42, %v2717_v62  ;;  %v6976_v44 = vpop.f32.mrf.mxu0 }
 0x52c   :  { %4221 = vmatmul.msk.bf16.gmra.mxu0 %vm3375_vm0, %v3324_v40  ;;  %v2964_v10 = vmax.f32 %v2886_v28, 0.0 }
 0x52d   :  { %v3173_v51 = vpop.f32.mrf.mxu2 }
 0x52e   :  { %v3174_v43 = vadd.f32 %v6696_v55, %v3173_v51 }
 0x530   :  { %v3279_v25 = vmax.f32 %v3174_v43, 0.0  ;;  %v2732_v43 = vadd.f32 %v6939_v32, %v6582_v41 }
 0x531   :  { %v2887_v11 = vpop.f32.mrf.mxu1 }
 0x532   :  { %v2888_v3 = vadd.f32 %v2887_v11, %v2719_v36 }
 0x534   :  { %v2965_v52 = vmax.f32 %v2888_v3, 0.0  ;;  %v6981_v3 = vpop.f32.mrf.mxu0 }
 0x535   :  { %v3175_v21 = vpop.f32.mrf.mxu2 }
 0x536   :  { %v3176_v16 = vadd.f32 %v6696_v55, %v3175_v21  ;;  %v3001_v2 = vpack.c.bf16 %v2965_v52, %v2964_v10  ;;  %v2734_v52 = vadd.f32 %v6939_v32, %v6584_v50 }
 0x538   :  { %v3280_v12 = vmax.f32 %v3176_v16, 0.0  ;;  %v6990_v16 = vld [vmem:[%s7510_s6] ss:$0 sm:$0xff] }
 0x539   :  { %v2890_v0 = vpop.f32.mrf.mxu1 }
 0x53a   :  { %v3325_v60 = vpack.c.bf16 %v3280_v12, %v3279_v25  ;;  %3217 = vmatmul.bf16.gmra.mxu2 %v3001_v2  ;;  %v2891_v61 = vadd.f32 %v2890_v0, %v2722_v22 }
 0x53c   :  { %4222 = vmatmul.msk.bf16.gmra.mxu0 %vm3375_vm0, %v3325_v60  ;;  %v2966_v39 = vmax.f32 %v2891_v61, 0.0  ;;  %v4305_v61 = vld [vmem:[%s7513_s9 + $0x8] sm:$0xff] }
 0x53d   :  { %v3178_v46 = vpop.f32.mrf.mxu2  ;;  %3860 = vmatpush.bf16.msrb.mxu3 %v4305_v61 }
 0x53e   :  { %v3179_v17 = vadd.f32 %v6696_v55, %v3178_v46  ;;  %v6994_v46 = vpop.f32.mrf.mxu0 }
 0x540   :  { %v3281_v53 = vmax.f32 %v3179_v17, 0.0  ;;  %v2737_v17 = vadd.f32 %v6939_v32, %v6598_v29 }
 0x541   :  { %v2892_v38 = vpop.f32.mrf.mxu1 }
 0x542   :  { %v2893_v47 = vadd.f32 %v2892_v38, %v2724_v31 }
 0x544   :  { %v2967_v63 = vmax.f32 %v2893_v47, 0.0 }
 0x545   :  { %v3180_v8 = vpop.f32.mrf.mxu2 }
 0x546   :  { %v3181_v19 = vadd.f32 %v6696_v55, %v3180_v8  ;;  %v3002_v15 = vpack.c.bf16 %v2967_v63, %v2966_v39  ;;  %v7690_v63 = vld [vmem:[#allocation58_spill] sm:$0xff] }
 0x547   :  { %v2739_v8 = vadd.f32 %v6939_v32, %v7690_v63 }
 0x548   :  { %v3282_v1 = vmax.f32 %v3181_v19, 0.0  ;;  %v7004_v19 = vpop.f32.mrf.mxu0 }
 0x549   :  { %v2895_v7 = vpop.f32.mrf.mxu1 }
 0x54a   :  { %v3326_v59 = vpack.c.bf16 %v3282_v1, %v3281_v53  ;;  %3222 = vmatmul.bf16.gmra.mxu2 %v3002_v15  ;;  %v2896_v49 = vadd.f32 %v2895_v7, %v2727_v48 }
 0x54c   :  { %4223 = vmatmul.msk.bf16.gmra.mxu0 %vm3375_vm0, %v3326_v59  ;;  %v2968_v40 = vmax.f32 %v2896_v49, 0.0 }
 0x54d   :  { %v3183_v54 = vpop.f32.mrf.mxu2 }
 0x54e   :  { %v3184_v58 = vadd.f32 %v6696_v55, %v3183_v54 }
 0x550   :  { %v3283_v62 = vmax.f32 %v3184_v58, 0.0  ;;  %v7008_v29 = vpop.f32.mrf.mxu0 }
 0x551   :  { %v2897_v35 = vpop.f32.mrf.mxu1 }
 0x552   :  { %v2898_v18 = vadd.f32 %v2897_v35, %v2729_v14 }
 0x554   :  { %v2969_v6 = vmax.f32 %v2898_v18, 0.0 }
 0x555   :  { %v3185_v42 = vpop.f32.mrf.mxu2 }
 0x556   :  { %v3186_v51 = vadd.f32 %v6696_v55, %v3185_v42  ;;  %v3003_v36 = vpack.c.bf16 %v2969_v6, %v2968_v40 }
 0x558   :  { %v3284_v11 = vmax.f32 %v3186_v51, 0.0 }
 0x559   :  { %v2900_v28 = vpop.f32.mrf.mxu1 }
 0x55a   :  { %v3327_v9 = vpack.c.bf16 %v3284_v11, %v3283_v62  ;;  %3227 = vmatmul.bf16.gmra.mxu2 %v3003_v36  ;;  %v2901_v10 = vadd.f32 %v2900_v28, %v2732_v43 }
 0x55c   :  { %4224 = vmatmul.msk.bf16.gmra.mxu0 %vm3375_vm0, %v3327_v9  ;;  %v2970_v0 = vmax.f32 %v2901_v10, 0.0 }
 0x55d   :  { %v3188_v57 = vpop.f32.mrf.mxu2 }
 0x55e   :  { %v3189_v25 = vadd.f32 %v6990_v16, %v3188_v57 }
 0x560   :  { %v3285_v41 = vmax.f32 %v3189_v25, 0.0 }
 0x561   :  { %v2902_v21 = vpop.f32.mrf.mxu1 }
 0x562   :  { %v2903_v55 = vadd.f32 %v2902_v21, %v2734_v52 }
 0x564   :  { %v2971_v2 = vmax.f32 %v2903_v55, 0.0 }
 0x565   :  { %v3190_v12 = vpop.f32.mrf.mxu2 }
 0x566   :  { %v3191_v60 = vadd.f32 %v6990_v16, %v3190_v12  ;;  %v3004_v22 = vpack.c.bf16 %v2971_v2, %v2970_v0 }
 0x568   :  { %v3286_v50 = vmax.f32 %v3191_v60, 0.0 }
 0x569   :  { %v2905_v31 = vpop.f32.mrf.mxu1 }
 0x56a   :  { %v3328_v38 = vpack.c.bf16 %v3286_v50, %v3285_v41  ;;  %3232 = vmatmul.bf16.gmra.mxu2 %v3004_v22  ;;  %v2906_v53 = vadd.f32 %v2905_v31, %v2737_v17  ;;  %v4304_v31 = vld [vmem:[%s7513_s9] sm:$0xff] }
 0x56b   :  { %3861 = vmatpush.bf16.msrb.mxu3 %v4304_v31 }
 0x56c   :  { %4225 = vmatmul.msk.bf16.gmra.mxu0 %vm3375_vm0, %v3328_v38  ;;  %v2972_v54 = vmax.f32 %v2906_v53, 0.0 }
 0x56d   :  { %v3193_v47 = vpop.f32.mrf.mxu2 }
 0x56e   :  { %v3194_v1 = vadd.f32 %v6990_v16, %v3193_v47 }
 0x570   :  { %v3287_v14 = vmax.f32 %v3194_v1, 0.0 }
 0x571   :  { %v2907_v39 = vpop.f32.mrf.mxu1 }
 0x572   :  { %v2908_v15 = vadd.f32 %v2907_v39, %v2739_v8 }
 0x574   :  { %v2973_v7 = vmax.f32 %v2908_v15, 0.0 }
 0x575   :  { %v3195_v59 = vpop.f32.mrf.mxu2 }
 0x576   :  { %v3196_v48 = vadd.f32 %v6990_v16, %v3195_v59  ;;  %v3005_v35 = vpack.c.bf16 %v2973_v7, %v2972_v54 }
 0x578   :  { %v3288_v49 = vmax.f32 %v3196_v48, 0.0 }
 0x57a   :  { %v3329_v18 = vpack.c.bf16 %v3288_v49, %v3287_v14  ;;  %3237 = vmatmul.bf16.gmra.mxu2 %v3005_v35 }
 0x57c   :  { %4226 = vmatmul.msk.bf16.gmra.mxu0 %vm3375_vm0, %v3329_v18 }
 0x57d   :  { %v3198_v32 = vpop.f32.mrf.mxu2 }
 0x57e   :  { %v3199_v58 = vadd.f32 %v6990_v16, %v3198_v32 }
 0x580   :  { %v3289_v40 = vmax.f32 %v3199_v58, 0.0 }
 0x585   :  { %v3200_v6 = vpop.f32.mrf.mxu2 }
 0x586   :  { %v3201_v42 = vadd.f32 %v6990_v16, %v3200_v6 }
 0x588   :  { %v3290_v51 = vmax.f32 %v3201_v42, 0.0 }
 0x58a   :  { %v3330_v62 = vpack.c.bf16 %v3290_v51, %v3289_v40 }
 0x58c   :  { %4227 = vmatmul.msk.bf16.vlgmr.msra.gmra.mxu3 %vm3375_vm0, %v3330_v62 }
 0x58d   :  { %v3203_v36 = vpop.f32.mrf.mxu2 }
 0x58e   :  { %v3204_v11 = vadd.f32 %v6990_v16, %v3203_v36 }
 0x590   :  { %v3291_v57 = vmax.f32 %v3204_v11, 0.0 }
 0x595   :  { %v3205_v28 = vpop.f32.mrf.mxu2 }
 0x596   :  { %v3206_v9 = vadd.f32 %v6990_v16, %v3205_v28 }
 0x598   :  { %v3292_v43 = vmax.f32 %v3206_v9, 0.0 }
 0x59a   :  { %v3331_v52 = vpack.c.bf16 %v3292_v43, %v3291_v57 }
 0x59c   :  { %4228 = vmatmul.msk.bf16.gmra.mxu3 %vm3375_vm0, %v3331_v52 }
 0x59d   :  { %v3208_v21 = vpop.f32.mrf.mxu2 }
 0x59e   :  { %v3209_v10 = vadd.f32 %v6990_v16, %v3208_v21 }
 0x5a0   :  { %v3293_v2 = vmax.f32 %v3209_v10, 0.0 }
 0x5a5   :  { %v3210_v55 = vpop.f32.mrf.mxu2 }
 0x5a6   :  { %v3211_v25 = vadd.f32 %v6990_v16, %v3210_v55 }
 0x5a8   :  { %v3294_v12 = vmax.f32 %v3211_v25, 0.0 }
 0x5aa   :  { %v3332_v0 = vpack.c.bf16 %v3294_v12, %v3293_v2 }
 0x5ac   :  { %4229 = vmatmul.msk.bf16.gmra.mxu3 %vm3375_vm0, %v3332_v0 }
 0x5ad   :  { %v3213_v60 = vpop.f32.mrf.mxu2 }
 0x5ae   :  { %v3214_v41 = vadd.f32 %v6990_v16, %v3213_v60 }
 0x5b0   :  { %v3295_v38 = vmax.f32 %v3214_v41, 0.0 }
 0x5b5   :  { %v3215_v22 = vpop.f32.mrf.mxu2 }
 0x5b6   :  { %v3216_v50 = vadd.f32 %v6990_v16, %v3215_v22 }
 0x5b8   :  { %v3296_v61 = vmax.f32 %v3216_v50, 0.0 }
 0x5ba   :  { %v3333_v47 = vpack.c.bf16 %v3296_v61, %v3295_v38 }
 0x5bc   :  { %4230 = vmatmul.msk.bf16.gmra.mxu3 %vm3375_vm0, %v3333_v47 }
 0x5bd   :  { %v3218_v17 = vpop.f32.mrf.mxu2 }
 0x5be   :  { %v3219_v63 = vadd.f32 %v6990_v16, %v3218_v17 }
 0x5c0   :  { %v3297_v53 = vmax.f32 %v3219_v63, 0.0 }
 0x5c5   :  { %v3220_v8 = vpop.f32.mrf.mxu2 }
 0x5c6   :  { %v3221_v39 = vadd.f32 %v6990_v16, %v3220_v8 }
 0x5c8   :  { %v3298_v15 = vmax.f32 %v3221_v39, 0.0 }
 0x5ca   :  { %v3334_v1 = vpack.c.bf16 %v3298_v15, %v3297_v53 }
 0x5cc   :  { %4231 = vmatmul.msk.bf16.gmra.mxu3 %vm3375_vm0, %v3334_v1 }
 0x5cd   :  { %v3223_v7 = vpop.f32.mrf.mxu2 }
 0x5ce   :  { %v3224_v59 = vadd.f32 %v6990_v16, %v3223_v7 }
 0x5d0   :  { %v3299_v14 = vmax.f32 %v3224_v59, 0.0 }
 0x5d5   :  { %v3225_v54 = vpop.f32.mrf.mxu2 }
 0x5d6   :  { %v3226_v48 = vadd.f32 %v6990_v16, %v3225_v54 }
 0x5d8   :  { %v3300_v35 = vmax.f32 %v3226_v48, 0.0 }
 0x5da   :  { %v3335_v49 = vpack.c.bf16 %v3300_v35, %v3299_v14 }
 0x5dc   :  { %4232 = vmatmul.msk.bf16.gmra.mxu3 %vm3375_vm0, %v3335_v49 }
 0x5dd   :  { %v3228_v18 = vpop.f32.mrf.mxu2 }
 0x5de   :  { %v3229_v32 = vadd.f32 %v6990_v16, %v3228_v18 }
 0x5e0   :  { %v3301_v42 = vmax.f32 %v3229_v32, 0.0 }
 0x5e5   :  { %v3230_v58 = vpop.f32.mrf.mxu2 }
 0x5e6   :  { %v3231_v6 = vadd.f32 %v6990_v16, %v3230_v58 }
 0x5e8   :  { %v3302_v40 = vmax.f32 %v3231_v6, 0.0  ;;  %v3504_v6 = vadd.f32 %v6843_v20, %v6923_v5  ;;  %v3509_v5 = vadd.f32 %v6843_v20, %v6933_v26  ;;  %v3514_v26 = vadd.f32 %v6843_v20, %v6949_v37 }
 0x5e9   :  { %v3519_v37 = vadd.f32 %v6843_v20, %v6965_v30  ;;  %v3524_v30 = vadd.f32 %v6843_v20, %v6976_v44  ;;  %v7113_v44 = vld [vmem:[%s7514_s10] ss:$0 sm:$0xff] }
 0x5ea   :  { %v3336_v51 = vpack.c.bf16 %v3302_v40, %v3301_v42  ;;  %v3650_v42 = vmax.f32 %v3504_v6, 0.0 }
 0x5ec   :  { %4233 = vmatmul.msk.bf16.gmra.mxu3 %vm3375_vm0, %v3336_v51 }
 0x5ed   :  { %v3233_v62 = vpop.f32.mrf.mxu2 }
 0x5ee   :  { %v3234_v36 = vadd.f32 %v6990_v16, %v3233_v62 }
 0x5f0   :  { %v3303_v9 = vmax.f32 %v3234_v36, 0.0 }
 0x5f5   :  { %v3235_v11 = vpop.f32.mrf.mxu2 }
 0x5f6   :  { %v3236_v28 = vadd.f32 %v6990_v16, %v3235_v11 }
 0x5f8   :  { %v3304_v57 = vmax.f32 %v3236_v28, 0.0 }
 0x5fa   :  { %v3337_v43 = vpack.c.bf16 %v3304_v57, %v3303_v9 }
 0x5fc   :  { %4234 = vmatmul.msk.bf16.gmra.mxu3 %vm3375_vm0, %v3337_v43  ;;  %v3652_v43 = vmax.f32 %v3509_v5, 0.0  ;;  %v3527_v5 = vadd.f32 %v6843_v20, %v6981_v3  ;;  %v3534_v3 = vadd.f32 %v6843_v20, %v7008_v29 }
 0x5fd   :  { %v3238_v52 = vpop.f32.mrf.mxu2 }
 0x5fe   :  { %v3239_v21 = vadd.f32 %v6990_v16, %v3238_v52 }
 0x600   :  { %v3305_v25 = vmax.f32 %v3239_v21, 0.0 }
 0x605   :  { %v3240_v10 = vpop.f32.mrf.mxu2 }
 0x606   :  { %v3241_v55 = vadd.f32 %v6990_v16, %v3240_v10 }
 0x608   :  { %v3306_v2 = vmax.f32 %v3241_v55, 0.0 }
 0x60a   :  { %v3338_v12 = vpack.c.bf16 %v3306_v2, %v3305_v25 }
 0x60c   :  { %4235 = vmatmul.msk.bf16.gmra.mxu3 %vm3375_vm0, %v3338_v12 }
 0x60f   :  { %v3596_v0 = vpop.f32.mrf.mxu3 }
 0x610   :  { %v3597_v60 = vadd.f32 %v6843_v20, %v3596_v0 }
 0x612   :  { %v3687_v50 = vmax.f32 %v3597_v60, 0.0 }
 0x617   :  { %v3598_v41 = vpop.f32.mrf.mxu3 }
 0x618   :  { %v3599_v22 = vadd.f32 %v6843_v20, %v3598_v41  ;;  %v3654_v41 = vmax.f32 %v3514_v26, 0.0 }
 0x61a   :  { %v3688_v31 = vmax.f32 %v3599_v22, 0.0 }
 0x61c   :  { %v7043_v38 = vpack.c.bf16 %v3688_v31, %v3687_v50  ;;  %4244 = vmatmul.msk.bf16.vlgmr.msrb.gmra.mxu3 %vm3757_vm1, %v6854_v27 }
 0x61f   :  { %v3601_v16 = vpop.f32.mrf.mxu3 }
 0x620   :  { %v3602_v61 = vadd.f32 %v6843_v20, %v3601_v16 }
 0x622   :  { %v3689_v63 = vmax.f32 %v3602_v61, 0.0 }
 0x627   :  { %v3603_v47 = vpop.f32.mrf.mxu3 }
 0x628   :  { %v3604_v17 = vadd.f32 %v6843_v20, %v3603_v47 }
 0x62a   :  { %v3690_v8 = vmax.f32 %v3604_v17, 0.0 }
 0x62c   :  { %v7049_v39 = vpack.c.bf16 %v3690_v8, %v3689_v63  ;;  %4245 = vmatmul.msk.bf16.gmra.mxu3 %vm3757_vm1, %v6866_v34 }
 0x62f   :  { %v3606_v53 = vpop.f32.mrf.mxu3 }
 0x630   :  { %v3607_v15 = vadd.f32 %v6843_v20, %v3606_v53  ;;  %v3656_v53 = vmax.f32 %v3519_v37, 0.0 }
 0x632   :  { %v3691_v27 = vmax.f32 %v3607_v15, 0.0 }
 0x637   :  { %v3608_v1 = vpop.f32.mrf.mxu3 }
 0x638   :  { %v3609_v7 = vadd.f32 %v6843_v20, %v3608_v1 }
 0x63a   :  { %v3692_v59 = vmax.f32 %v3609_v7, 0.0 }
 0x63c   :  { %v7055_v54 = vpack.c.bf16 %v3692_v59, %v3691_v27  ;;  %4246 = vmatmul.msk.bf16.gmra.mxu3 %vm3757_vm1, %v6878_v33  ;;  %v3502_v33 = vadd.f32 %v6843_v20, %v6915_v13  ;;  %v3507_v13 = vadd.f32 %v6843_v20, %v6925_v56  ;;  %v3512_v56 = vadd.f32 %v6843_v20, %v6945_v24 }
 0x63d   :  { %v3517_v24 = vadd.f32 %v6843_v20, %v6957_v4  ;;  %v3522_v4 = vadd.f32 %v6843_v20, %v6969_v45 }
 0x63e   :  { %v3649_v62 = vmax.f32 %v3502_v33, 0.0  ;;  %v3651_v10 = vmax.f32 %v3507_v13, 0.0  ;;  %v3653_v31 = vmax.f32 %v3512_v56, 0.0 }
 0x63f   :  { %v3611_v48 = vpop.f32.mrf.mxu3  ;;  %v3655_v7 = vmax.f32 %v3517_v24, 0.0 }
 0x640   :  { %v3612_v14 = vadd.f32 %v6843_v20, %v3611_v48  ;;  %v3709_v11 = vpack.c.bf16 %v3650_v42, %v3649_v62  ;;  %v3710_v25 = vpack.c.bf16 %v3652_v43, %v3651_v10  ;;  %v3711_v61 = vpack.c.bf16 %v3654_v41, %v3653_v31 }
 0x641   :  { %v3712_v59 = vpack.c.bf16 %v3656_v53, %v3655_v7  ;;  %v3657_v42 = vmax.f32 %v3522_v4, 0.0 }
 0x642   :  { %v3693_v34 = vmax.f32 %v3612_v14, 0.0 }
 0x647   :  { %v3613_v35 = vpop.f32.mrf.mxu3 }
 0x648   :  { %v3614_v49 = vadd.f32 %v6843_v20, %v3613_v35 }
 0x64a   :  { %v3694_v18 = vmax.f32 %v3614_v49, 0.0  ;;  %v3536_v49 = vpop.f32.mrf.mxu0 }
 0x64c   :  { %v7061_v32 = vpack.c.bf16 %v3694_v18, %v3693_v34  ;;  %4247 = vmatmul.msk.bf16.gmra.mxu3 %vm3757_vm1, %v6890_v23  ;;  %v3658_v18 = vmax.f32 %v3524_v30, 0.0 }
 0x64f   :  { %v3616_v58 = vpop.f32.mrf.mxu3 }
 0x650   :  { %v3617_v40 = vadd.f32 %v6843_v20, %v3616_v58 }
 0x652   :  { %v3695_v28 = vmax.f32 %v3617_v40, 0.0  ;;  %v3538_v6 = vpop.f32.mrf.mxu0 }
 0x657   :  { %v3618_v51 = vpop.f32.mrf.mxu3 }
 0x658   :  { %v3619_v36 = vadd.f32 %v6843_v20, %v3618_v51  ;;  %v3713_v51 = vpack.c.bf16 %v3658_v18, %v3657_v42 }
 0x65a   :  { %v3696_v9 = vmax.f32 %v3619_v36, 0.0 }
 0x65c   :  { %v7071_v57 = vpack.c.bf16 %v3696_v9, %v3695_v28  ;;  %4248 = vmatmul.msk.bf16.gmra.mxu3 %vm3757_vm1, %v3709_v11  ;;  %v3541_v9 = vpop.f32.mrf.mxu0 }
 0x65f   :  { %v3621_v23 = vpop.f32.mrf.mxu3 }
 0x660   :  { %v3622_v52 = vadd.f32 %v6843_v20, %v3621_v23  ;;  %v3529_v23 = vadd.f32 %v6843_v20, %v6994_v46 }
 0x662   :  { %v3697_v2 = vmax.f32 %v3622_v52, 0.0  ;;  %v3660_v13 = vmax.f32 %v3529_v23, 0.0  ;;  %v3659_v52 = vmax.f32 %v3527_v5, 0.0 }
 0x664   :  { %v3714_v10 = vpack.c.bf16 %v3660_v13, %v3659_v52  ;;  %v3543_v46 = vpop.f32.mrf.mxu0 }
 0x667   :  { %v3623_v21 = vpop.f32.mrf.mxu3 }
 0x668   :  { %v3624_v55 = vadd.f32 %v6843_v20, %v3623_v21 }
 0x66a   :  { %v3698_v12 = vmax.f32 %v3624_v55, 0.0 }
 0x66c   :  { %v7080_v0 = vpack.c.bf16 %v3698_v12, %v3697_v2  ;;  %4249 = vmatmul.msk.bf16.gmra.mxu3 %vm3757_vm1, %v3710_v25  ;;  %v3532_v2 = vadd.f32 %v6843_v20, %v7004_v19  ;;  %v3546_v12 = vpop.f32.mrf.mxu0 }
 0x66e   :  { %v3661_v56 = vmax.f32 %v3532_v2, 0.0 }
 0x66f   :  { %v3626_v60 = vpop.f32.mrf.mxu3 }
 0x670   :  { %v3627_v22 = vadd.f32 %v6843_v20, %v3626_v60  ;;  %v3662_v60 = vmax.f32 %v3534_v3, 0.0 }
 0x672   :  { %v3699_v47 = vmax.f32 %v3627_v22, 0.0  ;;  %v3715_v22 = vpack.c.bf16 %v3662_v60, %v3661_v56 }
 0x674   :  { %v3548_v29 = vpop.f32.mrf.mxu0 }
 0x677   :  { %v3628_v50 = vpop.f32.mrf.mxu3 }
 0x678   :  { %v3629_v16 = vadd.f32 %v6843_v20, %v3628_v50 }
 0x67a   :  { %v3700_v17 = vmax.f32 %v3629_v16, 0.0 }
 0x67c   :  { %v7089_v63 = vpack.c.bf16 %v3700_v17, %v3699_v47  ;;  %4250 = vmatmul.msk.bf16.gmra.mxu3 %vm3757_vm1, %v3711_v61  ;;  %v3551_v37 = vpop.f32.mrf.mxu0 }
 0x67f   :  { %v3631_v8 = vpop.f32.mrf.mxu3 }
 0x680   :  { %v3632_v15 = vadd.f32 %v6843_v20, %v3631_v8 }
 0x682   :  { %v3701_v48 = vmax.f32 %v3632_v15, 0.0 }
 0x684   :  { %v3553_v7 = vpop.f32.mrf.mxu0 }
 0x687   :  { %v3633_v1 = vpop.f32.mrf.mxu3 }
 0x688   :  { %v3634_v27 = vadd.f32 %v6843_v20, %v3633_v1 }
 0x68a   :  { %v3702_v14 = vmax.f32 %v3634_v27, 0.0 }
 0x68c   :  { %v7098_v35 = vpack.c.bf16 %v3702_v14, %v3701_v48  ;;  %4251 = vmatmul.msk.bf16.gmra.mxu3 %vm3757_vm1, %v3712_v59  ;;  %v3556_v30 = vpop.f32.mrf.mxu0 }
 0x68f   :  { %v3636_v34 = vpop.f32.mrf.mxu3 }
 0x690   :  { %v3637_v58 = vadd.f32 %v6843_v20, %v3636_v34 }
 0x692   :  { %v3703_v62 = vmax.f32 %v3637_v58, 0.0 }
 0x697   :  { %v3638_v33 = vpop.f32.mrf.mxu3 }
 0x698   :  { %v3639_v40 = vadd.f32 %v6843_v20, %v3638_v33  ;;  %v7149_v20 = vld [vmem:[%s7512_s8] ss:$0 sm:$0xff]  ;;  %v3558_v33 = vpop.f32.mrf.mxu0 }
 0x699   :  { %v3539_v19 = vadd.f32 %v7149_v20, %v3538_v6  ;;  %v3537_v16 = vadd.f32 %v7149_v20, %v3536_v49  ;;  %v3544_v1 = vadd.f32 %v7149_v20, %v3543_v46  ;;  %v3542_v27 = vadd.f32 %v7149_v20, %v3541_v9 }
 0x69a   :  { %v3704_v36 = vmax.f32 %v3639_v40, 0.0  ;;  %v3549_v58 = vadd.f32 %v7149_v20, %v3548_v29  ;;  %v3547_v6 = vadd.f32 %v7149_v20, %v3546_v12  ;;  %v3554_v23 = vadd.f32 %v7149_v20, %v3553_v7 }
 0x69b   :  { %v3664_v61 = vmax.f32 %v3539_v19, 0.0  ;;  %v3663_v17 = vmax.f32 %v3537_v16, 0.0  ;;  %v3666_v59 = vmax.f32 %v3544_v1, 0.0  ;;  %v3665_v14 = vmax.f32 %v3542_v27, 0.0 }
 0x69c   :  { %v7107_v11 = vpack.c.bf16 %v3704_v36, %v3703_v62  ;;  %4252 = vmatmul.msk.bf16.gmra.mxu3 %vm3757_vm1, %v3713_v51  ;;  %v3668_v42 = vmax.f32 %v3549_v58, 0.0  ;;  %v3667_v51 = vmax.f32 %v3547_v6, 0.0  ;;  %v3552_v5 = vadd.f32 %v7149_v20, %v3551_v37 }
 0x69d   :  { %v3716_v24 = vpack.c.bf16 %v3664_v61, %v3663_v17  ;;  %v3717_v34 = vpack.c.bf16 %v3666_v59, %v3665_v14  ;;  %v3670_v13 = vmax.f32 %v3554_v23, 0.0  ;;  %v3559_v2 = vadd.f32 %v7149_v20, %v3558_v33 }
 0x69e   :  { %v3718_v36 = vpack.c.bf16 %v3668_v42, %v3667_v51  ;;  %v3557_v12 = vadd.f32 %v7149_v20, %v3556_v30 }
 0x69f   :  { %v3863_v45 = vpop.f32.mrf.mxu3  ;;  %v3672_v60 = vmax.f32 %v3559_v2, 0.0 }
 0x6a0   :  { %v3864_v28 = vadd.f32 %v7113_v44, %v3863_v45  ;;  %v3561_v45 = vpop.f32.mrf.mxu0  ;;  %v3671_v56 = vmax.f32 %v3557_v12, 0.0 }
 0x6a1   :  { %v3562_v16 = vadd.f32 %v7149_v20, %v3561_v45 }
 0x6a2   :  { %4024 = vst.msk [vmem:[%s7515_s11] sm:$0xff] %vm4023_vm2, %v3864_v28 }
 0x6a7   :  { %v3865_v43 = vpop.f32.mrf.mxu3 }
 0x6a8   :  { %v3866_v21 = vadd.f32 %v7113_v44, %v3865_v43  ;;  %v3563_v43 = vpop.f32.mrf.mxu0 }
 0x6a9   :  { %v3564_v19 = vadd.f32 %v7149_v20, %v3563_v43 }
 0x6aa   :  { %4025 = vst.msk [vmem:[%s7515_s11 + $0x8] sm:$0xff] %vm4023_vm2, %v3866_v21  ;;  %v3669_v21 = vmax.f32 %v3552_v5, 0.0 }
 0x6ac   :  { %4253 = vmatmul.msk.bf16.gmra.mxu3 %vm3757_vm1, %v3714_v10  ;;  %v3719_v46 = vpack.c.bf16 %v3670_v13, %v3669_v21 }
 0x6af   :  { %v3868_v55 = vpop.f32.mrf.mxu3 }
 0x6b0   :  { %v3869_v25 = vadd.f32 %v7113_v44, %v3868_v55  ;;  %v3566_v3 = vpop.f32.mrf.mxu0 }
 0x6b1   :  { %v3567_v27 = vadd.f32 %v7149_v20, %v3566_v3 }
 0x6b2   :  { %4026 = vst.msk [vmem:[%s7515_s11 + $0x10] sm:$0xff] %vm4023_vm2, %v3869_v25 }
 0x6b3   :  { %v3675_v14 = vmax.f32 %v3567_v27, 0.0 }
 0x6b7   :  { %v3870_v26 = vpop.f32.mrf.mxu3 }
 0x6b8   :  { %v3871_v41 = vadd.f32 %v7113_v44, %v3870_v26  ;;  %v3568_v29 = vpop.f32.mrf.mxu0 }
 0x6b9   :  { %v3569_v7 = vadd.f32 %v7149_v20, %v3568_v29 }
 0x6ba   :  { %4027 = vst.msk [vmem:[%s7515_s11 + $0x18] sm:$0xff] %vm4023_vm2, %v3871_v41 }
 0x6bb   :  { %v3676_v59 = vmax.f32 %v3569_v7, 0.0 }
 0x6bc   :  { %4254 = vmatmul.msk.bf16.gmra.mxu3 %vm3757_vm1, %v3715_v22  ;;  %v3720_v22 = vpack.c.bf16 %v3672_v60, %v3671_v56 }
 0x6bd   :  { %v3722_v30 = vpack.c.bf16 %v3676_v59, %v3675_v14 }
 0x6bf   :  { %v3873_v50 = vpop.f32.mrf.mxu3 }
 0x6c0   :  { %v3874_v31 = vadd.f32 %v7113_v44, %v3873_v50  ;;  %v3571_v61 = vpop.f32.mrf.mxu0 }
 0x6c1   :  { %v3572_v33 = vadd.f32 %v7149_v20, %v3571_v61 }
 0x6c2   :  { %4028 = vst.msk [vmem:[%s7515_s11 + $0x20] sm:$0xff] %vm4023_vm2, %v3874_v31 }
 0x6c3   :  { %v3677_v51 = vmax.f32 %v3572_v33, 0.0 }
 0x6c7   :  { %v3875_v47 = vpop.f32.mrf.mxu3 }
 0x6c8   :  { %v3876_v8 = vadd.f32 %v7113_v44, %v3875_v47  ;;  %v3674_v47 = vmax.f32 %v3564_v19, 0.0 }
 0x6ca   :  { %4029 = vst.msk [vmem:[%s7515_s11 + $0x28] sm:$0xff] %vm4023_vm2, %v3876_v8  ;;  %v3673_v8 = vmax.f32 %v3562_v16, 0.0 }
 0x6cc   :  { %4255 = vmatmul.msk.bf16.gmra.mxu3 %vm3757_vm1, %v3716_v24  ;;  %v3721_v24 = vpack.c.bf16 %v3674_v47, %v3673_v8 }
 0x6cf   :  { %v3878_v53 = vpop.f32.mrf.mxu3 }
 0x6d0   :  { %v3879_v15 = vadd.f32 %v7113_v44, %v3878_v53  ;;  %v3573_v53 = vpop.f32.mrf.mxu0 }
 0x6d1   :  { %v3574_v58 = vadd.f32 %v7149_v20, %v3573_v53 }
 0x6d2   :  { %4030 = vst.msk [vmem:[%s7515_s11 + $0x30] sm:$0xff] %vm4023_vm2, %v3879_v15 }
 0x6d3   :  { %v3678_v42 = vmax.f32 %v3574_v58, 0.0 }
 0x6d7   :  { %v3880_v48 = vpop.f32.mrf.mxu3 }
 0x6d8   :  { %v3881_v49 = vadd.f32 %v7113_v44, %v3880_v48 }
 0x6da   :  { %4031 = vst.msk [vmem:[%s7515_s11 + $0x38] sm:$0xff] %vm4023_vm2, %v3881_v49 }
 0x6dc   :  { %4256 = vmatmul.msk.bf16.gmra.mxu3 %vm3757_vm1, %v3717_v34  ;;  %v3576_v34 = vpop.f32.mrf.mxu0 }
 0x6dd   :  { %v3577_v5 = vadd.f32 %v7149_v20, %v3576_v34 }
 0x6df   :  { %v3883_v4 = vpop.f32.mrf.mxu3  ;;  %v3679_v21 = vmax.f32 %v3577_v5, 0.0 }
 0x6e0   :  { %v3884_v18 = vadd.f32 %v7113_v44, %v3883_v4 }
 0x6e2   :  { %4032 = vst.msk [vmem:[%s7515_s11 + $0x40] sm:$0xff] %vm4023_vm2, %v3884_v18 }
 0x6e4   :  { %v3578_v6 = vpop.f32.mrf.mxu0 }
 0x6e5   :  { %v3579_v23 = vadd.f32 %v7149_v20, %v3578_v6 }
 0x6e7   :  { %v3885_v40 = vpop.f32.mrf.mxu3  ;;  %v3680_v13 = vmax.f32 %v3579_v23, 0.0 }
 0x6e8   :  { %v3886_v62 = vadd.f32 %v7113_v44, %v3885_v40 }
 0x6ea   :  { %4033 = vst.msk [vmem:[%s7515_s11 + $0x48] sm:$0xff] %vm4023_vm2, %v3886_v62 }
 0x6ec   :  { %4257 = vmatmul.msk.bf16.gmra.mxu3 %vm3757_vm1, %v3718_v36  ;;  %v3723_v36 = vpack.c.bf16 %v3678_v42, %v3677_v51  ;;  %v3581_v45 = vpop.f32.mrf.mxu0 }
 0x6ed   :  { %v3582_v12 = vadd.f32 %v7149_v20, %v3581_v45 }
 0x6ef   :  { %v3888_v28 = vpop.f32.mrf.mxu3  ;;  %v3681_v56 = vmax.f32 %v3582_v12, 0.0 }
 0x6f0   :  { %v3889_v9 = vadd.f32 %v7113_v44, %v3888_v28 }
 0x6f2   :  { %4034 = vst.msk [vmem:[%s7515_s11 + $0x50] sm:$0xff] %vm4023_vm2, %v3889_v9 }
 0x6f4   :  { %v3583_v43 = vpop.f32.mrf.mxu0 }
 0x6f5   :  { %v3584_v2 = vadd.f32 %v7149_v20, %v3583_v43 }
 0x6f7   :  { %v3890_v52 = vpop.f32.mrf.mxu3  ;;  %v3682_v60 = vmax.f32 %v3584_v2, 0.0 }
 0x6f8   :  { %v3891_v10 = vadd.f32 %v7113_v44, %v3890_v52 }
 0x6fa   :  { %4035 = vst.msk [vmem:[%s7515_s11 + $0x58] sm:$0xff] %vm4023_vm2, %v3891_v10 }
 0x6fc   :  { %4258 = vmatmul.msk.bf16.gmra.mxu3 %vm3757_vm1, %v3719_v46  ;;  %v3724_v46 = vpack.c.bf16 %v3680_v13, %v3679_v21  ;;  %v3586_v3 = vpop.f32.mrf.mxu0 }
 0x6fd   :  { %v3587_v16 = vadd.f32 %v7149_v20, %v3586_v3 }
 0x6ff   :  { %v3893_v55 = vpop.f32.mrf.mxu3  ;;  %v3683_v8 = vmax.f32 %v3587_v16, 0.0 }
 0x700   :  { %v3894_v25 = vadd.f32 %v7113_v44, %v3893_v55 }
 0x702   :  { %4036 = vst.msk [vmem:[%s7515_s11 + $0x60] sm:$0xff] %vm4023_vm2, %v3894_v25 }
 0x704   :  { %v3588_v29 = vpop.f32.mrf.mxu0 }
 0x705   :  { %v3589_v19 = vadd.f32 %v7149_v20, %v3588_v29 }
 0x707   :  { %v3895_v26 = vpop.f32.mrf.mxu3  ;;  %v3684_v47 = vmax.f32 %v3589_v19, 0.0 }
 0x708   :  { %v3896_v41 = vadd.f32 %v7113_v44, %v3895_v26 }
 0x70a   :  { %4037 = vst.msk [vmem:[%s7515_s11 + $0x68] sm:$0xff] %vm4023_vm2, %v3896_v41 }
 0x70c   :  { %4259 = vmatmul.msk.bf16.gmra.mxu3 %vm3757_vm1, %v3720_v22  ;;  %v3725_v22 = vpack.c.bf16 %v3682_v60, %v3681_v56  ;;  %v3591_v61 = vpop.f32.mrf.mxu0 }
 0x70d   :  { %v3592_v27 = vadd.f32 %v7149_v20, %v3591_v61 }
 0x70f   :  { %v3898_v50 = vpop.f32.mrf.mxu3  ;;  %v3685_v14 = vmax.f32 %v3592_v27, 0.0 }
 0x710   :  { %v3899_v31 = vadd.f32 %v7113_v44, %v3898_v50 }
 0x712   :  { %4038 = vst.msk [vmem:[%s7515_s11 + $0x70] sm:$0xff] %vm4023_vm2, %v3899_v31 }
 0x714   :  { %v3593_v53 = vpop.f32.mrf.mxu0 }
 0x715   :  { %v3594_v7 = vadd.f32 %v7149_v20, %v3593_v53 }
 0x717   :  { %v3900_v17 = vpop.f32.mrf.mxu3  ;;  %v3686_v59 = vmax.f32 %v3594_v7, 0.0 }
 0x718   :  { %v3901_v37 = vadd.f32 %v7113_v44, %v3900_v17 }
 0x719   :  { %v3727_v34 = vpack.c.bf16 %v3686_v59, %v3685_v14 }
 0x71a   :  { %4039 = vst.msk [vmem:[%s7515_s11 + $0x78] sm:$0xff] %vm4023_vm2, %v3901_v37 }
 0x71c   :  { %4260 = vmatmul.msk.bf16.gmra.mxu3 %vm3757_vm1, %v3721_v24  ;;  %v3726_v24 = vpack.c.bf16 %v3684_v47, %v3683_v8 }
 0x71f   :  { %v3903_v15 = vpop.f32.mrf.mxu3 }
 0x720   :  { %v3904_v1 = vadd.f32 %v7113_v44, %v3903_v15 }
 0x722   :  { %4040 = vst.msk [vmem:[%s7515_s11 + $0x80] sm:$0xff] %vm4023_vm2, %v3904_v1 }
 0x727   :  { %v3905_v48 = vpop.f32.mrf.mxu3 }
 0x728   :  { %v3906_v49 = vadd.f32 %v7113_v44, %v3905_v48 }
 0x72a   :  { %4041 = vst.msk [vmem:[%s7515_s11 + $0x88] sm:$0xff] %vm4023_vm2, %v3906_v49 }
 0x72c   :  { %4261 = vmatmul.msk.bf16.gmra.mxu3 %vm3757_vm1, %v3722_v30 }
 0x72f   :  { %v3908_v4 = vpop.f32.mrf.mxu3 }
 0x730   :  { %v3909_v18 = vadd.f32 %v7113_v44, %v3908_v4 }
 0x732   :  { %4042 = vst.msk [vmem:[%s7515_s11 + $0x90] sm:$0xff] %vm4023_vm2, %v3909_v18 }
 0x737   :  { %v3910_v40 = vpop.f32.mrf.mxu3 }
 0x738   :  { %v3911_v62 = vadd.f32 %v7113_v44, %v3910_v40 }
 0x73a   :  { %4043 = vst.msk [vmem:[%s7515_s11 + $0x98] sm:$0xff] %vm4023_vm2, %v3911_v62 }
 0x73c   :  { %4262 = vmatmul.msk.bf16.gmra.mxu3 %vm3757_vm1, %v3723_v36 }
 0x73f   :  { %v3913_v28 = vpop.f32.mrf.mxu3 }
 0x740   :  { %v3914_v9 = vadd.f32 %v7113_v44, %v3913_v28 }
 0x742   :  { %4044 = vst.msk [vmem:[%s7515_s11 + $0xa0] sm:$0xff] %vm4023_vm2, %v3914_v9 }
 0x747   :  { %v3915_v52 = vpop.f32.mrf.mxu3 }
 0x748   :  { %v3916_v10 = vadd.f32 %v7113_v44, %v3915_v52 }
 0x74a   :  { %4045 = vst.msk [vmem:[%s7515_s11 + $0xa8] sm:$0xff] %vm4023_vm2, %v3916_v10 }
 0x74c   :  { %4263 = vmatmul.msk.bf16.gmra.mxu3 %vm3757_vm1, %v3724_v46 }
 0x74f   :  { %v3918_v55 = vpop.f32.mrf.mxu3 }
 0x750   :  { %v3919_v25 = vadd.f32 %v7113_v44, %v3918_v55 }
 0x752   :  { %4046 = vst.msk [vmem:[%s7515_s11 + $0xb0] sm:$0xff] %vm4023_vm2, %v3919_v25 }
 0x757   :  { %v3920_v26 = vpop.f32.mrf.mxu3 }
 0x758   :  { %v3921_v41 = vadd.f32 %v7113_v44, %v3920_v26 }
 0x75a   :  { %4047 = vst.msk [vmem:[%s7515_s11 + $0xb8] sm:$0xff] %vm4023_vm2, %v3921_v41 }
 0x75c   :  { %4264 = vmatmul.msk.bf16.gmra.mxu3 %vm3757_vm1, %v3725_v22 }
 0x75f   :  { %v3923_v50 = vpop.f32.mrf.mxu3 }
 0x760   :  { %v3924_v31 = vadd.f32 %v7113_v44, %v3923_v50 }
 0x762   :  { %4048 = vst.msk [vmem:[%s7515_s11 + $0xc0] sm:$0xff] %vm4023_vm2, %v3924_v31 }
 0x767   :  { %v3925_v17 = vpop.f32.mrf.mxu3 }
 0x768   :  { %v3926_v37 = vadd.f32 %v7113_v44, %v3925_v17 }
 0x76a   :  { %4049 = vst.msk [vmem:[%s7515_s11 + $0xc8] sm:$0xff] %vm4023_vm2, %v3926_v37 }
 0x76c   :  { %4265 = vmatmul.msk.bf16.gmra.mxu3 %vm3757_vm1, %v3726_v24 }
 0x76f   :  { %v3928_v15 = vpop.f32.mrf.mxu3 }
 0x770   :  { %v3929_v1 = vadd.f32 %v7113_v44, %v3928_v15 }
 0x772   :  { %4050 = vst.msk [vmem:[%s7515_s11 + $0xd0] sm:$0xff] %vm4023_vm2, %v3929_v1 }
 0x777   :  { %v3930_v48 = vpop.f32.mrf.mxu3 }
 0x778   :  { %v3931_v49 = vadd.f32 %v7113_v44, %v3930_v48 }
 0x77a   :  { %4051 = vst.msk [vmem:[%s7515_s11 + $0xd8] sm:$0xff] %vm4023_vm2, %v3931_v49 }
 0x77c   :  { %4266 = vmatmul.msk.bf16.gmra.mxu3 %vm3757_vm1, %v3727_v34 }
 0x77f   :  { %v3933_v30 = vpop.f32.mrf.mxu3 }
 0x780   :  { %v3934_v4 = vadd.f32 %v7113_v44, %v3933_v30 }
 0x782   :  { %4052 = vst.msk [vmem:[%s7515_s11 + $0xe0] sm:$0xff] %vm4023_vm2, %v3934_v4 }
 0x787   :  { %v3935_v20 = vpop.f32.mrf.mxu3 }
 0x788   :  { %v3936_v18 = vadd.f32 %v7113_v44, %v3935_v20 }
 0x78a   :  { %4053 = vst.msk [vmem:[%s7515_s11 + $0xe8] sm:$0xff] %vm4023_vm2, %v3936_v18 }
 0x78c   :  { %4267 = vmatmul.msk.bf16.gmra.mxu3 %vm3757_vm1, %v7043_v38 }
 0x78f   :  { %v3938_v58 = vpop.f32.mrf.mxu3 }
 0x790   :  { %v3939_v6 = vadd.f32 %v7113_v44, %v3938_v58 }
 0x792   :  { %4054 = vst.msk [vmem:[%s7515_s11 + $0xf0] sm:$0xff] %vm4023_vm2, %v3939_v6 }
 0x797   :  { %v3940_v33 = vpop.f32.mrf.mxu3 }
 0x798   :  { %v3941_v42 = vadd.f32 %v7113_v44, %v3940_v33 }
 0x79a   :  { %4055 = vst.msk [vmem:[%s7515_s11 + $0xf8] sm:$0xff] %vm4023_vm2, %v3941_v42 }
 0x79c   :  { %4268 = vmatmul.msk.bf16.gmra.mxu3 %vm3757_vm1, %v7049_v39 }
 0x79f   :  { %v3943_v38 = vpop.f32.mrf.mxu3 }
 0x7a0   :  { %v3944_v40 = vadd.f32 %v7113_v44, %v3943_v38 }
 0x7a2   :  { %4056 = vst.msk [vmem:[%s7515_s11 + $0x100] sm:$0xff] %vm4023_vm2, %v3944_v40 }
 0x7a7   :  { %v3945_v51 = vpop.f32.mrf.mxu3 }
 0x7a8   :  { %v3946_v62 = vadd.f32 %v7113_v44, %v3945_v51 }
 0x7aa   :  { %4057 = vst.msk [vmem:[%s7515_s11 + $0x108] sm:$0xff] %vm4023_vm2, %v3946_v62 }
 0x7ac   :  { %4269 = vmatmul.msk.bf16.gmra.mxu3 %vm3757_vm1, %v7055_v54 }
 0x7af   :  { %v3948_v39 = vpop.f32.mrf.mxu3 }
 0x7b0   :  { %v3949_v36 = vadd.f32 %v7113_v44, %v3948_v39 }
 0x7b2   :  { %4058 = vst.msk [vmem:[%s7515_s11 + $0x110] sm:$0xff] %vm4023_vm2, %v3949_v36 }
 0x7b7   :  { %v3950_v45 = vpop.f32.mrf.mxu3 }
 0x7b8   :  { %v3951_v28 = vadd.f32 %v7113_v44, %v3950_v45 }
 0x7ba   :  { %4059 = vst.msk [vmem:[%s7515_s11 + $0x118] sm:$0xff] %vm4023_vm2, %v3951_v28 }
 0x7bc   :  { %4270 = vmatmul.msk.bf16.gmra.mxu3 %vm3757_vm1, %v7061_v32 }
 0x7bf   :  { %v3953_v54 = vpop.f32.mrf.mxu3 }
 0x7c0   :  { %v3954_v9 = vadd.f32 %v7113_v44, %v3953_v54 }
 0x7c2   :  { %4060 = vst.msk [vmem:[%s7515_s11 + $0x120] sm:$0xff] %vm4023_vm2, %v3954_v9 }
 0x7c7   :  { %v3955_v23 = vpop.f32.mrf.mxu3 }
 0x7c8   :  { %v3956_v5 = vadd.f32 %v7113_v44, %v3955_v23 }
 0x7ca   :  { %4061 = vst.msk [vmem:[%s7515_s11 + $0x128] sm:$0xff] %vm4023_vm2, %v3956_v5 }
 0x7cc   :  { %4271 = vmatmul.msk.bf16.gmra.mxu3 %vm3757_vm1, %v7071_v57 }
 0x7cf   :  { %v3958_v32 = vpop.f32.mrf.mxu3 }
 0x7d0   :  { %v3959_v13 = vadd.f32 %v7113_v44, %v3958_v32 }
 0x7d2   :  { %4062 = vst.msk [vmem:[%s7515_s11 + $0x130] sm:$0xff] %vm4023_vm2, %v3959_v13 }
 0x7d7   :  { %v3960_v43 = vpop.f32.mrf.mxu3 }
 0x7d8   :  { %v3961_v52 = vadd.f32 %v7113_v44, %v3960_v43 }
 0x7da   :  { %4063 = vst.msk [vmem:[%s7515_s11 + $0x138] sm:$0xff] %vm4023_vm2, %v3961_v52 }
 0x7dc   :  { %4272 = vmatmul.msk.bf16.gmra.mxu3 %vm3757_vm1, %v7080_v0 }
 0x7df   :  { %v3963_v57 = vpop.f32.mrf.mxu3 }
 0x7e0   :  { %v3964_v21 = vadd.f32 %v7113_v44, %v3963_v57 }
 0x7e2   :  { %4064 = vst.msk [vmem:[%s7515_s11 + $0x140] sm:$0xff] %vm4023_vm2, %v3964_v21 }
 0x7e7   :  { %v3965_v10 = vpop.f32.mrf.mxu3 }
 0x7e8   :  { %v3966_v46 = vadd.f32 %v7113_v44, %v3965_v10 }
 0x7ea   :  { %4065 = vst.msk [vmem:[%s7515_s11 + $0x148] sm:$0xff] %vm4023_vm2, %v3966_v46 }
 0x7ec   :  { %4273 = vmatmul.msk.bf16.gmra.mxu3 %vm3757_vm1, %v7089_v63 }
 0x7ef   :  { %v3968_v0 = vpop.f32.mrf.mxu3 }
 0x7f0   :  { %v3969_v55 = vadd.f32 %v7113_v44, %v3968_v0 }
 0x7f2   :  { %4066 = vst.msk [vmem:[%s7515_s11 + $0x150] sm:$0xff] %vm4023_vm2, %v3969_v55 }
 0x7f7   :  { %v3970_v25 = vpop.f32.mrf.mxu3 }
 0x7f8   :  { %v3971_v3 = vadd.f32 %v7113_v44, %v3970_v25 }
 0x7fa   :  { %4067 = vst.msk [vmem:[%s7515_s11 + $0x158] sm:$0xff] %vm4023_vm2, %v3971_v3 }
 0x7fc   :  { %4274 = vmatmul.msk.bf16.gmra.mxu3 %vm3757_vm1, %v7098_v35 }
 0x7ff   :  { %v3973_v63 = vpop.f32.mrf.mxu3 }
 0x800   :  { %v3974_v2 = vadd.f32 %v7113_v44, %v3973_v63 }
 0x802   :  { %4068 = vst.msk [vmem:[%s7515_s11 + $0x160] sm:$0xff] %vm4023_vm2, %v3974_v2 }
 0x807   :  { %v3975_v12 = vpop.f32.mrf.mxu3 }
 0x808   :  { %v3976_v60 = vadd.f32 %v7113_v44, %v3975_v12 }
 0x80a   :  { %4069 = vst.msk [vmem:[%s7515_s11 + $0x168] sm:$0xff] %vm4023_vm2, %v3976_v60 }
 0x80c   :  { %4275 = vmatmul.msk.bf16.gmra.mxu3 %vm3757_vm1, %v7107_v11 }
 0x80f   :  { %v3978_v35 = vpop.f32.mrf.mxu3 }
 0x810   :  { %v3979_v26 = vadd.f32 %v7113_v44, %v3978_v35 }
 0x812   :  { %4070 = vst.msk [vmem:[%s7515_s11 + $0x170] sm:$0xff] %vm4023_vm2, %v3979_v26 }
 0x817   :  { %v3980_v56 = vpop.f32.mrf.mxu3 }
 0x818   :  { %v3981_v41 = vadd.f32 %v7113_v44, %v3980_v56 }
 0x81a   :  { %4071 = vst.msk [vmem:[%s7515_s11 + $0x178] sm:$0xff] %vm4023_vm2, %v3981_v41 }
 0x81f   :  { %v3983_v22 = vpop.f32.mrf.mxu3 }
 0x820   :  { %v3984_v29 = vadd.f32 %v7113_v44, %v3983_v22 }
 0x822   :  { %4072 = vst.msk [vmem:[%s7515_s11 + $0x180] sm:$0xff] %vm4023_vm2, %v3984_v29 }
 0x827   :  { %v3985_v11 = vpop.f32.mrf.mxu3 }
 0x828   :  { %v3986_v50 = vadd.f32 %v7113_v44, %v3985_v11 }
 0x82a   :  { %4073 = vst.msk [vmem:[%s7515_s11 + $0x188] sm:$0xff] %vm4023_vm2, %v3986_v50 }
 0x82f   :  { %v3988_v31 = vpop.f32.mrf.mxu3 }
 0x830   :  { %v3989_v19 = vadd.f32 %v7113_v44, %v3988_v31 }
 0x832   :  { %4074 = vst.msk [vmem:[%s7515_s11 + $0x190] sm:$0xff] %vm4023_vm2, %v3989_v19 }
 0x837   :  { %v3990_v16 = vpop.f32.mrf.mxu3 }
 0x838   :  { %v3991_v61 = vadd.f32 %v7113_v44, %v3990_v16 }
 0x83a   :  { %4075 = vst.msk [vmem:[%s7515_s11 + $0x198] sm:$0xff] %vm4023_vm2, %v3991_v61 }
 0x83f   :  { %v3993_v47 = vpop.f32.mrf.mxu3 }
 0x840   :  { %v3994_v17 = vadd.f32 %v7113_v44, %v3993_v47 }
 0x842   :  { %4076 = vst.msk [vmem:[%s7515_s11 + $0x1a0] sm:$0xff] %vm4023_vm2, %v3994_v17 }
 0x847   :  { %v3995_v8 = vpop.f32.mrf.mxu3 }
 0x848   :  { %v3996_v37 = vadd.f32 %v7113_v44, %v3995_v8 }
 0x84a   :  { %4077 = vst.msk [vmem:[%s7515_s11 + $0x1a8] sm:$0xff] %vm4023_vm2, %v3996_v37 }
 0x84f   :  { %v3998_v24 = vpop.f32.mrf.mxu3 }
 0x850   :  { %v3999_v53 = vadd.f32 %v7113_v44, %v3998_v24 }
 0x852   :  { %4078 = vst.msk [vmem:[%s7515_s11 + $0x1b0] sm:$0xff] %vm4023_vm2, %v3999_v53 }
 0x857   :  { %v4000_v15 = vpop.f32.mrf.mxu3 }
 0x858   :  { %v4001_v1 = vadd.f32 %v7113_v44, %v4000_v15 }
 0x85a   :  { %4079 = vst.msk [vmem:[%s7515_s11 + $0x1b8] sm:$0xff] %vm4023_vm2, %v4001_v1 }
 0x85f   :  { %v4003_v7 = vpop.f32.mrf.mxu3 }
 0x860   :  { %v4004_v27 = vadd.f32 %v7113_v44, %v4003_v7 }
 0x862   :  { %4080 = vst.msk [vmem:[%s7515_s11 + $0x1c0] sm:$0xff] %vm4023_vm2, %v4004_v27 }
 0x867   :  { %v4005_v59 = vpop.f32.mrf.mxu3 }
 0x868   :  { %v4006_v48 = vadd.f32 %v7113_v44, %v4005_v59 }
 0x86a   :  { %4081 = vst.msk [vmem:[%s7515_s11 + $0x1c8] sm:$0xff] %vm4023_vm2, %v4006_v48 }
 0x86f   :  { %v4008_v14 = vpop.f32.mrf.mxu3 }
 0x870   :  { %v4009_v49 = vadd.f32 %v7113_v44, %v4008_v14 }
 0x872   :  { %4082 = vst.msk [vmem:[%s7515_s11 + $0x1d0] sm:$0xff] %vm4023_vm2, %v4009_v49 }
 0x877   :  { %v4010_v34 = vpop.f32.mrf.mxu3 }
 0x878   :  { %v4011_v30 = vadd.f32 %v7113_v44, %v4010_v34 }
 0x87a   :  { %4083 = vst.msk [vmem:[%s7515_s11 + $0x1d8] sm:$0xff] %vm4023_vm2, %v4011_v30 }
 0x87f   :  { %v4013_v4 = vpop.f32.mrf.mxu3 }
 0x880   :  { %v4014_v20 = vadd.f32 %v7113_v44, %v4013_v4 }
 0x882   :  { %4084 = vst.msk [vmem:[%s7515_s11 + $0x1e0] sm:$0xff] %vm4023_vm2, %v4014_v20 }
 0x887   :  { %v4015_v18 = vpop.f32.mrf.mxu3 }
 0x888   :  { %v4016_v58 = vadd.f32 %v7113_v44, %v4015_v18 }
 0x88a   :  { %4085 = vst.msk [vmem:[%s7515_s11 + $0x1e8] sm:$0xff] %vm4023_vm2, %v4016_v58 }
 0x88f   :  { %v4018_v6 = vpop.f32.mrf.mxu3 }
 0x890   :  { %v4019_v33 = vadd.f32 %v7113_v44, %v4018_v6 }
 0x892   :  { %4086 = vst.msk [vmem:[%s7515_s11 + $0x1f0] sm:$0xff] %vm4023_vm2, %v4019_v33 }
 0x897   :  { %v4020_v42 = vpop.f32.mrf.mxu3 }
 0x898   :  { %v4021_v38 = vadd.f32 %v7113_v44, %v4020_v42 }
 0x89a   :  { %4087 = vst.msk [vmem:[%s7515_s11 + $0x1f8] sm:$0xff] %vm4023_vm2, %v4021_v38 }

</bundles_post_ra>
